<compile_context>
chip_gen: v6e
topology: v6e:2x2x1
jax: 0.10.0
libtpu: 0.0.40
codegen_flags: <defaults>
</compile_context>

<pallas_src>
import functools
import math

import jax
import jax.numpy as jnp
from jax.experimental import pallas as pl
from jax.experimental.pallas import tpu as pltpu

# ----------------------------- configuration -------------------------------
NUM_CASCADES = 2
TIME_STEPS = 8 * math.ceil(8 / 8)          # reconstruction_module_time_steps
F1, F2 = 16, 16                            # conv / recurrent filters
KEEP_ETA = True
NUM_CLASSES = 4                            # segmentation output channels
GN_EPS = 1e-5                              # torch group_norm default eps
PADM = 2                                   # halo of the largest (5x5) conv, shared by all layers
CIN0 = 8                                   # conv-1 input channels padded 4 -> 8 (sublane tile)
NS = 8 + F1 + F2                           # merged step-output slab rows: [d(8) | h1(16) | h2(16)]


def _geometry(H, W):
    HP, WP = H + 2 * PADM, W + 2 * PADM
    SP = HP * WP                                             # flattened padded spatial
    SPP = -(-SP // 128) * 128                                # ... lane-padded to a 128 multiple
    EOFF = -(-(PADM * WP + PADM) // 128) * 128               # lane-aligned guard >= max tap shift
    EXTW = EOFF + SPP + EOFF                                 # guard | interior | guard (all lane tiles)
    return HP, WP, SP, SPP, EOFF, EXTW


# ----------------------------- Pallas kernels ------------------------------
def _rim_step_kernel(x_ref, st_ref, mask_ref,
                     w1_ref, b1_ref, r1w_ref, r1b_ref, r1u_ref,
                     w2_ref, b2_ref, r2w_ref, r2b_ref, r2u_ref, w3_ref,
                     out_ref, buf, colsbuf, *, WP, SPP, EOFF, EXTW):
    """One fused CIRIM time step for one batch element, fully VMEM resident.

    Layout: channels on sublanes, flattened zero-halo spatial (SPP lanes, 128-multiple) on
    lanes.  Each conv = one bf16 im2col matmul (f32 accumulation); shifted taps are static
    lane-slices of a guard-banded f32 halo buffer (flat shift = dy*WP + dx); the interior mask
    re-zeroes halo / lane-pad positions so the next conv sees proper zero padding.
    """
    bf = jnp.bfloat16
    mask = mask_ref[...]                                        # (1, SPP) interior mask (f32)

    # Guard bands only (4 vregs).  Re-zeroed every grid iteration so this stays correct even
    # when the batch grid is sharded across TensorCores (each core has its own scratch).
    buf[:, 0:EOFF] = jnp.zeros((F1, EOFF), jnp.float32)
    buf[:, EOFF + SPP:EXTW] = jnp.zeros((F1, EXTW - EOFF - SPP), jnp.float32)

    def build_cols(cin, K):
        # scatter K*K shifted views into the bf16 im2col scratch: row = tap*cin + channel
        r = K // 2
        t = 0
        for dy in range(-r, r + 1):
            for dx in range(-r, r + 1):
                s = EOFF + dy * WP + dx
                colsbuf[t * cin:(t + 1) * cin, :] = buf[0:cin, s:s + SPP].astype(bf)
                t += 1
        return colsbuf[0:K * K * cin, :]

    # ---- stage 1: conv 5x5 (4->16, cin padded to 8) + ReLU, then IndRNN-1 ----
    buf[0:CIN0, EOFF:EOFF + SPP] = x_ref[0]
    cols = build_cols(CIN0, 5)                                              # (200, SPP) bf16
    a1 = jnp.maximum(
        jnp.dot(w1_ref[...], cols, preferred_element_type=jnp.float32) + b1_ref[...], 0.0)
    h1n = jnp.maximum(
        jnp.dot(r1w_ref[...], a1.astype(bf), preferred_element_type=jnp.float32)
        + r1b_ref[...] + r1u_ref[...] * st_ref[0, 8:8 + F1, :], 0.0) * mask  # zero halo + pad
    out_ref[0, 8:8 + F1, :] = h1n

    # ---- stage 2: conv 3x3 (16->16) + ReLU, then IndRNN-2 --------------------
    buf[:, EOFF:EOFF + SPP] = h1n
    cols = build_cols(F1, 3)                                                # (144, SPP) bf16
    a2 = jnp.maximum(
        jnp.dot(w2_ref[...], cols, preferred_element_type=jnp.float32) + b2_ref[...], 0.0)
    h2n = jnp.maximum(
        jnp.dot(r2w_ref[...], a2.astype(bf), preferred_element_type=jnp.float32)
        + r2b_ref[...] + r2u_ref[...] * st_ref[0, 8 + F1:NS, :], 0.0) * mask
    out_ref[0, 8 + F1:NS, :] = h2n

    # ---- stage 3: final conv 3x3 (16->2, output rows zero-padded to 8), no bias/nonlin ----
    buf[:, EOFF:EOFF + SPP] = h2n
    cols = build_cols(F2, 3)
    out_ref[0, 0:8, :] = (
        jnp.dot(w3_ref[...], cols, preferred_element_type=jnp.float32) * mask)


def _rim_step_call(x_flat, state, mask_flat, wts, geo):
    HP, WP, SP, SPP, EOFF, EXTW = geo
    B = x_flat.shape[0]
    (w1, b1, r1w, r1b, r1u, w2, b2, r2w, r2b, r2u, w3) = wts
    kern = functools.partial(_rim_step_kernel, WP=WP, SPP=SPP, EOFF=EOFF, EXTW=EXTW)
    batch3 = lambda i: (i, 0, 0)
    rep2 = lambda i: (0, 0)
    return pl.pallas_call(
        kern,
        out_shape=jax.ShapeDtypeStruct((B, NS, SPP), jnp.float32),
        grid=(B,),
        in_specs=[
            pl.BlockSpec((1, CIN0, SPP), batch3),       # x (eta, grad) channels padded to 8
            pl.BlockSpec((1, NS, SPP), batch3),         # recurrent state slab (aliased to out)
            pl.BlockSpec((1, SPP), rep2),               # interior mask
            pl.BlockSpec(w1.shape, rep2), pl.BlockSpec(b1.shape, rep2),
            pl.BlockSpec(r1w.shape, rep2), pl.BlockSpec(r1b.shape, rep2),
            pl.BlockSpec(r1u.shape, rep2),
            pl.BlockSpec(w2.shape, rep2), pl.BlockSpec(b2.shape, rep2),
            pl.BlockSpec(r2w.shape, rep2), pl.BlockSpec(r2b.shape, rep2),
            pl.BlockSpec(r2u.shape, rep2),
            pl.BlockSpec(w3.shape, rep2),
        ],
        out_specs=pl.BlockSpec((1, NS, SPP), batch3),
        scratch_shapes=[pltpu.VMEM((F1, EXTW), jnp.float32),            # guard-banded halo buffer
                        pltpu.VMEM((5 * 5 * CIN0, SPP), jnp.bfloat16)],  # shared bf16 im2col buffer
        input_output_aliases={1: 0},                    # state written in place, no fresh HBM alloc
        compiler_params=pltpu.CompilerParams(
            dimension_semantics=("parallel",),          # megacore: batch grid across TensorCores
            vmem_limit_bytes=48 * 1024 * 1024),         # safe on v5e/v6e/v7x; tiny use at 16x16
    )(x_flat, state, mask_flat, w1, b1, r1w, r1b, r1u, w2, b2, r2w, r2b, r2u, w3)


def _seg_head_kernel(eta_ref, segw_ref, mask_ref, out_ref, gbuf,
                     *, WP, SPP, EOFF, EXTW, inv_n, eps):
    """|eta| -> group_norm(1 group, no affine) -> conv3x3 (1->classes, no bias) -> abs."""
    mask = mask_ref[...]                                        # (1, SPP)
    re = eta_ref[0, 0:1, :]
    im = eta_ref[0, 1:2, :]
    mag = jnp.sqrt(re * re + im * im) * mask
    mean = jnp.sum(mag) * inv_n
    diff = (mag - mean) * mask
    var = jnp.sum(diff * diff) * inv_n
    g = diff * jax.lax.rsqrt(var + eps)                         # normalized, zero halo/pad
    gbuf[:, 0:EOFF] = jnp.zeros((1, EOFF), jnp.float32)         # guard bands only
    gbuf[:, EOFF + SPP:EXTW] = jnp.zeros((1, EXTW - EOFF - SPP), jnp.float32)
    gbuf[:, EOFF:EOFF + SPP] = g
    acc = jnp.zeros((NUM_CLASSES, SPP), jnp.float32)
    t = 0
    for dy in (-1, 0, 1):
        for dx in (-1, 0, 1):
            s = EOFF + dy * WP + dx
            acc = acc + segw_ref[:, t:t + 1] * gbuf[:, s:s + SPP]   # cin=1 conv as 9 shifted FMAs
            t += 1
    out_ref[0] = jnp.abs(acc) * mask


def _seg_head_call(eta_flat, segw2d, mask_flat, geo, H, W):
    HP, WP, SP, SPP, EOFF, EXTW = geo
    B = eta_flat.shape[0]
    kern = functools.partial(_seg_head_kernel, WP=WP, SPP=SPP, EOFF=EOFF, EXTW=EXTW,
                             inv_n=1.0 / float(H * W), eps=GN_EPS)
    return pl.pallas_call(
        kern,
        out_shape=jax.ShapeDtypeStruct((B, NUM_CLASSES, SPP), jnp.float32),
        grid=(B,),
        in_specs=[pl.BlockSpec((1, 2, SPP), lambda i: (i, 0, 0)),
                  pl.BlockSpec(segw2d.shape, lambda i: (0, 0)),
                  pl.BlockSpec((1, SPP), lambda i: (0, 0))],
        out_specs=pl.BlockSpec((1, NUM_CLASSES, SPP), lambda i: (i, 0, 0)),
        scratch_shapes=[pltpu.VMEM((1, EXTW), jnp.float32)],
        compiler_params=pltpu.CompilerParams(
            dimension_semantics=("parallel",),
            vmem_limit_bytes=32 * 1024 * 1024),
    )(eta_flat, segw2d, mask_flat)


# ----------------------------- plain-JAX glue -------------------------------
def to_complex(x):
    return x[..., 0] + 1j * x[..., 1]


def fft2c(x):   # centered, ortho-normalized 2D FFT over the last two dims
    x = jnp.fft.ifftshift(x, axes=(-2, -1))
    x = jnp.fft.fftn(x, axes=(-2, -1), norm="ortho")
    return jnp.fft.fftshift(x, axes=(-2, -1))


def ifft2c(x):
    x = jnp.fft.ifftshift(x, axes=(-2, -1))
    x = jnp.fft.ifftn(x, axes=(-2, -1), norm="ortho")
    return jnp.fft.fftshift(x, axes=(-2, -1))


def _interior_mask(H, W, geo):
    HP, WP, SP, SPP, _, _ = geo
    m = jnp.zeros((HP, WP), jnp.float32).at[PADM:PADM + H, PADM:PADM + W].set(1.0)
    m = m.reshape(1, SP)
    return jnp.pad(m, ((0, 0), (0, SPP - SP)))


def _pad_flat_cf(x, geo):
    """[B,C,H,W] -> [B,C,SPP]: zero 2-pixel halo, row-major flatten, lane pad to 128-multiple."""
    HP, WP, SP, SPP, _, _ = geo
    xp = jnp.pad(x, ((0, 0), (0, 0), (PADM, PADM), (PADM, PADM)))
    xf = xp.reshape(x.shape[0], x.shape[1], SP)
    return jnp.pad(xf, ((0, 0), (0, 0), (0, SPP - SP)))


def _pad_x_cf(x, geo):
    """[B,4,H,W] -> [B,CIN0,SPP]: pad channels to 8, add halo, flatten, lane pad."""
    HP, WP, SP, SPP, _, _ = geo
    xp = jnp.pad(x, ((0, 0), (0, CIN0 - x.shape[1]), (PADM, PADM), (PADM, PADM)))
    xf = xp.reshape(x.shape[0], CIN0, SP)
    return jnp.pad(xf, ((0, 0), (0, 0), (0, SPP - SP)))


def _crop_cf(x_flat, geo, H, W, C):
    """[B,C,SPP] -> [B,C,H,W] (drop lane pad + halo)."""
    HP, WP, SP, SPP, _, _ = geo
    return (x_flat[:, :, :SP].reshape(x_flat.shape[0], C, HP, WP)
            [:, :, PADM:PADM + H, PADM:PADM + W])


def _prep_cascade_weights(cas):
    """Reorder conv/IndRNN weights into (cout, tap*cin) / (cout, cin) layouts; matmul weights bf16."""
    bf, f32 = jnp.bfloat16, jnp.float32
    w1 = jnp.pad(cas['w1'], ((0, 0), (0, 0), (0, CIN0 - 4), (0, 0)))        # (5,5,8,16)
    w1_2d = jnp.transpose(w1, (3, 0, 1, 2)).reshape(F1, 5 * 5 * CIN0)       # (16, 200)
    w2_2d = jnp.transpose(cas['w2'], (3, 0, 1, 2)).reshape(F2, 3 * 3 * F1)  # (16, 144)
    w3_2d = jnp.transpose(cas['w3'], (3, 0, 1, 2)).reshape(2, 3 * 3 * F2)   # (2, 144)
    w3_2d = jnp.pad(w3_2d, ((0, 8 - 2), (0, 0)))                            # pad rows 2->8 (sublane tile)
    return (w1_2d.astype(bf),
            cas['b1'].reshape(F1, 1).astype(f32),
            jnp.transpose(cas['rnn1_wih']).astype(bf),
            cas['rnn1_b'].reshape(F1, 1).astype(f32),
            cas['rnn1_whh'].reshape(F1, 1).astype(f32),
            w2_2d.astype(bf),
            cas['b2'].reshape(F2, 1).astype(f32),
            jnp.transpose(cas['rnn2_wih']).astype(bf),
            cas['rnn2_b'].reshape(F2, 1).astype(f32),
            cas['rnn2_whh'].reshape(F2, 1).astype(f32),
            w3_2d.astype(bf))


def _run_cascade(wts, eta0, st0, y_masked_c, sens_c, sens_conj, mask_r,
                 mask_flat, sigma, geo, H, W):
    """One RIMBlock cascade (IndRNN CIRIM), accumulate_estimates=True, no_dc=True."""
    def step(carry, _):
        eta, st = carry                                       # eta: [B,2,H,W], st: [B,NS,SPP]
        eta_c = eta[:, 0] + 1j * eta[:, 1]
        # log-likelihood gradient: S^H F^H ( M F S eta - M y ); M y hoisted out of the loop
        pred_k = fft2c(eta_c[:, None, :, :] * sens_c)
        resid = mask_r[:, None, :, :] * pred_k - y_masked_c
        grad_c = jnp.sum(sens_conj * ifft2c(resid), axis=1)
        x_cf = jnp.stack([eta[:, 0], eta[:, 1], grad_c.real, grad_c.imag], axis=1) / sigma
        x_flat = _pad_x_cf(x_cf, geo)
        st_new = _rim_step_call(x_flat, st, mask_flat, wts, geo)
        eta_n = eta + _crop_cf(st_new[:, 0:2], geo, H, W, 2)
        return (eta_n, st_new), eta_n

    (eta_f, st_f), etas = jax.lax.scan(step, (eta0, st0), None, length=TIME_STEPS)
    return etas, eta_f, st_f                                  # etas: [T,B,2,H,W] (kept stacked)


def jrscirim_forward(params, y, sensitivity_maps, mask,
                     init_reconstruction_pred, target_reconstruction,
                     hx=None, sigma=1.0):
    """Forward pass of JRSCIRIMBlock (consecutive_slices == 1 branch)."""
    y = y.astype(jnp.float32)
    B, C, H, W = y.shape[0], y.shape[1], y.shape[2], y.shape[3]
    geo = _geometry(H, W)
    _, _, _, SPP, _, _ = geo

    y_c = to_complex(y)
    sens_c = to_complex(sensitivity_maps.astype(jnp.float32))
    sens_conj = jnp.conj(sens_c)
    mask_r = mask[:, 0, :, :, 0].astype(jnp.float32)
    y_masked_c = mask_r[:, None, :, :] * y_c          # loop-invariant masked k-space (hoisted)
    mask_flat = _interior_mask(H, W, geo)
    sigma = 1.0                                        # reference hard-codes sigma in this branch

    # initial eta: supplied initial reconstruction (if any), else SENSE combine of ifft(y)
    init_eta = None
    if init_reconstruction_pred is not None and init_reconstruction_pred.ndim >= 4:
        ip = init_reconstruction_pred.astype(jnp.float32)
        if ip.ndim == 5:
            ip = ip[:, 0]
        init_eta = jnp.stack([ip[..., 0], ip[..., 1]], axis=1)            # [B,2,H,W]

    # merged recurrent-state slab: rows [0:8)=delta (last step), [8:24)=h1, [24:40)=h2
    st = jnp.zeros((B, NS, SPP), jnp.float32)
    if hx is not None:
        st = st.at[:, 8:8 + F1].set(_pad_flat_cf(hx[0].astype(jnp.float32), geo))
        st = st.at[:, 8 + F1:NS].set(_pad_flat_cf(hx[1].astype(jnp.float32), geo))

    cascades_etas = []
    prev_eta = None
    for i, cas in enumerate(params['cascades']):
        if init_eta is not None:
            eta0 = init_eta
        elif i == 0:
            e0 = jnp.sum(ifft2c(y_c) * sens_conj, axis=1)                  # SENSE coil combine
            eta0 = jnp.stack([e0.real, e0.imag], axis=1)
        else:
            eta0 = prev_eta                                                # keep_eta=True
        wts = _prep_cascade_weights(cas)
        etas, eta_f, st = _run_cascade(wts, eta0, st, y_masked_c, sens_c,
                                       sens_conj, mask_r, mask_flat, sigma, geo, H, W)
        prev_eta = eta_f
        # process_intermediate_pred with no_dc=True: view_as_complex (+ no-op crop),
        # applied once to the stacked scan output instead of per time step.
        cascades_etas.append(etas[:, :, 0] + 1j * etas[:, :, 1])           # [T,B,H,W] complex64
    pred_reconstruction = cascades_etas

    # segmentation head (input_channels=1, magnitude_input=True, 'convlayer'):
    # |eta| -> group_norm(1 group, no affine) -> 3x3 conv (1->4, no bias) -> abs -> /max
    eta_flat = _pad_flat_cf(prev_eta, geo)                                 # [B,2,SPP]
    segw2d = jnp.transpose(params['seg_w'][:, :, 0, :], (2, 0, 1)).reshape(NUM_CLASSES, 9)
    seg_flat = _seg_head_call(eta_flat, segw2d.astype(jnp.float32), mask_flat, geo, H, W)
    seg = _crop_cf(seg_flat, geo, H, W, NUM_CLASSES)                       # [B, classes, H, W]
    m = jnp.max(seg)                                   # global (batch-coupled) max, as in torch
    m = jnp.where(m > 0, m, 1.0)                       # guard all-zero (torch would produce NaN)
    pred_segmentation = seg / m

    hx_out = [_crop_cf(st[:, 8:8 + F1], geo, H, W, F1),
              _crop_cf(st[:, 8 + F1:NS], geo, H, W, F2)]                   # NCHW hidden states
    return pred_reconstruction, pred_segmentation, hx_out


# ----------------------------- parameter init -------------------------------
def init_params(key):
    std = 1.0 / math.sqrt(F1)     # std_init_range = 1 / recurrent_filters[0] ** 0.5
    cascades = []
    for _ in range(NUM_CASCADES):
        key, *ks = jax.random.split(key, 8)
        cascades.append(dict(
            w1=jax.random.normal(ks[0], (5, 5, 4, F1), jnp.float32) * std,
            b1=jnp.zeros((F1,), jnp.float32),
            rnn1_wih=jax.random.normal(ks[1], (F1, F1), jnp.float32) * std,
            rnn1_b=jnp.zeros((F1,), jnp.float32),
            rnn1_whh=jax.random.uniform(ks[2], (F1,), jnp.float32, 0.0, 1.0),
            w2=jax.random.normal(ks[3], (3, 3, F1, F2), jnp.float32) * std,
            b2=jnp.zeros((F2,), jnp.float32),
            rnn2_wih=jax.random.normal(ks[4], (F2, F2), jnp.float32) * std,
            rnn2_b=jnp.zeros((F2,), jnp.float32),
            rnn2_whh=jax.random.uniform(ks[5], (F2,), jnp.float32, 0.0, 1.0),
            w3=jax.random.normal(ks[6], (3, 3, F2, 2), jnp.float32) * (0.1 * std),
        ))
    key, k_seg = jax.random.split(key)
    seg_w = jax.random.normal(k_seg, (3, 3, 1, NUM_CLASSES), jnp.float32) * (1.0 / 3.0)
    return dict(cascades=cascades, seg_w=seg_w, dc_weight=jnp.ones((1,), jnp.float32))


# ----------------------------------- main ------------------------------------
if __name__ == "__main__":
    B, C, H, W = 2, 4, 16, 16
    key = jax.random.PRNGKey(0)
    k_y, k_s, k_m, k_i, k_t, k_p = jax.random.split(key, 6)

    y = jax.random.normal(k_y, (B, C, H, W, 2), jnp.float32)
    sens = jax.random.normal(k_s, (B, C, H, W, 2), jnp.float32)
    # normalize coil sensitivities (SENSE convention: sum_c |S_c|^2 = 1)
    sens_c = sens[..., 0] + 1j * sens[..., 1]
    rss = jnp.sqrt(jnp.sum(jnp.abs(sens_c) ** 2, axis=1, keepdims=True)) + 1e-8
    sens = jnp.stack([jnp.real(sens_c / rss), jnp.imag(sens_c / rss)], axis=-1)

    mask_cols = (jax.random.uniform(k_m, (W,)) < 0.4)
    mask_cols = mask_cols.at[W // 2 - 2: W // 2 + 2].set(True)
    mask = jnp.broadcast_to(mask_cols.astype(jnp.float32)[None, None, None, :, None],
                            (B, 1, H, W, 2))

    init_reconstruction_pred = jax.random.normal(k_i, (B, 1, H, W, 2), jnp.float32)
    target_reconstruction = jax.random.normal(k_t, (B, H, W, 2), jnp.float32)

    params = init_params(k_p)

    fwd = jax.jit(jrscirim_forward)
    pred_reconstruction, pred_segmentation, hx = fwd(
        params, y, sens, mask, init_reconstruction_pred, target_reconstruction)
    jax.block_until_ready((pred_reconstruction, pred_segmentation, hx))

    # sanity checks
    assert len(pred_reconstruction) == NUM_CASCADES
    assert pred_reconstruction[0].shape == (TIME_STEPS, B, H, W)      # stacked time steps
    assert pred_reconstruction[-1][-1].shape == (B, H, W)             # last cascade, last step
    assert pred_reconstruction[-1].dtype == jnp.complex64
    assert pred_segmentation.shape == (B, NUM_CLASSES, H, W)
    assert hx[0].shape == (B, F1, H, W) and hx[1].shape == (B, F2, H, W)
    assert bool(jnp.all(jnp.isfinite(pred_segmentation)))
    assert all(bool(jnp.all(jnp.isfinite(jnp.abs(c)))) for c in pred_reconstruction)

    print("KERNEL_OK")
</pallas_src>

<mosaic_0001>
module attributes {stable_mosaic.version = 11 : i64} {
  func.func @_rim_step_kernel(%arg0: i32, %arg1: memref<1x8x512xf32, #tpu.memory_space<vmem>>, %arg2: memref<1x40x512xf32, #tpu.memory_space<vmem>>, %arg3: memref<1x512xf32, #tpu.memory_space<vmem>>, %arg4: memref<16x200xbf16, #tpu.memory_space<vmem>>, %arg5: memref<16x1xf32, #tpu.memory_space<vmem>>, %arg6: memref<16x16xbf16, #tpu.memory_space<vmem>>, %arg7: memref<16x1xf32, #tpu.memory_space<vmem>>, %arg8: memref<16x1xf32, #tpu.memory_space<vmem>>, %arg9: memref<16x144xbf16, #tpu.memory_space<vmem>>, %arg10: memref<16x1xf32, #tpu.memory_space<vmem>>, %arg11: memref<16x16xbf16, #tpu.memory_space<vmem>>, %arg12: memref<16x1xf32, #tpu.memory_space<vmem>>, %arg13: memref<16x1xf32, #tpu.memory_space<vmem>>, %arg14: memref<8x144xbf16, #tpu.memory_space<vmem>>, %arg15: memref<1x40x512xf32, #tpu.memory_space<vmem>>, %arg16: memref<16x768xf32, #tpu.memory_space<vmem>>, %arg17: memref<200x512xbf16, #tpu.memory_space<vmem>>) attributes {dimension_semantics = [#tpu.dimension_semantics<parallel>], iteration_bounds = array<i64: 2>, scalar_prefetch = 0 : i64, scratch_operands = 2 : i64, tpu.core_type = #tpu.core_type<tc>, window_params = [{transform_indices = @transform_0, window_bounds = array<i64: 1, 8, 512>}, {transform_indices = @transform_1, window_bounds = array<i64: 1, 40, 512>}, {pipeline_mode = #tpu.pipeline_mode<synchronous>, transform_indices = @transform_2, window_bounds = array<i64: 1, 512>}, {pipeline_mode = #tpu.pipeline_mode<synchronous>, transform_indices = @transform_3, window_bounds = array<i64: 16, 200>}, {pipeline_mode = #tpu.pipeline_mode<synchronous>, transform_indices = @transform_4, window_bounds = array<i64: 16, 1>}, {pipeline_mode = #tpu.pipeline_mode<synchronous>, transform_indices = @transform_5, window_bounds = array<i64: 16, 16>}, {pipeline_mode = #tpu.pipeline_mode<synchronous>, transform_indices = @transform_6, window_bounds = array<i64: 16, 1>}, {pipeline_mode = #tpu.pipeline_mode<synchronous>, transform_indices = @transform_7, window_bounds = array<i64: 16, 1>}, {pipeline_mode = #tpu.pipeline_mode<synchronous>, transform_indices = @transform_8, window_bounds = array<i64: 16, 144>}, {pipeline_mode = #tpu.pipeline_mode<synchronous>, transform_indices = @transform_9, window_bounds = array<i64: 16, 1>}, {pipeline_mode = #tpu.pipeline_mode<synchronous>, transform_indices = @transform_10, window_bounds = array<i64: 16, 16>}, {pipeline_mode = #tpu.pipeline_mode<synchronous>, transform_indices = @transform_11, window_bounds = array<i64: 16, 1>}, {pipeline_mode = #tpu.pipeline_mode<synchronous>, transform_indices = @transform_12, window_bounds = array<i64: 16, 1>}, {pipeline_mode = #tpu.pipeline_mode<synchronous>, transform_indices = @transform_13, window_bounds = array<i64: 8, 144>}, {transform_indices = @transform_14, window_bounds = array<i64: 1, 40, 512>}]} {
    %c0 = arith.constant 0 : index
    %c0_0 = arith.constant 0 : index
    %0 = vector.load %arg3[%c0, %c0_0] : memref<1x512xf32, #tpu.memory_space<vmem>>, vector<1x512xf32>
    %cst = arith.constant 0.000000e+00 : f32
    %1 = vector.broadcast %cst : f32 to vector<16x128xf32>
    %c0_1 = arith.constant 0 : index
    %c0_2 = arith.constant 0 : index
    %2 = vector.load %arg16[%c0_1, %c0_2] : memref<16x768xf32, #tpu.memory_space<vmem>>, vector<16x128xf32>
    tpu.vector_store %arg16[%c0_1, %c0_2], %1 {strides = array<i32>} : memref<16x768xf32, #tpu.memory_space<vmem>>, vector<16x128xf32>,
    %cst_3 = arith.constant 0.000000e+00 : f32
    %3 = vector.broadcast %cst_3 : f32 to vector<16x128xf32>
    %c0_4 = arith.constant 0 : index
    %c640 = arith.constant 640 : index
    %4 = vector.load %arg16[%c0_4, %c640] : memref<16x768xf32, #tpu.memory_space<vmem>>, vector<16x128xf32>
    tpu.vector_store %arg16[%c0_4, %c640], %3 {strides = array<i32>} : memref<16x768xf32, #tpu.memory_space<vmem>>, vector<16x128xf32>,
    %c0_5 = arith.constant 0 : index
    %c0_6 = arith.constant 0 : index
    %c0_7 = arith.constant 0 : index
    %5 = vector.load %arg1[%c0_5, %c0_6, %c0_7] : memref<1x8x512xf32, #tpu.memory_space<vmem>>, vector<1x8x512xf32>
    %6 = vector.shape_cast %5 : vector<1x8x512xf32> to vector<8x512xf32>
    %c0_8 = arith.constant 0 : index
    %c128 = arith.constant 128 : index
    %7 = vector.load %arg16[%c0_8, %c128] : memref<16x768xf32, #tpu.memory_space<vmem>>, vector<8x512xf32>
    tpu.vector_store %arg16[%c0_8, %c128], %6 {strides = array<i32>} : memref<16x768xf32, #tpu.memory_space<vmem>>, vector<8x512xf32>,
    %c0_9 = arith.constant 0 : index
    %c86 = arith.constant 86 : index
    %8 = vector.load %arg16[%c0_9, %c86] : memref<16x768xf32, #tpu.memory_space<vmem>>, vector<8x512xf32>
    %9 = arith.truncf %8 : vector<8x512xf32> to vector<8x512xbf16>
    %c0_10 = arith.constant 0 : index
    %c0_11 = arith.constant 0 : index
    %10 = vector.load %arg17[%c0_10, %c0_11] : memref<200x512xbf16, #tpu.memory_space<vmem>>, vector<8x512xbf16>
    tpu.vector_store %arg17[%c0_10, %c0_11], %9 {strides = array<i32>} : memref<200x512xbf16, #tpu.memory_space<vmem>>, vector<8x512xbf16>,
    %c0_12 = arith.constant 0 : index
    %c87 = arith.constant 87 : index
    %11 = vector.load %arg16[%c0_12, %c87] : memref<16x768xf32, #tpu.memory_space<vmem>>, vector<8x512xf32>
    %12 = arith.truncf %11 : vector<8x512xf32> to vector<8x512xbf16>
    %c8 = arith.constant 8 : index
    %c0_13 = arith.constant 0 : index
    %13 = vector.load %arg17[%c8, %c0_13] : memref<200x512xbf16, #tpu.memory_space<vmem>>, vector<8x512xbf16>
    tpu.vector_store %arg17[%c8, %c0_13], %12 {strides = array<i32>} : memref<200x512xbf16, #tpu.memory_space<vmem>>, vector<8x512xbf16>,
    %c0_14 = arith.constant 0 : index
    %c88 = arith.constant 88 : index
    %14 = vector.load %arg16[%c0_14, %c88] : memref<16x768xf32, #tpu.memory_space<vmem>>, vector<8x512xf32>
    %15 = arith.truncf %14 : vector<8x512xf32> to vector<8x512xbf16>
    %c16 = arith.constant 16 : index
    %c0_15 = arith.constant 0 : index
    %16 = vector.load %arg17[%c16, %c0_15] : memref<200x512xbf16, #tpu.memory_space<vmem>>, vector<8x512xbf16>
    tpu.vector_store %arg17[%c16, %c0_15], %15 {strides = array<i32>} : memref<200x512xbf16, #tpu.memory_space<vmem>>, vector<8x512xbf16>,
    %c0_16 = arith.constant 0 : index
    %c89 = arith.constant 89 : index
    %17 = vector.load %arg16[%c0_16, %c89] : memref<16x768xf32, #tpu.memory_space<vmem>>, vector<8x512xf32>
    %18 = arith.truncf %17 : vector<8x512xf32> to vector<8x512xbf16>
    %c24 = arith.constant 24 : index
    %c0_17 = arith.constant 0 : index
    %19 = vector.load %arg17[%c24, %c0_17] : memref<200x512xbf16, #tpu.memory_space<vmem>>, vector<8x512xbf16>
    tpu.vector_store %arg17[%c24, %c0_17], %18 {strides = array<i32>} : memref<200x512xbf16, #tpu.memory_space<vmem>>, vector<8x512xbf16>,
    %c0_18 = arith.constant 0 : index
    %c90 = arith.constant 90 : index
    %20 = vector.load %arg16[%c0_18, %c90] : memref<16x768xf32, #tpu.memory_space<vmem>>, vector<8x512xf32>
    %21 = arith.truncf %20 : vector<8x512xf32> to vector<8x512xbf16>
    %c32 = arith.constant 32 : index
    %c0_19 = arith.constant 0 : index
    %22 = vector.load %arg17[%c32, %c0_19] : memref<200x512xbf16, #tpu.memory_space<vmem>>, vector<8x512xbf16>
    tpu.vector_store %arg17[%c32, %c0_19], %21 {strides = array<i32>} : memref<200x512xbf16, #tpu.memory_space<vmem>>, vector<8x512xbf16>,
    %c0_20 = arith.constant 0 : index
    %c106 = arith.constant 106 : index
    %23 = vector.load %arg16[%c0_20, %c106] : memref<16x768xf32, #tpu.memory_space<vmem>>, vector<8x512xf32>
    %24 = arith.truncf %23 : vector<8x512xf32> to vector<8x512xbf16>
    %c40 = arith.constant 40 : index
    %c0_21 = arith.constant 0 : index
    %25 = vector.load %arg17[%c40, %c0_21] : memref<200x512xbf16, #tpu.memory_space<vmem>>, vector<8x512xbf16>
    tpu.vector_store %arg17[%c40, %c0_21], %24 {strides = array<i32>} : memref<200x512xbf16, #tpu.memory_space<vmem>>, vector<8x512xbf16>,
    %c0_22 = arith.constant 0 : index
    %c107 = arith.constant 107 : index
    %26 = vector.load %arg16[%c0_22, %c107] : memref<16x768xf32, #tpu.memory_space<vmem>>, vector<8x512xf32>
    %27 = arith.truncf %26 : vector<8x512xf32> to vector<8x512xbf16>
    %c48 = arith.constant 48 : index
    %c0_23 = arith.constant 0 : index
    %28 = vector.load %arg17[%c48, %c0_23] : memref<200x512xbf16, #tpu.memory_space<vmem>>, vector<8x512xbf16>
    tpu.vector_store %arg17[%c48, %c0_23], %27 {strides = array<i32>} : memref<200x512xbf16, #tpu.memory_space<vmem>>, vector<8x512xbf16>,
    %c0_24 = arith.constant 0 : index
    %c108 = arith.constant 108 : index
    %29 = vector.load %arg16[%c0_24, %c108] : memref<16x768xf32, #tpu.memory_space<vmem>>, vector<8x512xf32>
    %30 = arith.truncf %29 : vector<8x512xf32> to vector<8x512xbf16>
    %c56 = arith.constant 56 : index
    %c0_25 = arith.constant 0 : index
    %31 = vector.load %arg17[%c56, %c0_25] : memref<200x512xbf16, #tpu.memory_space<vmem>>, vector<8x512xbf16>
    tpu.vector_store %arg17[%c56, %c0_25], %30 {strides = array<i32>} : memref<200x512xbf16, #tpu.memory_space<vmem>>, vector<8x512xbf16>,
    %c0_26 = arith.constant 0 : index
    %c109 = arith.constant 109 : index
    %32 = vector.load %arg16[%c0_26, %c109] : memref<16x768xf32, #tpu.memory_space<vmem>>, vector<8x512xf32>
    %33 = arith.truncf %32 : vector<8x512xf32> to vector<8x512xbf16>
    %c64 = arith.constant 64 : index
    %c0_27 = arith.constant 0 : index
    %34 = vector.load %arg17[%c64, %c0_27] : memref<200x512xbf16, #tpu.memory_space<vmem>>, vector<8x512xbf16>
    tpu.vector_store %arg17[%c64, %c0_27], %33 {strides = array<i32>} : memref<200x512xbf16, #tpu.memory_space<vmem>>, vector<8x512xbf16>,
    %c0_28 = arith.constant 0 : index
    %c110 = arith.constant 110 : index
    %35 = vector.load %arg16[%c0_28, %c110] : memref<16x768xf32, #tpu.memory_space<vmem>>, vector<8x512xf32>
    %36 = arith.truncf %35 : vector<8x512xf32> to vector<8x512xbf16>
    %c72 = arith.constant 72 : index
    %c0_29 = arith.constant 0 : index
    %37 = vector.load %arg17[%c72, %c0_29] : memref<200x512xbf16, #tpu.memory_space<vmem>>, vector<8x512xbf16>
    tpu.vector_store %arg17[%c72, %c0_29], %36 {strides = array<i32>} : memref<200x512xbf16, #tpu.memory_space<vmem>>, vector<8x512xbf16>,
    %c0_30 = arith.constant 0 : index
    %c126 = arith.constant 126 : index
    %38 = vector.load %arg16[%c0_30, %c126] : memref<16x768xf32, #tpu.memory_space<vmem>>, vector<8x512xf32>
    %39 = arith.truncf %38 : vector<8x512xf32> to vector<8x512xbf16>
    %c80 = arith.constant 80 : index
    %c0_31 = arith.constant 0 : index
    %40 = vector.load %arg17[%c80, %c0_31] : memref<200x512xbf16, #tpu.memory_space<vmem>>, vector<8x512xbf16>
    tpu.vector_store %arg17[%c80, %c0_31], %39 {strides = array<i32>} : memref<200x512xbf16, #tpu.memory_space<vmem>>, vector<8x512xbf16>,
    %c0_32 = arith.constant 0 : index
    %c127 = arith.constant 127 : index
    %41 = vector.load %arg16[%c0_32, %c127] : memref<16x768xf32, #tpu.memory_space<vmem>>, vector<8x512xf32>
    %42 = arith.truncf %41 : vector<8x512xf32> to vector<8x512xbf16>
    %c88_33 = arith.constant 88 : index
    %c0_34 = arith.constant 0 : index
    %43 = vector.load %arg17[%c88_33, %c0_34] : memref<200x512xbf16, #tpu.memory_space<vmem>>, vector<8x512xbf16>
    tpu.vector_store %arg17[%c88_33, %c0_34], %42 {strides = array<i32>} : memref<200x512xbf16, #tpu.memory_space<vmem>>, vector<8x512xbf16>,
    %c0_35 = arith.constant 0 : index
    %c128_36 = arith.constant 128 : index
    %44 = vector.load %arg16[%c0_35, %c128_36] : memref<16x768xf32, #tpu.memory_space<vmem>>, vector<8x512xf32>
    %45 = arith.truncf %44 : vector<8x512xf32> to vector<8x512xbf16>
    %c96 = arith.constant 96 : index
    %c0_37 = arith.constant 0 : index
    %46 = vector.load %arg17[%c96, %c0_37] : memref<200x512xbf16, #tpu.memory_space<vmem>>, vector<8x512xbf16>
    tpu.vector_store %arg17[%c96, %c0_37], %45 {strides = array<i32>} : memref<200x512xbf16, #tpu.memory_space<vmem>>, vector<8x512xbf16>,
    %c0_38 = arith.constant 0 : index
    %c129 = arith.constant 129 : index
    %47 = vector.load %arg16[%c0_38, %c129] : memref<16x768xf32, #tpu.memory_space<vmem>>, vector<8x512xf32>
    %48 = arith.truncf %47 : vector<8x512xf32> to vector<8x512xbf16>
    %c104 = arith.constant 104 : index
    %c0_39 = arith.constant 0 : index
    %49 = vector.load %arg17[%c104, %c0_39] : memref<200x512xbf16, #tpu.memory_space<vmem>>, vector<8x512xbf16>
    tpu.vector_store %arg17[%c104, %c0_39], %48 {strides = array<i32>} : memref<200x512xbf16, #tpu.memory_space<vmem>>, vector<8x512xbf16>,
    %c0_40 = arith.constant 0 : index
    %c130 = arith.constant 130 : index
    %50 = vector.load %arg16[%c0_40, %c130] : memref<16x768xf32, #tpu.memory_space<vmem>>, vector<8x512xf32>
    %51 = arith.truncf %50 : vector<8x512xf32> to vector<8x512xbf16>
    %c112 = arith.constant 112 : index
    %c0_41 = arith.constant 0 : index
    %52 = vector.load %arg17[%c112, %c0_41] : memref<200x512xbf16, #tpu.memory_space<vmem>>, vector<8x512xbf16>
    tpu.vector_store %arg17[%c112, %c0_41], %51 {strides = array<i32>} : memref<200x512xbf16, #tpu.memory_space<vmem>>, vector<8x512xbf16>,
    %c0_42 = arith.constant 0 : index
    %c146 = arith.constant 146 : index
    %53 = vector.load %arg16[%c0_42, %c146] : memref<16x768xf32, #tpu.memory_space<vmem>>, vector<8x512xf32>
    %54 = arith.truncf %53 : vector<8x512xf32> to vector<8x512xbf16>
    %c120 = arith.constant 120 : index
    %c0_43 = arith.constant 0 : index
    %55 = vector.load %arg17[%c120, %c0_43] : memref<200x512xbf16, #tpu.memory_space<vmem>>, vector<8x512xbf16>
    tpu.vector_store %arg17[%c120, %c0_43], %54 {strides = array<i32>} : memref<200x512xbf16, #tpu.memory_space<vmem>>, vector<8x512xbf16>,
    %c0_44 = arith.constant 0 : index
    %c147 = arith.constant 147 : index
    %56 = vector.load %arg16[%c0_44, %c147] : memref<16x768xf32, #tpu.memory_space<vmem>>, vector<8x512xf32>
    %57 = arith.truncf %56 : vector<8x512xf32> to vector<8x512xbf16>
    %c128_45 = arith.constant 128 : index
    %c0_46 = arith.constant 0 : index
    %58 = vector.load %arg17[%c128_45, %c0_46] : memref<200x512xbf16, #tpu.memory_space<vmem>>, vector<8x512xbf16>
    tpu.vector_store %arg17[%c128_45, %c0_46], %57 {strides = array<i32>} : memref<200x512xbf16, #tpu.memory_space<vmem>>, vector<8x512xbf16>,
    %c0_47 = arith.constant 0 : index
    %c148 = arith.constant 148 : index
    %59 = vector.load %arg16[%c0_47, %c148] : memref<16x768xf32, #tpu.memory_space<vmem>>, vector<8x512xf32>
    %60 = arith.truncf %59 : vector<8x512xf32> to vector<8x512xbf16>
    %c136 = arith.constant 136 : index
    %c0_48 = arith.constant 0 : index
    %61 = vector.load %arg17[%c136, %c0_48] : memref<200x512xbf16, #tpu.memory_space<vmem>>, vector<8x512xbf16>
    tpu.vector_store %arg17[%c136, %c0_48], %60 {strides = array<i32>} : memref<200x512xbf16, #tpu.memory_space<vmem>>, vector<8x512xbf16>,
    %c0_49 = arith.constant 0 : index
    %c149 = arith.constant 149 : index
    %62 = vector.load %arg16[%c0_49, %c149] : memref<16x768xf32, #tpu.memory_space<vmem>>, vector<8x512xf32>
    %63 = arith.truncf %62 : vector<8x512xf32> to vector<8x512xbf16>
    %c144 = arith.constant 144 : index
    %c0_50 = arith.constant 0 : index
    %64 = vector.load %arg17[%c144, %c0_50] : memref<200x512xbf16, #tpu.memory_space<vmem>>, vector<8x512xbf16>
    tpu.vector_store %arg17[%c144, %c0_50], %63 {strides = array<i32>} : memref<200x512xbf16, #tpu.memory_space<vmem>>, vector<8x512xbf16>,
    %c0_51 = arith.constant 0 : index
    %c150 = arith.constant 150 : index
    %65 = vector.load %arg16[%c0_51, %c150] : memref<16x768xf32, #tpu.memory_space<vmem>>, vector<8x512xf32>
    %66 = arith.truncf %65 : vector<8x512xf32> to vector<8x512xbf16>
    %c152 = arith.constant 152 : index
    %c0_52 = arith.constant 0 : index
    %67 = vector.load %arg17[%c152, %c0_52] : memref<200x512xbf16, #tpu.memory_space<vmem>>, vector<8x512xbf16>
    tpu.vector_store %arg17[%c152, %c0_52], %66 {strides = array<i32>} : memref<200x512xbf16, #tpu.memory_space<vmem>>, vector<8x512xbf16>,
    %c0_53 = arith.constant 0 : index
    %c166 = arith.constant 166 : index
    %68 = vector.load %arg16[%c0_53, %c166] : memref<16x768xf32, #tpu.memory_space<vmem>>, vector<8x512xf32>
    %69 = arith.truncf %68 : vector<8x512xf32> to vector<8x512xbf16>
    %c160 = arith.constant 160 : index
    %c0_54 = arith.constant 0 : index
    %70 = vector.load %arg17[%c160, %c0_54] : memref<200x512xbf16, #tpu.memory_space<vmem>>, vector<8x512xbf16>
    tpu.vector_store %arg17[%c160, %c0_54], %69 {strides = array<i32>} : memref<200x512xbf16, #tpu.memory_space<vmem>>, vector<8x512xbf16>,
    %c0_55 = arith.constant 0 : index
    %c167 = arith.constant 167 : index
    %71 = vector.load %arg16[%c0_55, %c167] : memref<16x768xf32, #tpu.memory_space<vmem>>, vector<8x512xf32>
    %72 = arith.truncf %71 : vector<8x512xf32> to vector<8x512xbf16>
    %c168 = arith.constant 168 : index
    %c0_56 = arith.constant 0 : index
    %73 = vector.load %arg17[%c168, %c0_56] : memref<200x512xbf16, #tpu.memory_space<vmem>>, vector<8x512xbf16>
    tpu.vector_store %arg17[%c168, %c0_56], %72 {strides = array<i32>} : memref<200x512xbf16, #tpu.memory_space<vmem>>, vector<8x512xbf16>,
    %c0_57 = arith.constant 0 : index
    %c168_58 = arith.constant 168 : index
    %74 = vector.load %arg16[%c0_57, %c168_58] : memref<16x768xf32, #tpu.memory_space<vmem>>, vector<8x512xf32>
    %75 = arith.truncf %74 : vector<8x512xf32> to vector<8x512xbf16>
    %c176 = arith.constant 176 : index
    %c0_59 = arith.constant 0 : index
    %76 = vector.load %arg17[%c176, %c0_59] : memref<200x512xbf16, #tpu.memory_space<vmem>>, vector<8x512xbf16>
    tpu.vector_store %arg17[%c176, %c0_59], %75 {strides = array<i32>} : memref<200x512xbf16, #tpu.memory_space<vmem>>, vector<8x512xbf16>,
    %c0_60 = arith.constant 0 : index
    %c169 = arith.constant 169 : index
    %77 = vector.load %arg16[%c0_60, %c169] : memref<16x768xf32, #tpu.memory_space<vmem>>, vector<8x512xf32>
    %78 = arith.truncf %77 : vector<8x512xf32> to vector<8x512xbf16>
    %c184 = arith.constant 184 : index
    %c0_61 = arith.constant 0 : index
    %79 = vector.load %arg17[%c184, %c0_61] : memref<200x512xbf16, #tpu.memory_space<vmem>>, vector<8x512xbf16>
    tpu.vector_store %arg17[%c184, %c0_61], %78 {strides = array<i32>} : memref<200x512xbf16, #tpu.memory_space<vmem>>, vector<8x512xbf16>,
    %c0_62 = arith.constant 0 : index
    %c170 = arith.constant 170 : index
    %80 = vector.load %arg16[%c0_62, %c170] : memref<16x768xf32, #tpu.memory_space<vmem>>, vector<8x512xf32>
    %81 = arith.truncf %80 : vector<8x512xf32> to vector<8x512xbf16>
    %c192 = arith.constant 192 : index
    %c0_63 = arith.constant 0 : index
    %82 = vector.load %arg17[%c192, %c0_63] : memref<200x512xbf16, #tpu.memory_space<vmem>>, vector<8x512xbf16>
    tpu.vector_store %arg17[%c192, %c0_63], %81 {strides = array<i32>} : memref<200x512xbf16, #tpu.memory_space<vmem>>, vector<8x512xbf16>,
    %c0_64 = arith.constant 0 : index
    %c0_65 = arith.constant 0 : index
    %83 = vector.load %arg17[%c0_64, %c0_65] : memref<200x512xbf16, #tpu.memory_space<vmem>>, vector<200x512xbf16>
    %c0_66 = arith.constant 0 : index
    %c0_67 = arith.constant 0 : index
    %84 = vector.load %arg4[%c0_66, %c0_67] : memref<16x200xbf16, #tpu.memory_space<vmem>>, vector<16x200xbf16>
    %cst_68 = arith.constant dense<0.000000e+00> : vector<16x512xf32>
    %85 = tpu.matmul %84, %83, %cst_68 {dimension_numbers = #tpu.dot_dimension_numbers<[1], [0], [0], [1], [0, 0, 1, 1], [], []>} : vector<16x200xbf16>, vector<200x512xbf16>, vector<16x512xf32> -> vector<16x512xf32>
    %c0_69 = arith.constant 0 : index
    %c0_70 = arith.constant 0 : index
    %86 = vector.load %arg5[%c0_69, %c0_70] : memref<16x1xf32, #tpu.memory_space<vmem>>, vector<16x1xf32>
    %87 = vector.broadcast %86 : vector<16x1xf32> to vector<16x512xf32>
    %88 = arith.addf %85, %87 : vector<16x512xf32>
    %cst_71 = arith.constant 0.000000e+00 : f32
    %89 = vector.broadcast %cst_71 : f32 to vector<16x512xf32>
    %90 = arith.maximumf %88, %89 : vector<16x512xf32>
    %c0_72 = arith.constant 0 : index
    %c0_73 = arith.constant 0 : index
    %91 = vector.load %arg6[%c0_72, %c0_73] : memref<16x16xbf16, #tpu.memory_space<vmem>>, vector<16x16xbf16>
    %92 = arith.truncf %90 : vector<16x512xf32> to vector<16x512xbf16>
    %cst_74 = arith.constant dense<0.000000e+00> : vector<16x512xf32>
    %93 = tpu.matmul %91, %92, %cst_74 {dimension_numbers = #tpu.dot_dimension_numbers<[1], [0], [0], [1], [0, 0, 1, 1], [], []>} : vector<16x16xbf16>, vector<16x512xbf16>, vector<16x512xf32> -> vector<16x512xf32>
    %c0_75 = arith.constant 0 : index
    %c0_76 = arith.constant 0 : index
    %94 = vector.load %arg7[%c0_75, %c0_76] : memref<16x1xf32, #tpu.memory_space<vmem>>, vector<16x1xf32>
    %95 = vector.broadcast %94 : vector<16x1xf32> to vector<16x512xf32>
    %96 = arith.addf %93, %95 : vector<16x512xf32>
    %c0_77 = arith.constant 0 : index
    %c0_78 = arith.constant 0 : index
    %97 = vector.load %arg8[%c0_77, %c0_78] : memref<16x1xf32, #tpu.memory_space<vmem>>, vector<16x1xf32>
    %c0_79 = arith.constant 0 : index
    %c8_80 = arith.constant 8 : index
    %c0_81 = arith.constant 0 : index
    %98 = vector.load %arg2[%c0_79, %c8_80, %c0_81] : memref<1x40x512xf32, #tpu.memory_space<vmem>>, vector<1x16x512xf32>
    %99 = vector.shape_cast %98 : vector<1x16x512xf32> to vector<16x512xf32>
    %100 = vector.broadcast %97 : vector<16x1xf32> to vector<16x512xf32>
    %101 = arith.mulf %100, %99 : vector<16x512xf32>
    %102 = arith.addf %96, %101 : vector<16x512xf32>
    %cst_82 = arith.constant 0.000000e+00 : f32
    %103 = vector.broadcast %cst_82 : f32 to vector<16x512xf32>
    %104 = arith.maximumf %102, %103 : vector<16x512xf32>
    %105 = vector.broadcast %0 : vector<1x512xf32> to vector<16x512xf32>
    %106 = arith.mulf %104, %105 : vector<16x512xf32>
    %c0_83 = arith.constant 0 : index
    %c8_84 = arith.constant 8 : index
    %c0_85 = arith.constant 0 : index
    %107 = vector.load %arg15[%c0_83, %c8_84, %c0_85] : memref<1x40x512xf32, #tpu.memory_space<vmem>>, vector<1x16x512xf32>
    %108 = vector.shape_cast %107 : vector<1x16x512xf32> to vector<16x512xf32>
    %109 = vector.shape_cast %106 : vector<16x512xf32> to vector<1x16x512xf32>
    tpu.vector_store %arg15[%c0_83, %c8_84, %c0_85], %109 {strides = array<i32>} : memref<1x40x512xf32, #tpu.memory_space<vmem>>, vector<1x16x512xf32>,
    %c0_86 = arith.constant 0 : index
    %c128_87 = arith.constant 128 : index
    %110 = vector.load %arg16[%c0_86, %c128_87] : memref<16x768xf32, #tpu.memory_space<vmem>>, vector<16x512xf32>
    tpu.vector_store %arg16[%c0_86, %c128_87], %106 {strides = array<i32>} : memref<16x768xf32, #tpu.memory_space<vmem>>, vector<16x512xf32>,
    %c0_88 = arith.constant 0 : index
    %c107_89 = arith.constant 107 : index
    %111 = vector.load %arg16[%c0_88, %c107_89] : memref<16x768xf32, #tpu.memory_space<vmem>>, vector<16x512xf32>
    %112 = arith.truncf %111 : vector<16x512xf32> to vector<16x512xbf16>
    %c0_90 = arith.constant 0 : index
    %c0_91 = arith.constant 0 : index
    %113 = vector.load %arg17[%c0_90, %c0_91] : memref<200x512xbf16, #tpu.memory_space<vmem>>, vector<16x512xbf16>
    tpu.vector_store %arg17[%c0_90, %c0_91], %112 {strides = array<i32>} : memref<200x512xbf16, #tpu.memory_space<vmem>>, vector<16x512xbf16>,
    %c0_92 = arith.constant 0 : index
    %c108_93 = arith.constant 108 : index
    %114 = vector.load %arg16[%c0_92, %c108_93] : memref<16x768xf32, #tpu.memory_space<vmem>>, vector<16x512xf32>
    %115 = arith.truncf %114 : vector<16x512xf32> to vector<16x512xbf16>
    %c16_94 = arith.constant 16 : index
    %c0_95 = arith.constant 0 : index
    %116 = vector.load %arg17[%c16_94, %c0_95] : memref<200x512xbf16, #tpu.memory_space<vmem>>, vector<16x512xbf16>
    tpu.vector_store %arg17[%c16_94, %c0_95], %115 {strides = array<i32>} : memref<200x512xbf16, #tpu.memory_space<vmem>>, vector<16x512xbf16>,
    %c0_96 = arith.constant 0 : index
    %c109_97 = arith.constant 109 : index
    %117 = vector.load %arg16[%c0_96, %c109_97] : memref<16x768xf32, #tpu.memory_space<vmem>>, vector<16x512xf32>
    %118 = arith.truncf %117 : vector<16x512xf32> to vector<16x512xbf16>
    %c32_98 = arith.constant 32 : index
    %c0_99 = arith.constant 0 : index
    %119 = vector.load %arg17[%c32_98, %c0_99] : memref<200x512xbf16, #tpu.memory_space<vmem>>, vector<16x512xbf16>
    tpu.vector_store %arg17[%c32_98, %c0_99], %118 {strides = array<i32>} : memref<200x512xbf16, #tpu.memory_space<vmem>>, vector<16x512xbf16>,
    %c0_100 = arith.constant 0 : index
    %c127_101 = arith.constant 127 : index
    %120 = vector.load %arg16[%c0_100, %c127_101] : memref<16x768xf32, #tpu.memory_space<vmem>>, vector<16x512xf32>
    %121 = arith.truncf %120 : vector<16x512xf32> to vector<16x512xbf16>
    %c48_102 = arith.constant 48 : index
    %c0_103 = arith.constant 0 : index
    %122 = vector.load %arg17[%c48_102, %c0_103] : memref<200x512xbf16, #tpu.memory_space<vmem>>, vector<16x512xbf16>
    tpu.vector_store %arg17[%c48_102, %c0_103], %121 {strides = array<i32>} : memref<200x512xbf16, #tpu.memory_space<vmem>>, vector<16x512xbf16>,
    %c0_104 = arith.constant 0 : index
    %c128_105 = arith.constant 128 : index
    %123 = vector.load %arg16[%c0_104, %c128_105] : memref<16x768xf32, #tpu.memory_space<vmem>>, vector<16x512xf32>
    %124 = arith.truncf %123 : vector<16x512xf32> to vector<16x512xbf16>
    %c64_106 = arith.constant 64 : index
    %c0_107 = arith.constant 0 : index
    %125 = vector.load %arg17[%c64_106, %c0_107] : memref<200x512xbf16, #tpu.memory_space<vmem>>, vector<16x512xbf16>
    tpu.vector_store %arg17[%c64_106, %c0_107], %124 {strides = array<i32>} : memref<200x512xbf16, #tpu.memory_space<vmem>>, vector<16x512xbf16>,
    %c0_108 = arith.constant 0 : index
    %c129_109 = arith.constant 129 : index
    %126 = vector.load %arg16[%c0_108, %c129_109] : memref<16x768xf32, #tpu.memory_space<vmem>>, vector<16x512xf32>
    %127 = arith.truncf %126 : vector<16x512xf32> to vector<16x512xbf16>
    %c80_110 = arith.constant 80 : index
    %c0_111 = arith.constant 0 : index
    %128 = vector.load %arg17[%c80_110, %c0_111] : memref<200x512xbf16, #tpu.memory_space<vmem>>, vector<16x512xbf16>
    tpu.vector_store %arg17[%c80_110, %c0_111], %127 {strides = array<i32>} : memref<200x512xbf16, #tpu.memory_space<vmem>>, vector<16x512xbf16>,
    %c0_112 = arith.constant 0 : index
    %c147_113 = arith.constant 147 : index
    %129 = vector.load %arg16[%c0_112, %c147_113] : memref<16x768xf32, #tpu.memory_space<vmem>>, vector<16x512xf32>
    %130 = arith.truncf %129 : vector<16x512xf32> to vector<16x512xbf16>
    %c96_114 = arith.constant 96 : index
    %c0_115 = arith.constant 0 : index
    %131 = vector.load %arg17[%c96_114, %c0_115] : memref<200x512xbf16, #tpu.memory_space<vmem>>, vector<16x512xbf16>
    tpu.vector_store %arg17[%c96_114, %c0_115], %130 {strides = array<i32>} : memref<200x512xbf16, #tpu.memory_space<vmem>>, vector<16x512xbf16>,
    %c0_116 = arith.constant 0 : index
    %c148_117 = arith.constant 148 : index
    %132 = vector.load %arg16[%c0_116, %c148_117] : memref<16x768xf32, #tpu.memory_space<vmem>>, vector<16x512xf32>
    %133 = arith.truncf %132 : vector<16x512xf32> to vector<16x512xbf16>
    %c112_118 = arith.constant 112 : index
    %c0_119 = arith.constant 0 : index
    %134 = vector.load %arg17[%c112_118, %c0_119] : memref<200x512xbf16, #tpu.memory_space<vmem>>, vector<16x512xbf16>
    tpu.vector_store %arg17[%c112_118, %c0_119], %133 {strides = array<i32>} : memref<200x512xbf16, #tpu.memory_space<vmem>>, vector<16x512xbf16>,
    %c0_120 = arith.constant 0 : index
    %c149_121 = arith.constant 149 : index
    %135 = vector.load %arg16[%c0_120, %c149_121] : memref<16x768xf32, #tpu.memory_space<vmem>>, vector<16x512xf32>
    %136 = arith.truncf %135 : vector<16x512xf32> to vector<16x512xbf16>
    %c128_122 = arith.constant 128 : index
    %c0_123 = arith.constant 0 : index
    %137 = vector.load %arg17[%c128_122, %c0_123] : memref<200x512xbf16, #tpu.memory_space<vmem>>, vector<16x512xbf16>
    tpu.vector_store %arg17[%c128_122, %c0_123], %136 {strides = array<i32>} : memref<200x512xbf16, #tpu.memory_space<vmem>>, vector<16x512xbf16>,
    %c0_124 = arith.constant 0 : index
    %c0_125 = arith.constant 0 : index
    %138 = vector.load %arg17[%c0_124, %c0_125] : memref<200x512xbf16, #tpu.memory_space<vmem>>, vector<144x512xbf16>
    %c0_126 = arith.constant 0 : index
    %c0_127 = arith.constant 0 : index
    %139 = vector.load %arg9[%c0_126, %c0_127] : memref<16x144xbf16, #tpu.memory_space<vmem>>, vector<16x144xbf16>
    %cst_128 = arith.constant dense<0.000000e+00> : vector<16x512xf32>
    %140 = tpu.matmul %139, %138, %cst_128 {dimension_numbers = #tpu.dot_dimension_numbers<[1], [0], [0], [1], [0, 0, 1, 1], [], []>} : vector<16x144xbf16>, vector<144x512xbf16>, vector<16x512xf32> -> vector<16x512xf32>
    %c0_129 = arith.constant 0 : index
    %c0_130 = arith.constant 0 : index
    %141 = vector.load %arg10[%c0_129, %c0_130] : memref<16x1xf32, #tpu.memory_space<vmem>>, vector<16x1xf32>
    %142 = vector.broadcast %141 : vector<16x1xf32> to vector<16x512xf32>
    %143 = arith.addf %140, %142 : vector<16x512xf32>
    %cst_131 = arith.constant 0.000000e+00 : f32
    %144 = vector.broadcast %cst_131 : f32 to vector<16x512xf32>
    %145 = arith.maximumf %143, %144 : vector<16x512xf32>
    %c0_132 = arith.constant 0 : index
    %c0_133 = arith.constant 0 : index
    %146 = vector.load %arg11[%c0_132, %c0_133] : memref<16x16xbf16, #tpu.memory_space<vmem>>, vector<16x16xbf16>
    %147 = arith.truncf %145 : vector<16x512xf32> to vector<16x512xbf16>
    %cst_134 = arith.constant dense<0.000000e+00> : vector<16x512xf32>
    %148 = tpu.matmul %146, %147, %cst_134 {dimension_numbers = #tpu.dot_dimension_numbers<[1], [0], [0], [1], [0, 0, 1, 1], [], []>} : vector<16x16xbf16>, vector<16x512xbf16>, vector<16x512xf32> -> vector<16x512xf32>
    %c0_135 = arith.constant 0 : index
    %c0_136 = arith.constant 0 : index
    %149 = vector.load %arg12[%c0_135, %c0_136] : memref<16x1xf32, #tpu.memory_space<vmem>>, vector<16x1xf32>
    %150 = vector.broadcast %149 : vector<16x1xf32> to vector<16x512xf32>
    %151 = arith.addf %148, %150 : vector<16x512xf32>
    %c0_137 = arith.constant 0 : index
    %c0_138 = arith.constant 0 : index
    %152 = vector.load %arg13[%c0_137, %c0_138] : memref<16x1xf32, #tpu.memory_space<vmem>>, vector<16x1xf32>
    %c0_139 = arith.constant 0 : index
    %c24_140 = arith.constant 24 : index
    %c0_141 = arith.constant 0 : index
    %153 = vector.load %arg2[%c0_139, %c24_140, %c0_141] : memref<1x40x512xf32, #tpu.memory_space<vmem>>, vector<1x16x512xf32>
    %154 = vector.shape_cast %153 : vector<1x16x512xf32> to vector<16x512xf32>
    %155 = vector.broadcast %152 : vector<16x1xf32> to vector<16x512xf32>
    %156 = arith.mulf %155, %154 : vector<16x512xf32>
    %157 = arith.addf %151, %156 : vector<16x512xf32>
    %cst_142 = arith.constant 0.000000e+00 : f32
    %158 = vector.broadcast %cst_142 : f32 to vector<16x512xf32>
    %159 = arith.maximumf %157, %158 : vector<16x512xf32>
    %160 = vector.broadcast %0 : vector<1x512xf32> to vector<16x512xf32>
    %161 = arith.mulf %159, %160 : vector<16x512xf32>
    %c0_143 = arith.constant 0 : index
    %c24_144 = arith.constant 24 : index
    %c0_145 = arith.constant 0 : index
    %162 = vector.load %arg15[%c0_143, %c24_144, %c0_145] : memref<1x40x512xf32, #tpu.memory_space<vmem>>, vector<1x16x512xf32>
    %163 = vector.shape_cast %162 : vector<1x16x512xf32> to vector<16x512xf32>
    %164 = vector.shape_cast %161 : vector<16x512xf32> to vector<1x16x512xf32>
    tpu.vector_store %arg15[%c0_143, %c24_144, %c0_145], %164 {strides = array<i32>} : memref<1x40x512xf32, #tpu.memory_space<vmem>>, vector<1x16x512xf32>,
    %c0_146 = arith.constant 0 : index
    %c128_147 = arith.constant 128 : index
    %165 = vector.load %arg16[%c0_146, %c128_147] : memref<16x768xf32, #tpu.memory_space<vmem>>, vector<16x512xf32>
    tpu.vector_store %arg16[%c0_146, %c128_147], %161 {strides = array<i32>} : memref<16x768xf32, #tpu.memory_space<vmem>>, vector<16x512xf32>,
    %c0_148 = arith.constant 0 : index
    %c107_149 = arith.constant 107 : index
    %166 = vector.load %arg16[%c0_148, %c107_149] : memref<16x768xf32, #tpu.memory_space<vmem>>, vector<16x512xf32>
    %167 = arith.truncf %166 : vector<16x512xf32> to vector<16x512xbf16>
    %c0_150 = arith.constant 0 : index
    %c0_151 = arith.constant 0 : index
    %168 = vector.load %arg17[%c0_150, %c0_151] : memref<200x512xbf16, #tpu.memory_space<vmem>>, vector<16x512xbf16>
    tpu.vector_store %arg17[%c0_150, %c0_151], %167 {strides = array<i32>} : memref<200x512xbf16, #tpu.memory_space<vmem>>, vector<16x512xbf16>,
    %c0_152 = arith.constant 0 : index
    %c108_153 = arith.constant 108 : index
    %169 = vector.load %arg16[%c0_152, %c108_153] : memref<16x768xf32, #tpu.memory_space<vmem>>, vector<16x512xf32>
    %170 = arith.truncf %169 : vector<16x512xf32> to vector<16x512xbf16>
    %c16_154 = arith.constant 16 : index
    %c0_155 = arith.constant 0 : index
    %171 = vector.load %arg17[%c16_154, %c0_155] : memref<200x512xbf16, #tpu.memory_space<vmem>>, vector<16x512xbf16>
    tpu.vector_store %arg17[%c16_154, %c0_155], %170 {strides = array<i32>} : memref<200x512xbf16, #tpu.memory_space<vmem>>, vector<16x512xbf16>,
    %c0_156 = arith.constant 0 : index
    %c109_157 = arith.constant 109 : index
    %172 = vector.load %arg16[%c0_156, %c109_157] : memref<16x768xf32, #tpu.memory_space<vmem>>, vector<16x512xf32>
    %173 = arith.truncf %172 : vector<16x512xf32> to vector<16x512xbf16>
    %c32_158 = arith.constant 32 : index
    %c0_159 = arith.constant 0 : index
    %174 = vector.load %arg17[%c32_158, %c0_159] : memref<200x512xbf16, #tpu.memory_space<vmem>>, vector<16x512xbf16>
    tpu.vector_store %arg17[%c32_158, %c0_159], %173 {strides = array<i32>} : memref<200x512xbf16, #tpu.memory_space<vmem>>, vector<16x512xbf16>,
    %c0_160 = arith.constant 0 : index
    %c127_161 = arith.constant 127 : index
    %175 = vector.load %arg16[%c0_160, %c127_161] : memref<16x768xf32, #tpu.memory_space<vmem>>, vector<16x512xf32>
    %176 = arith.truncf %175 : vector<16x512xf32> to vector<16x512xbf16>
    %c48_162 = arith.constant 48 : index
    %c0_163 = arith.constant 0 : index
    %177 = vector.load %arg17[%c48_162, %c0_163] : memref<200x512xbf16, #tpu.memory_space<vmem>>, vector<16x512xbf16>
    tpu.vector_store %arg17[%c48_162, %c0_163], %176 {strides = array<i32>} : memref<200x512xbf16, #tpu.memory_space<vmem>>, vector<16x512xbf16>,
    %c0_164 = arith.constant 0 : index
    %c128_165 = arith.constant 128 : index
    %178 = vector.load %arg16[%c0_164, %c128_165] : memref<16x768xf32, #tpu.memory_space<vmem>>, vector<16x512xf32>
    %179 = arith.truncf %178 : vector<16x512xf32> to vector<16x512xbf16>
    %c64_166 = arith.constant 64 : index
    %c0_167 = arith.constant 0 : index
    %180 = vector.load %arg17[%c64_166, %c0_167] : memref<200x512xbf16, #tpu.memory_space<vmem>>, vector<16x512xbf16>
    tpu.vector_store %arg17[%c64_166, %c0_167], %179 {strides = array<i32>} : memref<200x512xbf16, #tpu.memory_space<vmem>>, vector<16x512xbf16>,
    %c0_168 = arith.constant 0 : index
    %c129_169 = arith.constant 129 : index
    %181 = vector.load %arg16[%c0_168, %c129_169] : memref<16x768xf32, #tpu.memory_space<vmem>>, vector<16x512xf32>
    %182 = arith.truncf %181 : vector<16x512xf32> to vector<16x512xbf16>
    %c80_170 = arith.constant 80 : index
    %c0_171 = arith.constant 0 : index
    %183 = vector.load %arg17[%c80_170, %c0_171] : memref<200x512xbf16, #tpu.memory_space<vmem>>, vector<16x512xbf16>
    tpu.vector_store %arg17[%c80_170, %c0_171], %182 {strides = array<i32>} : memref<200x512xbf16, #tpu.memory_space<vmem>>, vector<16x512xbf16>,
    %c0_172 = arith.constant 0 : index
    %c147_173 = arith.constant 147 : index
    %184 = vector.load %arg16[%c0_172, %c147_173] : memref<16x768xf32, #tpu.memory_space<vmem>>, vector<16x512xf32>
    %185 = arith.truncf %184 : vector<16x512xf32> to vector<16x512xbf16>
    %c96_174 = arith.constant 96 : index
    %c0_175 = arith.constant 0 : index
    %186 = vector.load %arg17[%c96_174, %c0_175] : memref<200x512xbf16, #tpu.memory_space<vmem>>, vector<16x512xbf16>
    tpu.vector_store %arg17[%c96_174, %c0_175], %185 {strides = array<i32>} : memref<200x512xbf16, #tpu.memory_space<vmem>>, vector<16x512xbf16>,
    %c0_176 = arith.constant 0 : index
    %c148_177 = arith.constant 148 : index
    %187 = vector.load %arg16[%c0_176, %c148_177] : memref<16x768xf32, #tpu.memory_space<vmem>>, vector<16x512xf32>
    %188 = arith.truncf %187 : vector<16x512xf32> to vector<16x512xbf16>
    %c112_178 = arith.constant 112 : index
    %c0_179 = arith.constant 0 : index
    %189 = vector.load %arg17[%c112_178, %c0_179] : memref<200x512xbf16, #tpu.memory_space<vmem>>, vector<16x512xbf16>
    tpu.vector_store %arg17[%c112_178, %c0_179], %188 {strides = array<i32>} : memref<200x512xbf16, #tpu.memory_space<vmem>>, vector<16x512xbf16>,
    %c0_180 = arith.constant 0 : index
    %c149_181 = arith.constant 149 : index
    %190 = vector.load %arg16[%c0_180, %c149_181] : memref<16x768xf32, #tpu.memory_space<vmem>>, vector<16x512xf32>
    %191 = arith.truncf %190 : vector<16x512xf32> to vector<16x512xbf16>
    %c128_182 = arith.constant 128 : index
    %c0_183 = arith.constant 0 : index
    %192 = vector.load %arg17[%c128_182, %c0_183] : memref<200x512xbf16, #tpu.memory_space<vmem>>, vector<16x512xbf16>
    tpu.vector_store %arg17[%c128_182, %c0_183], %191 {strides = array<i32>} : memref<200x512xbf16, #tpu.memory_space<vmem>>, vector<16x512xbf16>,
    %c0_184 = arith.constant 0 : index
    %c0_185 = arith.constant 0 : index
    %193 = vector.load %arg17[%c0_184, %c0_185] : memref<200x512xbf16, #tpu.memory_space<vmem>>, vector<144x512xbf16>
    %c0_186 = arith.constant 0 : index
    %c0_187 = arith.constant 0 : index
    %194 = vector.load %arg14[%c0_186, %c0_187] : memref<8x144xbf16, #tpu.memory_space<vmem>>, vector<8x144xbf16>
    %cst_188 = arith.constant dense<0.000000e+00> : vector<8x512xf32>
    %195 = tpu.matmul %194, %193, %cst_188 {dimension_numbers = #tpu.dot_dimension_numbers<[1], [0], [0], [1], [0, 0, 1, 1], [], []>} : vector<8x144xbf16>, vector<144x512xbf16>, vector<8x512xf32> -> vector<8x512xf32>
    %196 = vector.broadcast %0 : vector<1x512xf32> to vector<8x512xf32>
    %197 = arith.mulf %195, %196 : vector<8x512xf32>
    %c0_189 = arith.constant 0 : index
    %c0_190 = arith.constant 0 : index
    %c0_191 = arith.constant 0 : index
    %198 = vector.load %arg15[%c0_189, %c0_190, %c0_191] : memref<1x40x512xf32, #tpu.memory_space<vmem>>, vector<1x8x512xf32>
    %199 = vector.shape_cast %198 : vector<1x8x512xf32> to vector<8x512xf32>
    %200 = vector.shape_cast %197 : vector<8x512xf32> to vector<1x8x512xf32>
    tpu.vector_store %arg15[%c0_189, %c0_190, %c0_191], %200 {strides = array<i32>} : memref<1x40x512xf32, #tpu.memory_space<vmem>>, vector<1x8x512xf32>,
    return
  }
  func.func @transform_0(%arg0: i32) -> (i32, i32, i32) {
    %c0_i32 = arith.constant 0 : i32
    %c0_i32_0 = arith.constant 0 : i32
    %c0_i32_1 = arith.constant 0 : i32
    return %arg0, %c0_i32, %c0_i32_0 : i32, i32, i32
  }
  func.func @transform_1(%arg0: i32) -> (i32, i32, i32) {
    %c0_i32 = arith.constant 0 : i32
    %c0_i32_0 = arith.constant 0 : i32
    %c0_i32_1 = arith.constant 0 : i32
    return %arg0, %c0_i32, %c0_i32_0 : i32, i32, i32
  }
  func.func @transform_2(%arg0: i32) -> (i32, i32) {
    %c0_i32 = arith.constant 0 : i32
    %c0_i32_0 = arith.constant 0 : i32
    %c0_i32_1 = arith.constant 0 : i32
    return %c0_i32, %c0_i32_0 : i32, i32
  }
  func.func @transform_3(%arg0: i32) -> (i32, i32) {
    %c0_i32 = arith.constant 0 : i32
    %c0_i32_0 = arith.constant 0 : i32
    %c0_i32_1 = arith.constant 0 : i32
    return %c0_i32, %c0_i32_0 : i32, i32
  }
  func.func @transform_4(%arg0: i32) -> (i32, i32) {
    %c0_i32 = arith.constant 0 : i32
    %c0_i32_0 = arith.constant 0 : i32
    %c0_i32_1 = arith.constant 0 : i32
    return %c0_i32, %c0_i32_0 : i32, i32
  }
  func.func @transform_5(%arg0: i32) -> (i32, i32) {
    %c0_i32 = arith.constant 0 : i32
    %c0_i32_0 = arith.constant 0 : i32
    %c0_i32_1 = arith.constant 0 : i32
    return %c0_i32, %c0_i32_0 : i32, i32
  }
  func.func @transform_6(%arg0: i32) -> (i32, i32) {
    %c0_i32 = arith.constant 0 : i32
    %c0_i32_0 = arith.constant 0 : i32
    %c0_i32_1 = arith.constant 0 : i32
    return %c0_i32, %c0_i32_0 : i32, i32
  }
  func.func @transform_7(%arg0: i32) -> (i32, i32) {
    %c0_i32 = arith.constant 0 : i32
    %c0_i32_0 = arith.constant 0 : i32
    %c0_i32_1 = arith.constant 0 : i32
    return %c0_i32, %c0_i32_0 : i32, i32
  }
  func.func @transform_8(%arg0: i32) -> (i32, i32) {
    %c0_i32 = arith.constant 0 : i32
    %c0_i32_0 = arith.constant 0 : i32
    %c0_i32_1 = arith.constant 0 : i32
    return %c0_i32, %c0_i32_0 : i32, i32
  }
  func.func @transform_9(%arg0: i32) -> (i32, i32) {
    %c0_i32 = arith.constant 0 : i32
    %c0_i32_0 = arith.constant 0 : i32
    %c0_i32_1 = arith.constant 0 : i32
    return %c0_i32, %c0_i32_0 : i32, i32
  }
  func.func @transform_10(%arg0: i32) -> (i32, i32) {
    %c0_i32 = arith.constant 0 : i32
    %c0_i32_0 = arith.constant 0 : i32
    %c0_i32_1 = arith.constant 0 : i32
    return %c0_i32, %c0_i32_0 : i32, i32
  }
  func.func @transform_11(%arg0: i32) -> (i32, i32) {
    %c0_i32 = arith.constant 0 : i32
    %c0_i32_0 = arith.constant 0 : i32
    %c0_i32_1 = arith.constant 0 : i32
    return %c0_i32, %c0_i32_0 : i32, i32
  }
  func.func @transform_12(%arg0: i32) -> (i32, i32) {
    %c0_i32 = arith.constant 0 : i32
    %c0_i32_0 = arith.constant 0 : i32
    %c0_i32_1 = arith.constant 0 : i32
    return %c0_i32, %c0_i32_0 : i32, i32
  }
  func.func @transform_13(%arg0: i32) -> (i32, i32) {
    %c0_i32 = arith.constant 0 : i32
    %c0_i32_0 = arith.constant 0 : i32
    %c0_i32_1 = arith.constant 0 : i32
    return %c0_i32, %c0_i32_0 : i32, i32
  }
  func.func @transform_14(%arg0: i32) -> (i32, i32, i32) {
    %c0_i32 = arith.constant 0 : i32
    %c0_i32_0 = arith.constant 0 : i32
    %c0_i32_1 = arith.constant 0 : i32
    return %arg0, %c0_i32, %c0_i32_0 : i32, i32, i32
  }
}

module attributes {stable_mosaic.version = 11 : i64} {
  func.func @_seg_head_kernel(%arg0: i32, %arg1: memref<1x2x512xf32, #tpu.memory_space<vmem>>, %arg2: memref<4x9xf32, #tpu.memory_space<vmem>>, %arg3: memref<1x512xf32, #tpu.memory_space<vmem>>, %arg4: memref<1x4x512xf32, #tpu.memory_space<vmem>>, %arg5: memref<1x768xf32, #tpu.memory_space<vmem>>) attributes {dimension_semantics = [#tpu.dimension_semantics<parallel>], iteration_bounds = array<i64: 2>, scalar_prefetch = 0 : i64, scratch_operands = 1 : i64, tpu.core_type = #tpu.core_type<tc>, window_params = [{transform_indices = @transform_0, window_bounds = array<i64: 1, 2, 512>}, {pipeline_mode = #tpu.pipeline_mode<synchronous>, transform_indices = @transform_1, window_bounds = array<i64: 4, 9>}, {pipeline_mode = #tpu.pipeline_mode<synchronous>, transform_indices = @transform_2, window_bounds = array<i64: 1, 512>}, {transform_indices = @transform_3, window_bounds = array<i64: 1, 4, 512>}]} {
    %c0 = arith.constant 0 : index
    %c0_0 = arith.constant 0 : index
    %0 = vector.load %arg3[%c0, %c0_0] : memref<1x512xf32, #tpu.memory_space<vmem>>, vector<1x512xf32>
    %c0_1 = arith.constant 0 : index
    %c0_2 = arith.constant 0 : index
    %c0_3 = arith.constant 0 : index
    %1 = vector.load %arg1[%c0_1, %c0_2, %c0_3] : memref<1x2x512xf32, #tpu.memory_space<vmem>>, vector<1x1x512xf32>
    %2 = vector.shape_cast %1 : vector<1x1x512xf32> to vector<1x512xf32>
    %c0_4 = arith.constant 0 : index
    %c1 = arith.constant 1 : index
    %c0_5 = arith.constant 0 : index
    %3 = vector.load %arg1[%c0_4, %c1, %c0_5] : memref<1x2x512xf32, #tpu.memory_space<vmem>>, vector<1x1x512xf32>
    %4 = vector.shape_cast %3 : vector<1x1x512xf32> to vector<1x512xf32>
    %5 = arith.mulf %2, %2 : vector<1x512xf32>
    %6 = arith.mulf %4, %4 : vector<1x512xf32>
    %7 = arith.addf %5, %6 : vector<1x512xf32>
    %8 = math.sqrt %7 : vector<1x512xf32>
    %9 = arith.mulf %8, %0 : vector<1x512xf32>
    %10 = vector.shape_cast %9 : vector<1x512xf32> to vector<1x1x512xf32>
    %cst = arith.constant dense<0.000000e+00> : vector<1xf32>
    %11 = vector.multi_reduction <add>, %10, %cst [1, 2] : vector<1x1x512xf32> to vector<1xf32>
    %12 = vector.shape_cast %11 : vector<1xf32> to vector<1x1x1xf32>
    %13 = vector.extract %12[0, 0, 0] : f32 from vector<1x1x1xf32>
    %cst_6 = arith.constant 3.906250e-03 : f32
    %14 = arith.mulf %13, %cst_6 : f32
    %15 = vector.broadcast %14 : f32 to vector<1x512xf32>
    %16 = arith.subf %9, %15 : vector<1x512xf32>
    %17 = arith.mulf %16, %0 : vector<1x512xf32>
    %18 = arith.mulf %17, %17 : vector<1x512xf32>
    %19 = vector.shape_cast %18 : vector<1x512xf32> to vector<1x1x512xf32>
    %cst_7 = arith.constant dense<0.000000e+00> : vector<1xf32>
    %20 = vector.multi_reduction <add>, %19, %cst_7 [1, 2] : vector<1x1x512xf32> to vector<1xf32>
    %21 = vector.shape_cast %20 : vector<1xf32> to vector<1x1x1xf32>
    %22 = vector.extract %21[0, 0, 0] : f32 from vector<1x1x1xf32>
    %cst_8 = arith.constant 3.906250e-03 : f32
    %23 = arith.mulf %22, %cst_8 : f32
    %cst_9 = arith.constant 9.99999974E-6 : f32
    %24 = arith.addf %23, %cst_9 : f32
    %25 = math.rsqrt %24 : f32
    %26 = vector.broadcast %25 : f32 to vector<1x512xf32>
    %27 = arith.mulf %17, %26 : vector<1x512xf32>
    %cst_10 = arith.constant 0.000000e+00 : f32
    %28 = vector.broadcast %cst_10 : f32 to vector<1x128xf32>
    %c0_11 = arith.constant 0 : index
    %c0_12 = arith.constant 0 : index
    %29 = vector.load %arg5[%c0_11, %c0_12] : memref<1x768xf32, #tpu.memory_space<vmem>>, vector<1x128xf32>
    tpu.vector_store %arg5[%c0_11, %c0_12], %28 {strides = array<i32>} : memref<1x768xf32, #tpu.memory_space<vmem>>, vector<1x128xf32>,
    %cst_13 = arith.constant 0.000000e+00 : f32
    %30 = vector.broadcast %cst_13 : f32 to vector<1x128xf32>
    %c0_14 = arith.constant 0 : index
    %c640 = arith.constant 640 : index
    %31 = vector.load %arg5[%c0_14, %c640] : memref<1x768xf32, #tpu.memory_space<vmem>>, vector<1x128xf32>
    tpu.vector_store %arg5[%c0_14, %c640], %30 {strides = array<i32>} : memref<1x768xf32, #tpu.memory_space<vmem>>, vector<1x128xf32>,
    %c0_15 = arith.constant 0 : index
    %c128 = arith.constant 128 : index
    %32 = vector.load %arg5[%c0_15, %c128] : memref<1x768xf32, #tpu.memory_space<vmem>>, vector<1x512xf32>
    tpu.vector_store %arg5[%c0_15, %c128], %27 {strides = array<i32>} : memref<1x768xf32, #tpu.memory_space<vmem>>, vector<1x512xf32>,
    %cst_16 = arith.constant 0.000000e+00 : f32
    %33 = vector.broadcast %cst_16 : f32 to vector<4x512xf32>
    %c0_17 = arith.constant 0 : index
    %c0_18 = arith.constant 0 : index
    %34 = vector.load %arg2[%c0_17, %c0_18] : memref<4x9xf32, #tpu.memory_space<vmem>>, vector<4x1xf32>
    %c0_19 = arith.constant 0 : index
    %c107 = arith.constant 107 : index
    %35 = vector.load %arg5[%c0_19, %c107] : memref<1x768xf32, #tpu.memory_space<vmem>>, vector<1x512xf32>
    %36 = vector.broadcast %34 : vector<4x1xf32> to vector<4x512xf32>
    %37 = vector.broadcast %35 : vector<1x512xf32> to vector<4x512xf32>
    %38 = arith.mulf %36, %37 : vector<4x512xf32>
    %39 = arith.addf %33, %38 : vector<4x512xf32>
    %c0_20 = arith.constant 0 : index
    %c1_21 = arith.constant 1 : index
    %40 = vector.load %arg2[%c0_20, %c1_21] : memref<4x9xf32, #tpu.memory_space<vmem>>, vector<4x1xf32>
    %c0_22 = arith.constant 0 : index
    %c108 = arith.constant 108 : index
    %41 = vector.load %arg5[%c0_22, %c108] : memref<1x768xf32, #tpu.memory_space<vmem>>, vector<1x512xf32>
    %42 = vector.broadcast %40 : vector<4x1xf32> to vector<4x512xf32>
    %43 = vector.broadcast %41 : vector<1x512xf32> to vector<4x512xf32>
    %44 = arith.mulf %42, %43 : vector<4x512xf32>
    %45 = arith.addf %39, %44 : vector<4x512xf32>
    %c0_23 = arith.constant 0 : index
    %c2 = arith.constant 2 : index
    %46 = vector.load %arg2[%c0_23, %c2] : memref<4x9xf32, #tpu.memory_space<vmem>>, vector<4x1xf32>
    %c0_24 = arith.constant 0 : index
    %c109 = arith.constant 109 : index
    %47 = vector.load %arg5[%c0_24, %c109] : memref<1x768xf32, #tpu.memory_space<vmem>>, vector<1x512xf32>
    %48 = vector.broadcast %46 : vector<4x1xf32> to vector<4x512xf32>
    %49 = vector.broadcast %47 : vector<1x512xf32> to vector<4x512xf32>
    %50 = arith.mulf %48, %49 : vector<4x512xf32>
    %51 = arith.addf %45, %50 : vector<4x512xf32>
    %c0_25 = arith.constant 0 : index
    %c3 = arith.constant 3 : index
    %52 = vector.load %arg2[%c0_25, %c3] : memref<4x9xf32, #tpu.memory_space<vmem>>, vector<4x1xf32>
    %c0_26 = arith.constant 0 : index
    %c127 = arith.constant 127 : index
    %53 = vector.load %arg5[%c0_26, %c127] : memref<1x768xf32, #tpu.memory_space<vmem>>, vector<1x512xf32>
    %54 = vector.broadcast %52 : vector<4x1xf32> to vector<4x512xf32>
    %55 = vector.broadcast %53 : vector<1x512xf32> to vector<4x512xf32>
    %56 = arith.mulf %54, %55 : vector<4x512xf32>
    %57 = arith.addf %51, %56 : vector<4x512xf32>
    %c0_27 = arith.constant 0 : index
    %c4 = arith.constant 4 : index
    %58 = vector.load %arg2[%c0_27, %c4] : memref<4x9xf32, #tpu.memory_space<vmem>>, vector<4x1xf32>
    %c0_28 = arith.constant 0 : index
    %c128_29 = arith.constant 128 : index
    %59 = vector.load %arg5[%c0_28, %c128_29] : memref<1x768xf32, #tpu.memory_space<vmem>>, vector<1x512xf32>
    %60 = vector.broadcast %58 : vector<4x1xf32> to vector<4x512xf32>
    %61 = vector.broadcast %59 : vector<1x512xf32> to vector<4x512xf32>
    %62 = arith.mulf %60, %61 : vector<4x512xf32>
    %63 = arith.addf %57, %62 : vector<4x512xf32>
    %c0_30 = arith.constant 0 : index
    %c5 = arith.constant 5 : index
    %64 = vector.load %arg2[%c0_30, %c5] : memref<4x9xf32, #tpu.memory_space<vmem>>, vector<4x1xf32>
    %c0_31 = arith.constant 0 : index
    %c129 = arith.constant 129 : index
    %65 = vector.load %arg5[%c0_31, %c129] : memref<1x768xf32, #tpu.memory_space<vmem>>, vector<1x512xf32>
    %66 = vector.broadcast %64 : vector<4x1xf32> to vector<4x512xf32>
    %67 = vector.broadcast %65 : vector<1x512xf32> to vector<4x512xf32>
    %68 = arith.mulf %66, %67 : vector<4x512xf32>
    %69 = arith.addf %63, %68 : vector<4x512xf32>
    %c0_32 = arith.constant 0 : index
    %c6 = arith.constant 6 : index
    %70 = vector.load %arg2[%c0_32, %c6] : memref<4x9xf32, #tpu.memory_space<vmem>>, vector<4x1xf32>
    %c0_33 = arith.constant 0 : index
    %c147 = arith.constant 147 : index
    %71 = vector.load %arg5[%c0_33, %c147] : memref<1x768xf32, #tpu.memory_space<vmem>>, vector<1x512xf32>
    %72 = vector.broadcast %70 : vector<4x1xf32> to vector<4x512xf32>
    %73 = vector.broadcast %71 : vector<1x512xf32> to vector<4x512xf32>
    %74 = arith.mulf %72, %73 : vector<4x512xf32>
    %75 = arith.addf %69, %74 : vector<4x512xf32>
    %c0_34 = arith.constant 0 : index
    %c7 = arith.constant 7 : index
    %76 = vector.load %arg2[%c0_34, %c7] : memref<4x9xf32, #tpu.memory_space<vmem>>, vector<4x1xf32>
    %c0_35 = arith.constant 0 : index
    %c148 = arith.constant 148 : index
    %77 = vector.load %arg5[%c0_35, %c148] : memref<1x768xf32, #tpu.memory_space<vmem>>, vector<1x512xf32>
    %78 = vector.broadcast %76 : vector<4x1xf32> to vector<4x512xf32>
    %79 = vector.broadcast %77 : vector<1x512xf32> to vector<4x512xf32>
    %80 = arith.mulf %78, %79 : vector<4x512xf32>
    %81 = arith.addf %75, %80 : vector<4x512xf32>
    %c0_36 = arith.constant 0 : index
    %c8 = arith.constant 8 : index
    %82 = vector.load %arg2[%c0_36, %c8] : memref<4x9xf32, #tpu.memory_space<vmem>>, vector<4x1xf32>
    %c0_37 = arith.constant 0 : index
    %c149 = arith.constant 149 : index
    %83 = vector.load %arg5[%c0_37, %c149] : memref<1x768xf32, #tpu.memory_space<vmem>>, vector<1x512xf32>
    %84 = vector.broadcast %82 : vector<4x1xf32> to vector<4x512xf32>
    %85 = vector.broadcast %83 : vector<1x512xf32> to vector<4x512xf32>
    %86 = arith.mulf %84, %85 : vector<4x512xf32>
    %87 = arith.addf %81, %86 : vector<4x512xf32>
    %88 = math.absf %87 : vector<4x512xf32>
    %89 = vector.broadcast %0 : vector<1x512xf32> to vector<4x512xf32>
    %90 = arith.mulf %88, %89 : vector<4x512xf32>
    %c0_38 = arith.constant 0 : index
    %c0_39 = arith.constant 0 : index
    %c0_40 = arith.constant 0 : index
    %91 = vector.load %arg4[%c0_38, %c0_39, %c0_40] : memref<1x4x512xf32, #tpu.memory_space<vmem>>, vector<1x4x512xf32>
    %92 = vector.shape_cast %91 : vector<1x4x512xf32> to vector<4x512xf32>
    %93 = vector.shape_cast %90 : vector<4x512xf32> to vector<1x4x512xf32>
    tpu.vector_store %arg4[%c0_38, %c0_39, %c0_40], %93 {strides = array<i32>} : memref<1x4x512xf32, #tpu.memory_space<vmem>>, vector<1x4x512xf32>,
    return
  }
  func.func @transform_0(%arg0: i32) -> (i32, i32, i32) {
    %c0_i32 = arith.constant 0 : i32
    %c0_i32_0 = arith.constant 0 : i32
    %c0_i32_1 = arith.constant 0 : i32
    return %arg0, %c0_i32, %c0_i32_0 : i32, i32, i32
  }
  func.func @transform_1(%arg0: i32) -> (i32, i32) {
    %c0_i32 = arith.constant 0 : i32
    %c0_i32_0 = arith.constant 0 : i32
    %c0_i32_1 = arith.constant 0 : i32
    return %c0_i32, %c0_i32_0 : i32, i32
  }
  func.func @transform_2(%arg0: i32) -> (i32, i32) {
    %c0_i32 = arith.constant 0 : i32
    %c0_i32_0 = arith.constant 0 : i32
    %c0_i32_1 = arith.constant 0 : i32
    return %c0_i32, %c0_i32_0 : i32, i32
  }
  func.func @transform_3(%arg0: i32) -> (i32, i32, i32) {
    %c0_i32 = arith.constant 0 : i32
    %c0_i32_0 = arith.constant 0 : i32
    %c0_i32_1 = arith.constant 0 : i32
    return %arg0, %c0_i32, %c0_i32_0 : i32, i32, i32
  }
}

</mosaic_0001>

<bundles_post_ra>
// kernel: custom-call.1
= control target key start
LH: loop header
LB: loop body
LE: loop exit
PB: predicated region body
PF: predicated region fallthrough
CT: control target
= control target key end

     0   :  { %s92_s0 = inlined_call_operand.vmem [shape: f32[8,2,16,16], index: 0, kind: input, shape index: {}]   ;;  %s93_s1 = inlined_call_operand.vmem [shape: f32[8,2,16,16], index: 1, kind: input, shape index: {}]   ;;  %s94_s2 = inlined_call_operand.hbm [shape: c64[8,2,16,16], index: 2, kind: output, shape index: {}]  }
   0x1   :  { %s3_s11 = scalar_lea.hbm %s94_s2, 4096 }
   0x2   :  { %4 = vsyncpa [#allocation0], 0  ;;  %s5_s14 = sshll.u32 %s92_s0, 4  ;;  %s6_s14 = int_to_ptr.vmem [resolvable:$true] %s5_s14 }
   0x3   :  { %s18_s15 = scalar_lea.vmem %s6_s14, 4096  ;;  %p23_p1 = scmp.lt.s32.totalorder %s6_s14, %s6_s14 }
   0x4   :  { %p19_p0 = scmp.ne.s32.totalorder %s6_s14, %s18_s15  ;;  %p24_p2 = scmp.lt.s32.totalorder %s18_s15, %s18_s15 }
   0x6   :  { %p25_p3 = por %p24_p2, %p23_p1 }
   0x8   :  { %p26_p4 = pnand %p25_p3, %p19_p0 }
   0xa   :  { %29 = shalt.err (!%p26_p4)  }
   0xb   :  { %8 = dma.vmem_to_hbm [thread:$0]  %s6_s14, 4096, %s94_s2, [#allocation0] }
   0xc   :  { %61 = dma.done.wait [#allocation0], 4096  }
   0xd   :  { %62 = vsyncadd [#allocation0], 4294963200 }
   0xe   :  { %10 = vsyncpa [#allocation0], 1 }
   0xf   :  { %11 = vsyncpa [#allocation1], 0  ;;  %s12_s0 = sshll.u32 %s93_s1, 4  ;;  %s13_s0 = int_to_ptr.vmem [resolvable:$true] %s12_s0 }
  0x10   :  { %s38_s20 = scalar_lea.vmem %s13_s0, 4096  ;;  %p43_p6 = scmp.lt.s32.totalorder %s13_s0, %s13_s0 }
  0x11   :  { %p39_p5 = scmp.ne.s32.totalorder %s13_s0, %s38_s20  ;;  %p44_p7 = scmp.lt.s32.totalorder %s38_s20, %s38_s20 }
  0x13   :  { %p45_p8 = por %p44_p7, %p43_p6 }
  0x15   :  { %p46_p9 = pnand %p45_p8, %p39_p5 }
  0x17   :  { %49 = shalt.err (!%p46_p9)  }
  0x18   :  { %15 = dma.vmem_to_hbm [thread:$0]  %s13_s0, 4096, %s3_s11, [#allocation1] }
  0x19   :  { %63 = dma.done.wait [#allocation1], 4096  }
  0x1a   :  { %64 = vsyncadd [#allocation1], 4294963200 }
  0x1b   :  { %17 = vsyncpa [#allocation1], 1 }

// kernel: jrscirim_forward.1
= control target key start
LH: loop header
LB: loop body
LE: loop exit
PB: predicated region body
PF: predicated region fallthrough
CT: control target
= control target key end

     0   :  { %s913_s12 = smov 0   ;;  %s1151_s0 = inlined_call_operand.vmem [shape: f32[2,2,512], index: 0, kind: input, shape index: {}]   ;;  %s1152_s1 = inlined_call_operand.vmem [shape: f32[4,9], index: 1, kind: input, shape index: {}]   ;;  %s1153_s2 = inlined_call_operand.vmem [shape: f32[1,512], index: 2, kind: input, shape index: {}]   ;;  %s1154_s3 = inlined_call_operand.vmem [shape: f32[2,4,512], index: 3, kind: output, shape index: {}]  }
   0x1 LB: > { %s805_s13 = sadd.s32 4294967295, %s872_s12   ;;  %p809_p0 = scmp.ge.s32.totalorder %s872_s12, 1  ;;  %s872_s12 = sphi %s913_s12, %s13_s12  }
   0x2   : > { %p137_p1 = scmp.lt.s32.totalorder %s872_s12, 3 }
   0x4   : > { %p138_p2 = pnand %p809_p0, %p137_p1 }
   0x5   : > { %p161_p3 = scmp.lt.s32.totalorder (!%p138_p2), %s805_s13, 1  ;;  %s884_s24 = smov (!%p138_p2), 107  }
   0x6   : > { %141 = sbr.rel (%p138_p2) target bundleno = 879 (0x36f), region = 32  ;;  %s885_s29 = smov (!%p138_p2), 126  }
   0x7   : > { %s886_s30 = smov (!%p138_p2), 127   ;;  %s887_s4 = smov (!%p138_p2), 108  }
   0x8   : > { %s888_s5 = smov (!%p138_p2), 106   ;;  %s889_s6 = smov (!%p138_p2), 88  }
   0x9   : > { %s890_s7 = smov (!%p138_p2), 87   ;;  %s891_s8 = smov (!%p138_p2), 86  }
   0xa   : > { %s892_s9 = smov (!%p138_p2), 21  }
   0xb   : > { %v187_v0 = vlaneseq  ;;  %s1156_s13 = smov (!%p161_p3, %s805_s13), 1  ;;  %v874_v1 = vmov 0.0   ;;  %v934_v11 = vld [vmem:[%s1153_s2] sm:$0xf]  ;;  %vm207_vm3 = vcmask 1040384   ;;  %v875_v31 = vmov 1  }
   0xc   : > { %s817_s14 = sshll.u32 %s1156_s13, 3  ;;  %v282_v30 = vld [vmem:[%s1152_s1] sm:$0xf]  ;;  %852 = vset.pattern.permute.xlu1 %v875_v31  ;;  %v876_v32 = vmov 2   ;;  %v877_v33 = vmov 4   ;;  %v878_v34 = vmov 5  }
   0xd   : > { %vm275_vm0 = vcmp.lt.s32.totalorder %v187_v0, 128  ;;  %s165_s17 = scalar_lea.vmem %s1151_s0, %s817_s14  ;;  %v929_v7 = vshrl.u32 %v187_v0, 7  ;;  %326 = vperm.xlu1 %852, %v282_v30   ;;  %v879_v57 = vmov 6   ;;  %v880_v58 = vmov 7   ;;  %s818_s10 = sshll.u32 %s1156_s13, 4 }
   0xe   : > { %277 = vst.msk [vmem:[#allocation2] sm:$0x1] %vm275_vm0, %v874_v1  ;;  %278 = vst.msk [vmem:[#allocation2 + $0x5] sm:$0x1] %vm275_vm0, %v874_v1  ;;  %v881_v59 = vmov 3   ;;  %v882_v60 = vmov 8   ;;  %s170_s15 = scalar_lea.vmem %s1154_s3, %s818_s10 }
   0xf   : > { %v172_v2 = vld [vmem:[%s165_s17] ss:$2 sm:$0xf]  ;;  %v814_v3 = vld [vmem:[%s165_s17 + $0x1] ss:$2 sm:$0xf]  ;;  %854 = vset.pattern.permute.xlu0 %v881_v59 }
  0x10   : > { %v175_v4 = vmul.f32 %v172_v2, %v172_v2  ;;  %v176_v5 = vmul.f32 %v814_v3, %v814_v3  ;;  %v937_v12 = vsub.s32 0, %v929_v7  ;;  %v940_v14 = vsub.s32 1, %v929_v7 }
  0x11   : > { %v943_v15 = vsub.s32 2, %v929_v7  ;;  %v946_v16 = vsub.s32 3, %v929_v7  ;;  %853 = vset.pattern.permute.xlu1 %v876_v32  ;;  %v883_v61 = vmov 0   ;;  %vm279_vm4 = vcmp.lt.s32.totalorder %v187_v0, 512 }
  0x12   : > { %v177_v6 = vadd.f32 %v176_v5, %v175_v4  ;;  %365 = vperm.xlu1 %853, %v282_v30   ;;  %v694_v4 = vrot.slane %v934_v11, %v940_v14  ;;  %v690_v5 = vrot.slane %v934_v11, %v937_v12  ;;  %vm349_vm5 = vcmask 1039360  }
  0x13   : > { %vm388_vm6 = vcmask 1031168   ;;  %vm427_vm7 = vcmask 883712   ;;  %vm484_vm8 = vcmask 875520   ;;  %vm549_vm9 = vcmask 867328  }
  0x14   : > { %862 = vrsqrt.f32 %v177_v6  ;;  %vm180_vm1 = vcmp.eq.f32.partialorder %v177_v6, inf  ;;  %v183_v9 = vand.u32 2147483648, %v177_v6  ;;  %vm182_vm2 = vcmp.eq.f32.partialorder %v177_v6, 0.0 }
  0x15   : > { %vm588_vm10 = vcmask 719872   ;;  %vm627_vm11 = vcmask 711680   ;;  %vm666_vm12 = vcmask 703488   ;;  %vm740_vm13 = vcmask 1043456  }
  0x16   : > { %855 = vset.pattern.permute.xlu1 %v877_v33  ;;  %vm742_vm14 = vcmask 171008  }
  0x17   : > { %444 = vperm.xlu1 %855, %v282_v30  }
  0x1b   : > { %856 = vset.pattern.permute.xlu1 %v878_v34 }
  0x1c   : > { %500 = vperm.xlu1 %856, %v282_v30  }
  0x20   : > { %857 = vset.pattern.permute.xlu1 %v879_v57 }
  0x21   : > { %v863_v8 = vpop.eup %862  ;;  %565 = vperm.xlu1 %857, %v282_v30  }
  0x22   : > { %v179_v10 = vmul.f32 %v863_v8, %v177_v6 }
  0x24   : > { %v181_v13 = vsel %vm180_vm1, %v177_v6, %v179_v10 }
  0x25   : > { %v184_v17 = vsel %vm182_vm2, %v183_v9, %v181_v13  ;;  %858 = vset.pattern.permute.xlu1 %v880_v58 }
  0x26   : > { %v185_v18 = vmul.f32 %v184_v17, %v934_v11  ;;  %604 = vperm.xlu1 %858, %v282_v30  }
  0x28   : > { %v190_v19 = vrot.slane %v185_v18, %v937_v12  ;;  %v194_v20 = vrot.slane %v185_v18, %v940_v14  ;;  %v198_v21 = vrot.slane %v185_v18, %v943_v15  ;;  %v202_v22 = vrot.slane %v185_v18, %v946_v16 }
  0x2a   : > { %v208_v23 = vsel %vm207_vm3, %v190_v19, 0.0  ;;  %v209_v24 = vsel %vm207_vm3, %v194_v20, 0.0  ;;  %v211_v25 = vsel %vm207_vm3, %v198_v21, 0.0  ;;  %v213_v27 = vsel %vm207_vm3, %v202_v22, 0.0  ;;  %859 = vset.pattern.permute.xlu1 %v882_v60 }
  0x2b   : > { %v210_v26 = vadd.f32 %v209_v24, %v208_v23  ;;  %643 = vperm.xlu1 %859, %v282_v30  }
  0x2d   : > { %v212_v28 = vadd.f32 %v211_v25, %v210_v26  ;;  %v308_v26 = vsub.s32 4, %v929_v7 }
  0x2f   : > { %v214_v29 = vadd.f32 %v213_v27, %v212_v28  ;;  %860 = vset.pattern.permute.xlu1 %v883_v61 }
  0x30   : > { %286 = vperm.xlu1 %860, %v282_v30  }
  0x31   : > { %215 = vadd.xlane.f32.xlu0 %v214_v29 }
  0x34   : > { %705 = vrot.lane.b32.xlu1 %v694_v4, %s884_s24 }
  0x88   : > { %v327_v13 = vpop.permute.xlu1 %326 }
  0x8d   : > { %v366_v17 = vpop.permute.xlu1 %365 }
  0xba   : > { %v216_v35 = vpop.xlane.xlu0 %215 }
  0xbb   : > { %v217_v36 = vrot.slane %v216_v35, 4 }
  0xbd   : > { %v218_v37 = vadd.f32 %v217_v36, %v216_v35 }
  0xbf   : > { %v219_v38 = vrot.slane %v218_v37, 2 }
  0xc1   : > { %v220_v39 = vadd.f32 %v219_v38, %v218_v37 }
  0xc3   : > { %v221_v40 = vrot.slane %v220_v39, 1 }
  0xc5   : > { %v222_v41 = vadd.f32 %v221_v40, %v220_v39 }
  0xc7   : > { %819 = vpush %v222_v41 }
  0xf8   : > { %s820_s22 = spop %819 }
  0xf9   : > { %s224_s23 = smul.f32 0.00390625, %s820_s22 }
  0xfb   : > { %v225_v42 = vstv %s224_s23 }
  0xfc   : > { %v226_v43 = vsub.f32 %v185_v18, %v225_v42  ;;  %v975_v18 = vpop.permute.xlu1 %444 }
  0xfe   : > { %v227_v44 = vmul.f32 %v226_v43, %v934_v11 }
 0x100   : > { %v228_v45 = vmul.f32 %v227_v44, %v227_v44  ;;  %v977_v19 = vpop.permute.xlu1 %500 }
 0x102   : > { %v233_v46 = vrot.slane %v228_v45, %v937_v12  ;;  %v237_v47 = vrot.slane %v228_v45, %v940_v14  ;;  %v241_v48 = vrot.slane %v228_v45, %v943_v15  ;;  %v245_v49 = vrot.slane %v228_v45, %v946_v16 }
 0x104   : > { %v250_v50 = vsel %vm207_vm3, %v233_v46, 0.0  ;;  %v251_v51 = vsel %vm207_vm3, %v237_v47, 0.0  ;;  %v253_v53 = vsel %vm207_vm3, %v241_v48, 0.0  ;;  %v255_v55 = vsel %vm207_vm3, %v245_v49, 0.0  ;;  %v980_v22 = vpop.permute.xlu1 %565 }
 0x105   : > { %v252_v52 = vadd.f32 %v251_v51, %v250_v50 }
 0x107   : > { %v254_v54 = vadd.f32 %v253_v53, %v252_v52 }
 0x108   : > { %v982_v23 = vpop.permute.xlu1 %604 }
 0x109   : > { %v256_v56 = vadd.f32 %v255_v55, %v254_v54 }
 0x10b   : > { %257 = vadd.xlane.f32.xlu0 %v256_v56 }
 0x10c   : > { %v989_v0 = vpop.permute.xlu1 %643 }
 0x110   : > { %v287_v37 = vpop.permute.xlu1 %286 }
 0x121   : > { %404 = vperm.xlu0 %854, %v282_v30  }
 0x125   : > { %861 = vset.pattern.permute.xlu0 %v882_v60 }
 0x126   : > { %703 = vrot.lane.b32.xlu0 %v690_v5, %s884_s24 }
 0x194   : > { %v258_v62 = vpop.xlane.xlu0 %257 }
 0x195   : > { %v259_v63 = vrot.slane %v258_v62, 4 }
 0x197   : > { %v260_v1 = vadd.f32 %v259_v63, %v258_v62 }
 0x199   : > { %v261_v2 = vrot.slane %v260_v1, 2 }
 0x19b   : > { %v262_v3 = vadd.f32 %v261_v2, %v260_v1 }
 0x19c   : > { %v405_v34 = vpop.permute.xlu0 %404 }
 0x19d   : > { %v263_v6 = vrot.slane %v262_v3, 1 }
 0x19f   : > { %v264_v8 = vadd.f32 %v263_v6, %v262_v3 }
 0x1a1   : > { %821 = vpush %v264_v8 }
 0x1d2   : > { %s822_s25 = spop %821 }
 0x1d3   : > { %s266_s26 = smul.f32 0.00390625, %s822_s25 }
 0x1d5   : > { %s267_s27 = sadd.f32 1e-05, %s266_s26 }
 0x1d7   : > { %v268_v9 = vstv %s267_s27 }
 0x1d8   : > { %864 = vrsqrt.f32 %v268_v9 }
 0x1e5   : > { %v865_v10 = vpop.eup %864 }
 0x1e6   : > { %823 = vpush %v865_v10 }
 0x217   : > { %s824_s28 = spop %823 }
 0x218   : > { %v271_v20 = vstv %s824_s28 }
 0x219   : > { %v272_v21 = vmul.f32 %v271_v20, %v227_v44 }
 0x21b   : > { %281 = vst.msk [vmem:[#allocation2 + $0x1] sm:$0xf] %vm279_vm4, %v272_v21 }
 0x222   : > { %v283_v24 = vld [vmem:[#allocation2] sm:$0x1f] }
 0x223   : > { %v293_v25 = vrot.slane %v283_v24, %v937_v12  ;;  %v301_v29 = vrot.slane %v283_v24, %v943_v15  ;;  %v297_v30 = vrot.slane %v283_v24, %v940_v14  ;;  %v309_v33 = vrot.slane %v283_v24, %v308_v26  ;;  %v442_v44 = vld [vmem:[#allocation2 + $0x1] sm:$0xf] }
 0x224   : > { %v305_v7 = vrot.slane %v283_v24, %v946_v16  ;;  %v451_v48 = vrot.slane %v442_v44, %v937_v12  ;;  %v459_v51 = vrot.slane %v442_v44, %v943_v15  ;;  %v498_v52 = vld [vmem:[#allocation2 + $0x1] sm:$0x1f]  ;;  %v455_v1 = vrot.slane %v442_v44, %v940_v14 }
 0x225   : > { %v368_v27 = vmul.f32 %v366_v17, %v293_v25  ;;  %v329_v28 = vmul.f32 %v327_v13, %v293_v25  ;;  %v370_v31 = vmul.f32 %v366_v17, %v301_v29  ;;  %v330_v32 = vmul.f32 %v327_v13, %v297_v30 }
 0x226   : > { %v372_v35 = vmul.f32 %v366_v17, %v309_v33  ;;  %v331_v36 = vmul.f32 %v327_v13, %v301_v29  ;;  %v332_v38 = vmul.f32 %v327_v13, %v305_v7  ;;  %v408_v39 = vmul.f32 %v405_v34, %v297_v30 }
 0x227   : > { %378 = vrot.lane.b32.xlu0 %v368_v27, %s885_s29  ;;  %339 = vrot.lane.b32.xlu1 %v329_v28, %s886_s30  ;;  %v994_v40 = vmul.f32 %v293_v25, %v287_v37  ;;  %v996_v41 = vmul.f32 %v297_v30, %v287_v37  ;;  %v998_v42 = vmul.f32 %v301_v29, %v287_v37 }
 0x228   : > { %v1000_v43 = vmul.f32 %v305_v7, %v287_v37  ;;  %v1002_v45 = vmul.f32 %v309_v33, %v287_v37  ;;  %v333_v46 = vmul.f32 %v327_v13, %v309_v33  ;;  %v410_v47 = vmul.f32 %v405_v34, %v305_v7 }
 0x229   : > { %v369_v49 = vmul.f32 %v366_v17, %v297_v30  ;;  %v468_v50 = vmul.f32 %v451_v48, %v975_v18  ;;  %v371_v53 = vmul.f32 %v366_v17, %v305_v7  ;;  %v470_v54 = vmul.f32 %v459_v51, %v975_v18  ;;  %v1058_v30 = vpop.permute.xlu1 %705 }
 0x22a   : > { %v507_v55 = vrot.slane %v498_v52, %v937_v12  ;;  %v407_v57 = vmul.f32 %v405_v34, %v293_v25  ;;  %v515_v58 = vrot.slane %v498_v52, %v943_v15  ;;  %v409_v60 = vmul.f32 %v405_v34, %v301_v29 }
 0x22b   : > { %382 = vrot.lane.b32.xlu0 %v370_v31, %s885_s29  ;;  %341 = vrot.lane.b32.xlu1 %v330_v32, %s886_s30  ;;  %v523_v61 = vrot.slane %v498_v52, %v308_v26  ;;  %v411_v62 = vmul.f32 %v405_v34, %v309_v33  ;;  %v511_v63 = vrot.slane %v498_v52, %v940_v14  ;;  %v1060_v31 = vpop.permute.xlu0 %703 }
 0x22c   : > { %v529_v56 = vmul.f32 %v507_v55, %v977_v19  ;;  %v531_v59 = vmul.f32 %v515_v58, %v977_v19  ;;  %v469_v3 = vmul.f32 %v455_v1, %v975_v18  ;;  %v519_v4 = vrot.slane %v498_v52, %v946_v16 }
 0x22d   : > { %v533_v12 = vmul.f32 %v523_v61, %v977_v19  ;;  %v569_v2 = vmul.f32 %v980_v22, %v511_v63  ;;  %v463_v5 = vrot.slane %v442_v44, %v946_v16  ;;  %v607_v8 = vmul.f32 %v982_v23, %v507_v55 }
 0x22e   : > { %v571_v6 = vmul.f32 %v980_v22, %v519_v4  ;;  %v530_v9 = vmul.f32 %v511_v63, %v977_v19  ;;  %v609_v10 = vmul.f32 %v982_v23, %v515_v58  ;;  %v532_v13 = vmul.f32 %v519_v4, %v977_v19 }
 0x22f   : > { %386 = vrot.lane.b32.xlu0 %v372_v35, %s885_s29  ;;  %343 = vrot.lane.b32.xlu1 %v331_v36, %s886_s30  ;;  %v471_v14 = vmul.f32 %v463_v5, %v975_v18  ;;  %v611_v17 = vmul.f32 %v982_v23, %v523_v61  ;;  %v568_v18 = vmul.f32 %v980_v22, %v507_v55 }
 0x230   : > { %v647_v20 = vmul.f32 %v989_v0, %v511_v63  ;;  %v570_v21 = vmul.f32 %v980_v22, %v515_v58  ;;  %v649_v24 = vmul.f32 %v989_v0, %v519_v4  ;;  %v572_v19 = vmul.f32 %v980_v22, %v523_v61 }
 0x231   : > { %v698_v25 = vrot.slane %v934_v11, %v943_v15  ;;  %v608_v26 = vmul.f32 %v982_v23, %v511_v63  ;;  %v610_v27 = vmul.f32 %v982_v23, %v519_v4  ;;  %v646_v28 = vmul.f32 %v989_v0, %v507_v55 }
 0x232   : > { %v648_v29 = vmul.f32 %v989_v0, %v515_v58  ;;  %v650_v22 = vmul.f32 %v989_v0, %v523_v61  ;;  %v702_v15 = vrot.slane %v934_v11, %v946_v16 }
 0x233   : > { %345 = vrot.lane.b32.xlu1 %v332_v38, %s886_s30  ;;  %419 = vrot.lane.b32.xlu0 %v408_v39, %s887_s4 }
 0x237   : > { %347 = vrot.lane.b32.xlu1 %v333_v46, %s886_s30  ;;  %423 = vrot.lane.b32.xlu0 %v410_v47, %s887_s4 }
 0x23b   : > { %380 = vrot.lane.b32.xlu1 %v369_v49, %s885_s29  ;;  %476 = vrot.lane.b32.xlu0 %v468_v50, %s884_s24 }
 0x23f   : > { %384 = vrot.lane.b32.xlu1 %v371_v53, %s885_s29  ;;  %480 = vrot.lane.b32.xlu0 %v470_v54, %s884_s24 }
 0x243   : > { %539 = vrot.lane.b32.xlu0 %v529_v56, %s888_s5  ;;  %417 = vrot.lane.b32.xlu1 %v407_v57, %s887_s4 }
 0x247   : > { %543 = vrot.lane.b32.xlu0 %v531_v59, %s888_s5  ;;  %421 = vrot.lane.b32.xlu1 %v409_v60, %s887_s4 }
 0x24b   : > { %547 = vrot.lane.b32.xlu0 %v533_v12, %s888_s5  ;;  %425 = vrot.lane.b32.xlu1 %v411_v62, %s887_s4 }
 0x24f   : > { %580 = vrot.lane.b32.xlu0 %v569_v2, %s889_s6  ;;  %478 = vrot.lane.b32.xlu1 %v469_v3, %s884_s24 }
 0x253   : > { %584 = vrot.lane.b32.xlu0 %v571_v6, %s889_s6  ;;  %482 = vrot.lane.b32.xlu1 %v471_v14, %s884_s24 }
 0x257   : > { %617 = vrot.lane.b32.xlu0 %v607_v8, %s890_s7  ;;  %541 = vrot.lane.b32.xlu1 %v530_v9, %s888_s5 }
 0x25b   : > { %621 = vrot.lane.b32.xlu0 %v609_v10, %s890_s7  ;;  %545 = vrot.lane.b32.xlu1 %v532_v13, %s888_s5 }
 0x25f   : > { %625 = vrot.lane.b32.xlu0 %v611_v17, %s890_s7  ;;  %578 = vrot.lane.b32.xlu1 %v568_v18, %s889_s6 }
 0x263   : > { %658 = vrot.lane.b32.xlu0 %v647_v20, %s891_s8  ;;  %582 = vrot.lane.b32.xlu1 %v570_v21, %s889_s6 }
 0x267   : > { %662 = vrot.lane.b32.xlu0 %v649_v24, %s891_s8  ;;  %586 = vrot.lane.b32.xlu1 %v572_v19, %s889_s6 }
 0x26b   : > { %707 = vrot.lane.b32.xlu0 %v698_v25, %s884_s24  ;;  %619 = vrot.lane.b32.xlu1 %v608_v26, %s890_s7 }
 0x26f   : > { %623 = vrot.lane.b32.xlu1 %v610_v27, %s890_s7 }
 0x273   : > { %656 = vrot.lane.b32.xlu1 %v646_v28, %s891_s8 }
 0x277   : > { %660 = vrot.lane.b32.xlu1 %v648_v29, %s891_s8 }
 0x27b   : > { %664 = vrot.lane.b32.xlu1 %v650_v22, %s891_s8 }
 0x27f   : > { %709 = vrot.lane.b32.xlu1 %v702_v15, %s884_s24 }
 0x299   : > { %v340_v23 = vpop.permute.xlu1 %339  ;;  %v379_v32 = vpop.permute.xlu0 %378 }
 0x29d   : > { %v342_v33 = vpop.permute.xlu1 %341  ;;  %v383_v7 = vpop.permute.xlu0 %382 }
 0x29e   : > { %v350_v58 = vsel %vm349_vm5, %v340_v23, %v342_v33 }
 0x29f   : > { %v359_v12 = vadd.f32 %v350_v58, %v994_v40 }
 0x2a1   : > { %v344_v34 = vpop.permute.xlu1 %343  ;;  %v1062_v35 = vpop.permute.xlu0 %386 }
 0x2a2   : > { %v351_v2 = vsel %vm349_vm5, %v342_v33, %v344_v34 }
 0x2a3   : > { %v360_v6 = vadd.f32 %v351_v2, %v996_v41 }
 0x2a5   : > { %v346_v36 = vpop.permute.xlu1 %345  ;;  %v420_v37 = vpop.permute.xlu0 %419 }
 0x2a6   : > { %v352_v8 = vsel %vm349_vm5, %v344_v34, %v346_v36 }
 0x2a7   : > { %v361_v20 = vadd.f32 %v352_v8, %v998_v42 }
 0x2a9   : > { %v348_v0 = vpop.permute.xlu1 %347  ;;  %v424_v38 = vpop.permute.xlu0 %423 }
 0x2aa   : > { %v353_v13 = vsel %vm349_vm5, %v346_v36, %v348_v0  ;;  %v363_v21 = vadd.f32 %v348_v0, %v1002_v45 }
 0x2ab   : > { %v362_v29 = vadd.f32 %v353_v13, %v1000_v43 }
 0x2ad   : > { %v381_v39 = vpop.permute.xlu1 %380  ;;  %v477_v44 = vpop.permute.xlu0 %476 }
 0x2ae   : > { %v389_v59 = vsel %vm388_vm6, %v379_v32, %v381_v39  ;;  %v390_v5 = vsel %vm388_vm6, %v381_v39, %v383_v7 }
 0x2af   : > { %v398_v63 = vadd.f32 %v389_v59, %v359_v12  ;;  %v399_v40 = vadd.f32 %v390_v5, %v360_v6 }
 0x2b1   : > { %v385_v11 = vpop.permute.xlu1 %384  ;;  %v1064_v16 = vpop.permute.xlu0 %480 }
 0x2b2   : > { %v391_v17 = vsel %vm388_vm6, %v383_v7, %v385_v11  ;;  %v392_v25 = vsel %vm388_vm6, %v385_v11, %v1062_v35 }
 0x2b3   : > { %v400_v22 = vadd.f32 %v391_v17, %v361_v20  ;;  %v401_v33 = vadd.f32 %v392_v25, %v362_v29 }
 0x2b5   : > { %v418_v46 = vpop.permute.xlu1 %417  ;;  %v540_v47 = vpop.permute.xlu0 %539 }
 0x2b6   : > { %v428_v62 = vsel %vm427_vm7, %v418_v46, %v420_v37 }
 0x2b7   : > { %v437_v3 = vadd.f32 %v428_v62, %v398_v63 }
 0x2b9   : > { %v422_v48 = vpop.permute.xlu1 %421  ;;  %v1066_v49 = vpop.permute.xlu0 %543  ;;  %v493_v9 = vadd.f32 %v477_v44, %v437_v3 }
 0x2ba   : > { %v429_v10 = vsel %vm427_vm7, %v420_v37, %v422_v48  ;;  %v430_v27 = vsel %vm427_vm7, %v422_v48, %v424_v38  ;;  %v402_v37 = vadd.f32 %v1062_v35, %v363_v21 }
 0x2bb   : > { %v438_v41 = vadd.f32 %v429_v10, %v399_v40  ;;  %v559_v26 = vadd.f32 %v540_v47, %v493_v9  ;;  %v439_v7 = vadd.f32 %v430_v27, %v400_v22 }
 0x2bd   : > { %v1068_v50 = vpop.permute.xlu1 %425  ;;  %v1070_v51 = vpop.permute.xlu0 %547 }
 0x2be   : > { %v431_v42 = vsel %vm427_vm7, %v424_v38, %v1068_v50 }
 0x2bf   : > { %v440_v39 = vadd.f32 %v431_v42, %v401_v33 }
 0x2c1   : > { %v479_v52 = vpop.permute.xlu1 %478  ;;  %v1072_v53 = vpop.permute.xlu0 %580 }
 0x2c2   : > { %v485_v18 = vsel %vm484_vm8, %v477_v44, %v479_v52  ;;  %v486_v45 = vsel %vm484_vm8, %v479_v52, %v1064_v16 }
 0x2c3   : > { %v494_v15 = vadd.f32 %v485_v18, %v438_v41  ;;  %v495_v44 = vadd.f32 %v486_v45, %v439_v7 }
 0x2c5   : > { %v1074_v54 = vpop.permute.xlu1 %482  ;;  %v1076_v56 = vpop.permute.xlu0 %584 }
 0x2c6   : > { %v487_v43 = vsel %vm484_vm8, %v1064_v16, %v1074_v54 }
 0x2c7   : > { %v496_v52 = vadd.f32 %v487_v43, %v440_v39 }
 0x2c9   : > { %v542_v55 = vpop.permute.xlu1 %541  ;;  %v618_v60 = vpop.permute.xlu0 %617 }
 0x2ca   : > { %v550_v28 = vsel %vm549_vm9, %v540_v47, %v542_v55  ;;  %v551_v0 = vsel %vm549_vm9, %v542_v55, %v1066_v49  ;;  %v441_v47 = vadd.f32 %v1068_v50, %v402_v37 }
 0x2cb   : > { %v560_v34 = vadd.f32 %v550_v28, %v494_v15  ;;  %v561_v58 = vadd.f32 %v551_v0, %v495_v44 }
 0x2cd   : > { %v1078_v57 = vpop.permute.xlu1 %545  ;;  %v1085_v4 = vpop.permute.xlu0 %621 }
 0x2ce   : > { %v552_v35 = vsel %vm549_vm9, %v1066_v49, %v1078_v57  ;;  %v553_v55 = vsel %vm549_vm9, %v1078_v57, %v1070_v51  ;;  %v711_v51 = vsel %vm484_vm8, %v1060_v31, %v1058_v30 }
 0x2d1   : > { %v579_v61 = vpop.permute.xlu1 %578  ;;  %v626_v24 = vpop.permute.xlu0 %625 }
 0x2d2   : > { %v589_v23 = vsel %vm588_vm10, %v579_v61, %v1072_v53  ;;  %v598_v32 = vadd.f32 %v579_v61, %v559_v26 }
 0x2d3   : > { %v599_v11 = vadd.f32 %v589_v23, %v560_v34 }
 0x2d4   : > { %v637_v16 = vadd.f32 %v618_v60, %v598_v32 }
 0x2d5   : > { %v583_v1 = vpop.permute.xlu1 %582  ;;  %v659_v46 = vpop.permute.xlu0 %658 }
 0x2d6   : > { %v590_v48 = vsel %vm588_vm10, %v1072_v53, %v583_v1  ;;  %v591_v12 = vsel %vm588_vm10, %v583_v1, %v1076_v56  ;;  %v497_v53 = vadd.f32 %v1074_v54, %v441_v47 }
 0x2d7   : > { %v600_v63 = vadd.f32 %v590_v48, %v561_v58 }
 0x2d8   : > { %v563_v5 = vadd.f32 %v553_v55, %v497_v53 }
 0x2d9   : > { %v587_v14 = vpop.permute.xlu1 %586  ;;  %v663_v8 = vpop.permute.xlu0 %662 }
 0x2da   : > { %v592_v57 = vsel %vm588_vm10, %v1076_v56, %v587_v14 }
 0x2db   : > { %v602_v20 = vadd.f32 %v592_v57, %v563_v5 }
 0x2dd   : > { %v620_v19 = vpop.permute.xlu1 %619  ;;  %v708_v27 = vpop.permute.xlu0 %707 }
 0x2de   : > { %v628_v38 = vsel %vm627_vm11, %v618_v60, %v620_v19  ;;  %v629_v50 = vsel %vm627_vm11, %v620_v19, %v1085_v4  ;;  %v562_v60 = vadd.f32 %v552_v35, %v496_v52  ;;  %v712_v15 = vsel %vm484_vm8, %v1058_v30, %v708_v27 }
 0x2df   : > { %v638_v59 = vadd.f32 %v628_v38, %v599_v11  ;;  %v639_v9 = vadd.f32 %v629_v50, %v600_v63 }
 0x2e0   : > { %v601_v6 = vadd.f32 %v591_v12, %v562_v60 }
 0x2e1   : > { %v624_v36 = vpop.permute.xlu1 %623 }
 0x2e2   : > { %v630_v1 = vsel %vm627_vm11, %v1085_v4, %v624_v36  ;;  %v631_v40 = vsel %vm627_vm11, %v624_v36, %v626_v24 }
 0x2e3   : > { %v640_v56 = vadd.f32 %v630_v1, %v601_v6  ;;  %v641_v4 = vadd.f32 %v631_v40, %v602_v20 }
 0x2e5   : > { %v657_v61 = vpop.permute.xlu1 %656 }
 0x2e6   : > { %v667_v49 = vsel %vm666_vm12, %v657_v61, %v659_v46  ;;  %v676_v62 = vadd.f32 %v657_v61, %v637_v16 }
 0x2e7   : > { %v677_v2 = vadd.f32 %v667_v49, %v638_v59 }
 0x2e8   : > { %v681_v3 = vand.u32 2147483647, %v676_v62 }
 0x2e9   : > { %v682_v10 = vand.u32 2147483647, %v677_v2  ;;  %v661_v54 = vpop.permute.xlu1 %660 }
 0x2ea   : > { %v719_v13 = vmul.f32 %v1060_v31, %v681_v3  ;;  %v668_v17 = vsel %vm666_vm12, %v659_v46, %v661_v54  ;;  %v669_v18 = vsel %vm666_vm12, %v661_v54, %v663_v8 }
 0x2eb   : > { %v720_v14 = vmul.f32 %v711_v51, %v682_v10  ;;  %v678_v21 = vadd.f32 %v668_v17, %v639_v9  ;;  %v679_v41 = vadd.f32 %v669_v18, %v640_v56 }
 0x2ed   : > { %v665_v19 = vpop.permute.xlu1 %664  ;;  %v729_v25 = vcombine.low %v719_v13, %v720_v14  ;;  %v683_v28 = vand.u32 2147483647, %v678_v21  ;;  %v684_v31 = vand.u32 2147483647, %v679_v41 }
 0x2ee   : > { %v670_v26 = vsel %vm666_vm12, %v663_v8, %v665_v19 }
 0x2ef   : > { %v680_v29 = vadd.f32 %v670_v26, %v641_v4  ;;  %731 = vrot.lane.b32.xlu0 %v729_v25, %s892_s9  ;;  %v721_v45 = vmul.f32 %v712_v15, %v683_v28 }
 0x2f1   : > { %v685_v24 = vand.u32 2147483647, %v680_v29  ;;  %v710_v22 = vpop.permute.xlu1 %709 }
 0x2f2   : > { %v713_v42 = vsel %vm484_vm8, %v708_v27, %v710_v22 }
 0x2f3   : > { %v722_v23 = vmul.f32 %v713_v42, %v684_v31  ;;  %v723_v32 = vmul.f32 %v710_v22, %v685_v24 }
 0x2f5   : > { %735 = vrot.lane.b32.xlu0 %v723_v32, %s892_s9  ;;  %v730_v33 = vcombine.low %v721_v45, %v722_v23 }
 0x2f7   : > { %733 = vrot.lane.b32.xlu1 %v730_v33, %s892_s9 }
 0x361   : > { %v732_v7 = vpop.permute.xlu0 %731 }
 0x362   : > { %v737_v37 = vrot.slane %v732_v7, 4 }
 0x367   : > { %v736_v34 = vpop.permute.xlu0 %735 }
 0x368   : > { %v739_v43 = vrot.slane %v736_v34, 4 }
 0x369   : > { %v734_v36 = vpop.permute.xlu1 %733 }
 0x36a   : > { %v738_v0 = vrot.slane %v734_v36, 4 }
 0x36c   : > { %v741_v30 = vsel %vm740_vm13, %v737_v37, %v738_v0  ;;  %v744_v38 = vsel %vm740_vm13, %v738_v0, %v739_v43 }
 0x36d   : > { %v743_v39 = vsel %vm742_vm14, %v732_v7, %v741_v30  ;;  %v745_v44 = vsel %vm742_vm14, %v734_v36, %v744_v38 }
 0x36e   : > { %748 = vst [vmem:[%s170_s15] sm:$0xff] %v743_v39  ;;  %749 = vst [vmem:[%s170_s15 + $0x8] sm:$0xff] %v745_v44 }
 0x36f PF: > { %s13_s12 = sadd.s32 1, %s872_s12  }
 0x370   : > { %p10_p4 = scmp.ge.s32.totalorder %s13_s12, 4  }
 0x372   :  { %12 = sbr.rel (!%p10_p4) target bundleno = 1 (0x1), region = 63 }

// kernel: closed_call.30
= control target key start
LH: loop header
LB: loop body
LE: loop exit
PB: predicated region body
PF: predicated region fallthrough
CT: control target
= control target key end

     0   :  { %s4914_s29 = smov 0   ;;  %s5803_s0 = inlined_call_operand.vmem [shape: f32[2,8,512], index: 0, kind: input, shape index: {}]   ;;  %s5804_s1 = inlined_call_operand.vmem [shape: f32[2,40,512], index: 1, kind: input, shape index: {}, may-alias: {1,14}]   ;;  %s5805_s2 = inlined_call_operand.vmem [shape: f32[1,512], index: 2, kind: input, shape index: {}]   ;;  %s5806_s3 = inlined_call_operand.vmem [shape: bf16[16,200], index: 3, kind: input, shape index: {}]   ;;  %s5807_s4 = inlined_call_operand.vmem [shape: f32[16,1], index: 4, kind: input, shape index: {}]   ;;  %s5808_s5 = inlined_call_operand.vmem [shape: bf16[16,16], index: 5, kind: input, shape index: {}]   ;;  %s5809_s6 = inlined_call_operand.vmem [shape: f32[16,1], index: 6, kind: input, shape index: {}]   ;;  %s5810_s7 = inlined_call_operand.vmem [shape: f32[16,1], index: 7, kind: input, shape index: {}]   ;;  %s5811_s8 = inlined_call_operand.vmem [shape: bf16[16,144], index: 8, kind: input, shape index: {}]   ;;  %s5812_s9 = inlined_call_operand.vmem [shape: f32[16,1], index: 9, kind: input, shape index: {}]   ;;  %s5813_s10 = inlined_call_operand.vmem [shape: bf16[16,16], index: 10, kind: input, shape index: {}]   ;;  %s5814_s11 = inlined_call_operand.vmem [shape: f32[16,1], index: 11, kind: input, shape index: {}]   ;;  %s5815_s12 = inlined_call_operand.vmem [shape: f32[16,1], index: 12, kind: input, shape index: {}]   ;;  %s5816_s13 = inlined_call_operand.vmem [shape: bf16[8,144], index: 13, kind: input, shape index: {}]   ;;  %s5817_s14 = inlined_call_operand.vmem [shape: f32[2,40,512], index: 14, kind: output, shape index: {}, may-alias: {1,14}]  }
   0x1 LB: > { %s4236_s30 = sadd.s32 4294967295, %s4810_s29   ;;  %p4240_p0 = scmp.ge.s32.totalorder %s4810_s29, 1  ;;  %s4810_s29 = sphi %s4914_s29, %s24_s29  }
   0x2   : > { %p422_p1 = scmp.lt.s32.totalorder %s4810_s29, 3 }
   0x4   : > { %p423_p2 = pnand %p4240_p0, %p422_p1 }
   0x5   : > { %p473_p3 = scmp.lt.s32.totalorder (!%p423_p2), %s4236_s30, 1  ;;  %s4813_s15 = smov (!%p423_p2), 126  }
   0x6   : > { %426 = sbr.rel (%p423_p2) target bundleno = 1720 (0x6b8), region = 76  ;;  %s4814_s20 = smov (!%p423_p2), 110  }
   0x7   : > { %s4815_s21 = smov (!%p423_p2), 127   ;;  %s4817_s22 = smov (!%p423_p2), 2  }
   0x8   : > { %s5826_s23 = smov (!%p423_p2), 1   ;;  %s5822_s24 = smov (!%p423_p2), 19  }
   0x9   : > { %s4820_s25 = smov (!%p423_p2), 18   ;;  %s5818_s26 = smov (!%p423_p2), 21  }
   0xa   : > { %s5820_s27 = smov (!%p423_p2), 20   ;;  %s4823_s28 = smov (!%p423_p2), 38  }
   0xb   : > { %v5828_v0 = vmov 0.0|0.0   ;;  %s5850_s30 = smov (!%p473_p3, %s4236_s30), 1  ;;  %v5830_v7 = vmov 0.0   ;;  %s4826_s17 = smov 39   ;;  %vm534_vm0 = vcmask 1043456   ;;  %vm1091_vm1 = vcmask 1031168  }
   0xc   : > { %1085 = vrot.lane.b32.xlu1 %v5828_v0, %s4813_s15  ;;  %s4569_s16 = sshll.u32 %s5850_s30, 5  ;;  %s4827_s18 = smov 42   ;;  %vm1132_vm2 = vcmask 900096   ;;  %vm1050_vm3 = vcmask 1039360   ;;  %v4796_v52 = vld [vmem:[%s5806_s3 + $0x4] ss:$8 sps:$4 sm:$0xff]  }
   0xd   : > { %s477_s19 = scalar_lea.vmem %s5803_s0, %s4569_s16  ;;  %s4825_s16 = smov 40   ;;  %vm1832_vm4 = vcmask 588800   ;;  %v1562_v58 = vld [vmem:[%s5807_s4 + $0x8] sm:$0xff]  ;;  %vm946_vm5 = vcmask 15360   ;;  %v5832_v61 = vmov 0   ;;  %vm987_vm6 = vcmask 7168  }
   0xe   : > { %v494_v1 = vld [vmem:[%s477_s19] sm:$0xff]  ;;  %v495_v2 = vld [vmem:[%s477_s19 + $0x8] sm:$0xff]  ;;  %v496_v3 = vld [vmem:[%s477_s19 + $0x10] sm:$0xff]  ;;  %4374 = vmatprep.mubr.msk.bf16.mxu0 %vm1832_vm4, %v4796_v52  ;;  %4376 = vmatprep.mubr.msk.bf16.mxu1 %vm1832_vm4, %v4796_v52  ;;  %vm864_vm7 = vcmask 154624   ;;  %vm905_vm8 = vcmask 146432   ;;  %vm782_vm9 = vcmask 171008  }
   0xf   : > { %v4930_v4 = vpack.c.bf16 %v495_v2, %v494_v1  ;;  %v497_v5 = vld [vmem:[%s477_s19 + $0x18] sm:$0xff]  ;;  %v4570_v8 = vpack.c.bf16 %v494_v1, %v5830_v7  ;;  %v4571_v10 = vpack.c.bf16 %v496_v3, %v495_v2  ;;  %s4828_s19 = smov 41   ;;  %4793 = vset.pattern.permute.xlu1 %v5832_v61  ;;  %4792 = vset.pattern.permute.xlu0 %v5832_v61  ;;  %v1949_v2 = vld [vmem:[%s5809_s6] sm:$0xff]  ;;  %vm823_vm10 = vcmask 162816  }
  0x10   : > { %1126 = vrot.lane.b32.xlu1 %v5828_v0, %s4814_s20  ;;  %v4933_v6 = vpack.c.bf16 %v497_v5, %v496_v3  ;;  %v4572_v9 = vpack.c.bf16 %v497_v5, %v497_v5  ;;  %vm700_vm11 = vcmask 310272   ;;  %vm741_vm12 = vcmask 179200  }
  0x11   : > { %1081 = vrot.lane.b32.xlu0 %v4930_v4, %s4813_s15  ;;  %vm618_vm13 = vcmask 326656   ;;  %vm659_vm14 = vcmask 318464   ;;  %vm536_vm15 = vcmask 343040   ;;  %vm1419_vm4 = vcmask 719872  }
  0x14   : > { %1122 = vrot.lane.b32.xlu1 %v4930_v4, %s4814_s20 }
  0x15   : > { %1083 = vrot.lane.b32.xlu0 %v4933_v6, %s4813_s15  ;;  %s4824_s15 = smov 22  }
  0x18   : > { %1042 = vrot.lane.b32.xlu1 %v4933_v6, %s4815_s21 }
  0x19   : > { %1124 = vrot.lane.b32.xlu0 %v4933_v6, %s4814_s20  ;;  %s4829_s20 = smov 86  }
  0x1c   : > { %936 = vrot.lane.b32.xlu1 %v4570_v8, %s4817_s22 }
  0x1d   : > { %1040 = vrot.lane.b32.xlu0 %v4930_v4, %s4815_s21 }
  0x20   : > { %940 = vrot.lane.b32.xlu1 %v4572_v9, %s4817_s22 }
  0x21   : > { %1044 = vrot.lane.b32.xlu0 %v5828_v0, %s4815_s21 }
  0x24   : > { %979 = vrot.lane.b32.xlu1 %v4571_v10, %s5826_s23 }
  0x25   : > { %938 = vrot.lane.b32.xlu0 %v4571_v10, %s4817_s22  ;;  %s4830_s22 = smov 88  }
  0x28   : > { %854 = vrot.lane.b32.xlu1 %v4570_v8, %s5822_s24 }
  0x29   : > { %977 = vrot.lane.b32.xlu0 %v4570_v8, %s5826_s23 }
  0x2c   : > { %858 = vrot.lane.b32.xlu1 %v4572_v9, %s5822_s24 }
  0x2d   : > { %981 = vrot.lane.b32.xlu0 %v4572_v9, %s5826_s23 }
  0x30   : > { %897 = vrot.lane.b32.xlu1 %v4571_v10, %s4820_s25 }
  0x31   : > { %856 = vrot.lane.b32.xlu0 %v4571_v10, %s5822_s24 }
  0x34   : > { %772 = vrot.lane.b32.xlu1 %v4570_v8, %s5818_s26 }
  0x35   : > { %895 = vrot.lane.b32.xlu0 %v4570_v8, %s4820_s25 }
  0x38   : > { %776 = vrot.lane.b32.xlu1 %v4572_v9, %s5818_s26 }
  0x39   : > { %899 = vrot.lane.b32.xlu0 %v4572_v9, %s4820_s25  ;;  %s4831_s25 = smov 87  }
  0x3c   : > { %815 = vrot.lane.b32.xlu1 %v4571_v10, %s5820_s27 }
  0x3d   : > { %774 = vrot.lane.b32.xlu0 %v4571_v10, %s5818_s26 }
  0x40   : > { %690 = vrot.lane.b32.xlu1 %v4570_v8, %s4823_s28 }
  0x41   : > { %813 = vrot.lane.b32.xlu0 %v4570_v8, %s5820_s27 }
  0x44   : > { %694 = vrot.lane.b32.xlu1 %v4572_v9, %s4823_s28 }
  0x45   : > { %817 = vrot.lane.b32.xlu0 %v4572_v9, %s5820_s27 }
  0x48   : > { %733 = vrot.lane.b32.xlu1 %v4571_v10, %s4824_s15 }
  0x49   : > { %692 = vrot.lane.b32.xlu0 %v4571_v10, %s4823_s28  ;;  %s4832_s28 = smov 90  }
  0x4c   : > { %608 = vrot.lane.b32.xlu1 %v4570_v8, %s4825_s16 }
  0x4d   : > { %731 = vrot.lane.b32.xlu0 %v4570_v8, %s4824_s15 }
  0x50   : > { %612 = vrot.lane.b32.xlu1 %v4572_v9, %s4825_s16 }
  0x51   : > { %735 = vrot.lane.b32.xlu0 %v4572_v9, %s4824_s15  ;;  %s4833_s15 = smov 89  }
  0x54   : > { %651 = vrot.lane.b32.xlu1 %v4571_v10, %s4826_s17 }
  0x55   : > { %610 = vrot.lane.b32.xlu0 %v4571_v10, %s4825_s16  ;;  %s5824_s16 = smov 107  }
  0x58   : > { %525 = vrot.lane.b32.xlu1 %v4570_v8, %s4827_s18 }
  0x59   : > { %649 = vrot.lane.b32.xlu0 %v4570_v8, %s4826_s17 }
  0x5c   : > { %529 = vrot.lane.b32.xlu1 %v4572_v9, %s4827_s18 }
  0x5d   : > { %653 = vrot.lane.b32.xlu0 %v4572_v9, %s4826_s17  ;;  %s4835_s17 = smov 106  }
  0x60   : > { %569 = vrot.lane.b32.xlu1 %v4571_v10, %s4828_s19 }
  0x61   : > { %527 = vrot.lane.b32.xlu0 %v4571_v10, %s4827_s18  ;;  %s4836_s18 = smov 109  }
  0x64   : > { %1491 = vrot.lane.b32.xlu1 %v4930_v4, %s4829_s20 }
  0x65   : > { %567 = vrot.lane.b32.xlu0 %v4570_v8, %s4828_s19 }
  0x68   : > { %1495 = vrot.lane.b32.xlu1 %v5828_v0, %s4829_s20 }
  0x69   : > { %571 = vrot.lane.b32.xlu0 %v4572_v9, %s4828_s19  ;;  %s4837_s19 = smov 108  }
  0x6c   : > { %1411 = vrot.lane.b32.xlu1 %v4933_v6, %s4830_s22 }
  0x6d   : > { %1493 = vrot.lane.b32.xlu0 %v4933_v6, %s4829_s20  ;;  %s4756_s20 = smul.u32 160, %s5850_s30  ;;  %s5842_s30 = smov 21  }
  0x70   : > { %1450 = vrot.lane.b32.xlu1 %v4930_v4, %s4831_s25 }
  0x71   : > { %1409 = vrot.lane.b32.xlu0 %v4930_v4, %s4830_s22 }
  0x74   : > { %1454 = vrot.lane.b32.xlu1 %v5828_v0, %s4831_s25 }
  0x75   : > { %1413 = vrot.lane.b32.xlu0 %v5828_v0, %s4830_s22 }
  0x78   : > { %1329 = vrot.lane.b32.xlu1 %v4933_v6, %s4832_s28 }
  0x79   : > { %1452 = vrot.lane.b32.xlu0 %v4933_v6, %s4831_s25  ;;  %s5841_s25 = smov 20  }
  0x7c   : > { %1368 = vrot.lane.b32.xlu1 %v4930_v4, %s4833_s15 }
  0x7d   : > { %1327 = vrot.lane.b32.xlu0 %v4930_v4, %s4832_s28 }
  0x7e   : > { %v1086_v11 = vpop.permute.xlu1 %1085 }
  0x7f   : > { %v1089_v18 = vrot.slane %v1086_v11, 4 }
  0x80   : > { %1372 = vrot.lane.b32.xlu1 %v5828_v0, %s4833_s15 }
  0x81   : > { %1331 = vrot.lane.b32.xlu0 %v5828_v0, %s4832_s28  ;;  %s5143_s28 = scalar_lea.vmem %s5804_s1, %s4756_s20 }
  0x82   : > { %v1127_v12 = vpop.permute.xlu1 %1126 }
  0x83   : > { %v1082_v13 = vpop.permute.xlu0 %1081  ;;  %v1130_v23 = vrot.slane %v1127_v12, 4 }
  0x84   : > { %1247 = vrot.lane.b32.xlu1 %v4933_v6, %s5824_s16  ;;  %v1087_v19 = vrot.slane %v1082_v13, 4 }
  0x85   : > { %1370 = vrot.lane.b32.xlu0 %v4933_v6, %s4833_s15  ;;  %s5169_s15 = scalar_lea.vmem %s5817_s14, %s4756_s20  ;;  %s5843_s20 = smov 107  }
  0x86   : > { %v1123_v14 = vpop.permute.xlu1 %1122 }
  0x87   : > { %v1084_v15 = vpop.permute.xlu0 %1083  ;;  %v1128_v20 = vrot.slane %v1123_v14, 4 }
  0x88   : > { %1286 = vrot.lane.b32.xlu1 %v4930_v4, %s4835_s17  ;;  %v1088_v17 = vrot.slane %v1084_v15, 4 }
  0x89   : > { %1245 = vrot.lane.b32.xlu0 %v4930_v4, %s5824_s16 }
  0x8a   : > { %v1043_v16 = vpop.permute.xlu1 %1042  ;;  %v1090_v25 = vsel %vm534_vm0, %v1087_v19, %v1088_v17  ;;  %v1093_v26 = vsel %vm534_vm0, %v1088_v17, %v1089_v18 }
  0x8b   : > { %v1125_v21 = vpop.permute.xlu0 %1124  ;;  %v1047_v27 = vrot.slane %v1043_v16, 4  ;;  %v1092_v31 = vsel %vm1091_vm1, %v1082_v13, %v1090_v25  ;;  %v1094_v33 = vsel %vm1091_vm1, %v1084_v15, %v1093_v26  ;;  %v2057_v26 = vld [vmem:[%s5810_s7 + $0x8] sm:$0xff]  ;;  %vm577_vm1 = vcmask 334848  }
  0x8c   : > { %1290 = vrot.lane.b32.xlu1 %v5828_v0, %s4835_s17  ;;  %v1129_v24 = vrot.slane %v1125_v21, 4 }
  0x8d   : > { %1249 = vrot.lane.b32.xlu0 %v5828_v0, %s5824_s16 }
  0x8e   : > { %v4980_v22 = vpop.permute.xlu1 %936  ;;  %v1131_v28 = vsel %vm534_vm0, %v1128_v20, %v1129_v24  ;;  %v1134_v29 = vsel %vm534_vm0, %v1129_v24, %v1130_v23 }
  0x8f   : > { %v1041_v30 = vpop.permute.xlu0 %1040  ;;  %v1133_v32 = vsel %vm1132_vm2, %v1123_v14, %v1131_v28  ;;  %v1135_v34 = vsel %vm1132_vm2, %v1125_v21, %v1134_v29  ;;  %v942_v56 = vrot.slane %v4980_v22, 4  ;;  %v2056_v14 = vld [vmem:[%s5810_s7] sm:$0xff]  ;;  %vm1501_vm2 = vcmask 703488  }
  0x90   : > { %1165 = vrot.lane.b32.xlu1 %v4933_v6, %s4836_s18  ;;  %v1046_v36 = vrot.slane %v1041_v30, 4  ;;  %v4350_v37 = vcombine.high %v1092_v31, %v1133_v32  ;;  %v4352_v38 = vcombine.high %v1094_v33, %v1135_v34  ;;  %v4349_v39 = vcombine.low %v1092_v31, %v1133_v32 }
  0x91   : > { %1288 = vrot.lane.b32.xlu0 %v4933_v6, %s4835_s17  ;;  %v4351_v40 = vcombine.low %v1094_v33, %v1135_v34 }
  0x92   : > { %v941_v35 = vpop.permute.xlu1 %940  ;;  %v1049_v41 = vsel %vm534_vm0, %v1046_v36, %v1047_v27  ;;  %1849 = vmatprep.subr.bf16.mxu0 %v4350_v37  ;;  %1892 = vmatprep.subr.bf16.mxu1 %v4352_v38 }
  0x93   : > { %v1051_v42 = vsel %vm1050_vm3, %v1041_v30, %v1049_v41  ;;  %1850 = vmatpush1.bf16.msra.mxu0 %v4349_v39  ;;  %1893 = vmatpush1.bf16.msra.mxu1 %v4351_v40  ;;  %v1045_v43 = vpop.permute.xlu0 %1044  ;;  %v944_v62 = vrot.slane %v941_v35, 4 }
  0x94   : > { %1204 = vrot.lane.b32.xlu1 %v4930_v4, %s4837_s19  ;;  %v1048_v45 = vrot.slane %v1045_v43, 4  ;;  %v4346_v46 = vcombine.high %v4930_v4, %v1051_v42  ;;  %v4345_v47 = vcombine.low %v4930_v4, %v1051_v42 }
  0x95   : > { %1163 = vrot.lane.b32.xlu0 %v4930_v4, %s4836_s18  ;;  %v1561_v4 = vld [vmem:[%s5807_s4] sm:$0xff] }
  0x96   : > { %v980_v44 = vpop.permute.xlu1 %979  ;;  %v1052_v48 = vsel %vm534_vm0, %v1047_v27, %v1048_v45  ;;  %1851 = vmatprep.subr.bf16.mxu0 %v4346_v46 }
  0x97   : > { %1852 = vmatpush1.bf16.msra.mxu0 %v4345_v47  ;;  %v939_v49 = vpop.permute.xlu0 %938  ;;  %v1053_v50 = vsel %vm1050_vm3, %v1043_v16, %v1052_v48  ;;  %v984_v57 = vrot.slane %v980_v44, 4  ;;  %v1950_v16 = vld [vmem:[%s5809_s6 + $0x8] sm:$0xff] }
  0x98   : > { %1208 = vrot.lane.b32.xlu1 %v5828_v0, %s4837_s19  ;;  %v943_v53 = vrot.slane %v939_v49, 4  ;;  %v4348_v54 = vcombine.high %v4933_v6, %v1053_v50  ;;  %v4347_v55 = vcombine.low %v4933_v6, %v1053_v50 }
  0x99   : > { %1167 = vrot.lane.b32.xlu0 %v5828_v0, %s4836_s18 }
  0x9a   : > { %v5008_v51 = vpop.permute.xlu1 %854  ;;  %1894 = vmatprep.subr.bf16.mxu1 %v4348_v54  ;;  %v945_v1 = vsel %vm534_vm0, %v942_v56, %v943_v53  ;;  %v948_v11 = vsel %vm534_vm0, %v943_v53, %v944_v62 }
  0x9b   : > { %1895 = vmatpush1.bf16.msra.mxu1 %v4347_v55  ;;  %v978_v59 = vpop.permute.xlu0 %977  ;;  %v947_v8 = vsel %vm946_vm5, %v4980_v22, %v945_v1  ;;  %v949_v18 = vsel %vm946_vm5, %v939_v49, %v948_v11  ;;  %v860_v24 = vrot.slane %v5008_v51, 4  ;;  %vm1460_vm5 = vcmask 711680  }
  0x9c   : > { %v983_v63 = vrot.slane %v978_v59, 4  ;;  %1570 = vperm.xlu1 %4793, %v1562_v58  }
  0x9d   : > { %1206 = vrot.lane.b32.xlu0 %v4933_v6, %s4837_s19 }
  0x9e   : > { %v859_v60 = vpop.permute.xlu1 %858  ;;  %v986_v3 = vsel %vm534_vm0, %v983_v63, %v984_v57 }
  0x9f   : > { %v982_v5 = vpop.permute.xlu0 %981  ;;  %v988_v9 = vsel %vm987_vm6, %v978_v59, %v986_v3  ;;  %v862_v29 = vrot.slane %v859_v60, 4 }
  0xa0   : > { %v985_v6 = vrot.slane %v982_v5, 4  ;;  %v4342_v12 = vcombine.high %v947_v8, %v988_v9  ;;  %v4341_v13 = vcombine.low %v947_v8, %v988_v9  ;;  %1953 = vperm.xlu1 %4793, %v1949_v2  }
  0xa1   : > { %1565 = vperm.xlu0 %4792, %v1561_v4  }
  0xa2   : > { %v898_v10 = vpop.permute.xlu1 %897  ;;  %v989_v15 = vsel %vm534_vm0, %v984_v57, %v985_v6  ;;  %1853 = vmatprep.subr.bf16.mxu0 %v4342_v12 }
  0xa3   : > { %v857_v17 = vpop.permute.xlu0 %856  ;;  %1854 = vmatpush1.bf16.msra.mxu0 %v4341_v13  ;;  %v990_v19 = vsel %vm987_vm6, %v980_v44, %v989_v15  ;;  %v902_v25 = vrot.slane %v898_v10, 4 }
  0xa4   : > { %v861_v21 = vrot.slane %v857_v17, 4  ;;  %v4344_v22 = vcombine.high %v949_v18, %v990_v19  ;;  %v4343_v23 = vcombine.low %v949_v18, %v990_v19  ;;  %2068 = vperm.xlu1 %4793, %v2056_v14  }
  0xa5   : > { %1958 = vperm.xlu0 %4792, %v1950_v16  }
  0xa6   : > { %v773_v20 = vpop.permute.xlu1 %772  ;;  %1896 = vmatprep.subr.bf16.mxu1 %v4344_v22  ;;  %v863_v31 = vsel %vm534_vm0, %v860_v24, %v861_v21  ;;  %v866_v37 = vsel %vm534_vm0, %v861_v21, %v862_v29 }
  0xa7   : > { %v896_v27 = vpop.permute.xlu0 %895  ;;  %1897 = vmatpush1.bf16.msra.mxu1 %v4343_v23  ;;  %v865_v34 = vsel %vm864_vm7, %v5008_v51, %v863_v31  ;;  %v867_v43 = vsel %vm864_vm7, %v857_v17, %v866_v37  ;;  %v778_v49 = vrot.slane %v773_v20, 4 }
  0xa8   : > { %v901_v30 = vrot.slane %v896_v27, 4  ;;  %2641 = vrot.lane.b32.xlu1 %v5828_v0, %s4837_s19 }
  0xa9   : > { %2073 = vperm.xlu0 %4792, %v2057_v26  }
  0xaa   : > { %v777_v28 = vpop.permute.xlu1 %776  ;;  %v904_v32 = vsel %vm534_vm0, %v901_v30, %v902_v25 }
  0xab   : > { %v900_v33 = vpop.permute.xlu0 %899  ;;  %v906_v35 = vsel %vm905_vm8, %v896_v27, %v904_v32  ;;  %v780_v53 = vrot.slane %v777_v28, 4 }
  0xac   : > { %v903_v38 = vrot.slane %v900_v33, 4  ;;  %v4338_v39 = vcombine.high %v865_v34, %v906_v35  ;;  %v4337_v40 = vcombine.low %v865_v34, %v906_v35  ;;  %2571 = vrot.lane.b32.xlu1 %v5828_v0, %s4836_s18 }
  0xad   : > { %2647 = vrot.lane.b32.xlu0 %v5828_v0, %s4837_s19 }
  0xae   : > { %v816_v36 = vpop.permute.xlu1 %815  ;;  %v907_v41 = vsel %vm534_vm0, %v902_v25, %v903_v38  ;;  %1855 = vmatprep.subr.bf16.mxu0 %v4338_v39 }
  0xaf   : > { %v775_v42 = vpop.permute.xlu0 %774  ;;  %1856 = vmatpush1.bf16.msra.mxu0 %v4337_v40  ;;  %v908_v44 = vsel %vm905_vm8, %v898_v10, %v907_v41  ;;  %v820_v50 = vrot.slane %v816_v36, 4  ;;  %vm1337_vm8 = vcmask 736256  }
  0xb0   : > { %v779_v46 = vrot.slane %v775_v42, 4  ;;  %v4340_v47 = vcombine.high %v867_v43, %v908_v44  ;;  %v4339_v48 = vcombine.low %v867_v43, %v908_v44  ;;  %2501 = vrot.lane.b32.xlu1 %v5828_v0, %s4815_s21 }
  0xb1   : > { %2577 = vrot.lane.b32.xlu0 %v5828_v0, %s4836_s18 }
  0xb2   : > { %v691_v45 = vpop.permute.xlu1 %690  ;;  %1898 = vmatprep.subr.bf16.mxu1 %v4340_v47  ;;  %v781_v55 = vsel %vm534_vm0, %v778_v49, %v779_v46  ;;  %v784_v62 = vsel %vm534_vm0, %v779_v46, %v780_v53 }
  0xb3   : > { %v814_v51 = vpop.permute.xlu0 %813  ;;  %1899 = vmatpush1.bf16.msra.mxu1 %v4339_v48  ;;  %v783_v58 = vsel %vm782_vm9, %v773_v20, %v781_v55  ;;  %v785_v5 = vsel %vm782_vm9, %v775_v42, %v784_v62  ;;  %v696_v12 = vrot.slane %v691_v45, 4 }
  0xb4   : > { %v819_v54 = vrot.slane %v814_v51, 4 }
  0xb5   : > { %2507 = vrot.lane.b32.xlu0 %v5828_v0, %s4815_s21 }
  0xb6   : > { %v695_v52 = vpop.permute.xlu1 %694  ;;  %v822_v56 = vsel %vm534_vm0, %v819_v54, %v820_v50 }
  0xb7   : > { %v818_v57 = vpop.permute.xlu0 %817  ;;  %v824_v59 = vsel %vm823_vm10, %v814_v51, %v822_v56  ;;  %v698_v16 = vrot.slane %v695_v52, 4 }
  0xb8   : > { %v821_v63 = vrot.slane %v818_v57, 4  ;;  %v4334_v1 = vcombine.high %v783_v58, %v824_v59  ;;  %v4333_v2 = vcombine.low %v783_v58, %v824_v59 }
  0xba   : > { %v734_v60 = vpop.permute.xlu1 %733  ;;  %v825_v3 = vsel %vm534_vm0, %v820_v50, %v821_v63  ;;  %1857 = vmatprep.subr.bf16.mxu0 %v4334_v1 }
  0xbb   : > { %v693_v4 = vpop.permute.xlu0 %692  ;;  %1858 = vmatpush1.bf16.msra.mxu0 %v4333_v2  ;;  %v826_v8 = vsel %vm823_vm10, %v816_v36, %v825_v3  ;;  %v738_v13 = vrot.slane %v734_v60, 4 }
  0xbc   : > { %v697_v10 = vrot.slane %v693_v4, 4  ;;  %v4336_v11 = vcombine.high %v785_v5, %v826_v8  ;;  %v4335_v6 = vcombine.low %v785_v5, %v826_v8 }
  0xbe   : > { %v609_v9 = vpop.permute.xlu1 %608  ;;  %1900 = vmatprep.subr.bf16.mxu1 %v4336_v11  ;;  %v699_v18 = vsel %vm534_vm0, %v696_v12, %v697_v10  ;;  %v702_v24 = vsel %vm534_vm0, %v697_v10, %v698_v16 }
  0xbf   : > { %v732_v14 = vpop.permute.xlu0 %731  ;;  %1901 = vmatpush1.bf16.msra.mxu1 %v4335_v6  ;;  %v701_v21 = vsel %vm700_vm11, %v691_v45, %v699_v18  ;;  %v703_v30 = vsel %vm700_vm11, %v693_v4, %v702_v24  ;;  %v614_v36 = vrot.slane %v609_v9, 4  ;;  %vm1378_vm11 = vcmask 728064  }
  0xc0   : > { %v737_v17 = vrot.slane %v732_v14, 4 }
  0xc2   : > { %v613_v15 = vpop.permute.xlu1 %612  ;;  %v740_v19 = vsel %vm534_vm0, %v737_v17, %v738_v13 }
  0xc3   : > { %v736_v20 = vpop.permute.xlu0 %735  ;;  %v742_v22 = vsel %vm741_vm12, %v732_v14, %v740_v19  ;;  %v616_v40 = vrot.slane %v613_v15, 4 }
  0xc4   : > { %v739_v25 = vrot.slane %v736_v20, 4  ;;  %v4330_v26 = vcombine.high %v701_v21, %v742_v22  ;;  %v4329_v27 = vcombine.low %v701_v21, %v742_v22 }
  0xc6   : > { %v652_v23 = vpop.permute.xlu1 %651  ;;  %v743_v28 = vsel %vm534_vm0, %v738_v13, %v739_v25  ;;  %1859 = vmatprep.subr.bf16.mxu0 %v4330_v26 }
  0xc7   : > { %v611_v29 = vpop.permute.xlu0 %610  ;;  %1860 = vmatpush1.bf16.msra.mxu0 %v4329_v27  ;;  %v744_v31 = vsel %vm741_vm12, %v734_v60, %v743_v28  ;;  %v656_v37 = vrot.slane %v652_v23, 4  ;;  %vm1255_vm12 = vcmask 875520  }
  0xc8   : > { %v615_v33 = vrot.slane %v611_v29, 4  ;;  %v4332_v34 = vcombine.high %v703_v30, %v744_v31  ;;  %v4331_v35 = vcombine.low %v703_v30, %v744_v31 }
  0xca   : > { %v526_v32 = vpop.permute.xlu1 %525  ;;  %1902 = vmatprep.subr.bf16.mxu1 %v4332_v34  ;;  %v617_v42 = vsel %vm534_vm0, %v614_v36, %v615_v33  ;;  %v620_v48 = vsel %vm534_vm0, %v615_v33, %v616_v40 }
  0xcb   : > { %v650_v38 = vpop.permute.xlu0 %649  ;;  %1903 = vmatpush1.bf16.msra.mxu1 %v4331_v35  ;;  %v619_v45 = vsel %vm618_vm13, %v609_v9, %v617_v42  ;;  %v621_v54 = vsel %vm618_vm13, %v611_v29, %v620_v48  ;;  %v531_v60 = vrot.slane %v526_v32, 4  ;;  %vm1296_vm13 = vcmask 867328  }
  0xcc   : > { %v655_v41 = vrot.slane %v650_v38, 4 }
  0xce   : > { %v530_v39 = vpop.permute.xlu1 %529  ;;  %v658_v43 = vsel %vm534_vm0, %v655_v41, %v656_v37 }
  0xcf   : > { %v654_v44 = vpop.permute.xlu0 %653  ;;  %v660_v46 = vsel %vm659_vm14, %v650_v38, %v658_v43  ;;  %v533_v2 = vrot.slane %v530_v39, 4 }
  0xd0   : > { %v657_v49 = vrot.slane %v654_v44, 4  ;;  %v4326_v50 = vcombine.high %v619_v45, %v660_v46  ;;  %v4325_v51 = vcombine.low %v619_v45, %v660_v46 }
  0xd2   : > { %v570_v47 = vpop.permute.xlu1 %569  ;;  %v661_v52 = vsel %vm534_vm0, %v656_v37, %v657_v49  ;;  %1861 = vmatprep.subr.bf16.mxu0 %v4326_v50 }
  0xd3   : > { %v528_v53 = vpop.permute.xlu0 %527  ;;  %1862 = vmatpush1.bf16.msra.mxu0 %v4325_v51  ;;  %v662_v55 = vsel %vm659_vm14, %v652_v23, %v661_v52  ;;  %v574_v62 = vrot.slane %v570_v47, 4  ;;  %vm1173_vm14 = vcmask 891904  }
  0xd4   : > { %v532_v57 = vrot.slane %v528_v53, 4  ;;  %v4328_v58 = vcombine.high %v621_v54, %v662_v55  ;;  %v4327_v59 = vcombine.low %v621_v54, %v662_v55 }
  0xd6   : > { %v1492_v56 = vpop.permute.xlu1 %1491  ;;  %1904 = vmatprep.subr.bf16.mxu1 %v4328_v58  ;;  %v535_v4 = vsel %vm534_vm0, %v531_v60, %v532_v57  ;;  %v538_v6 = vsel %vm534_vm0, %v532_v57, %v533_v2 }
  0xd7   : > { %v568_v63 = vpop.permute.xlu0 %567  ;;  %1905 = vmatpush1.bf16.msra.mxu1 %v4327_v59  ;;  %v537_v9 = vsel %vm536_vm15, %v526_v32, %v535_v4  ;;  %v539_v18 = vsel %vm536_vm15, %v528_v53, %v538_v6  ;;  %v1497_v21 = vrot.slane %v1492_v56, 4  ;;  %vm1214_vm15 = vcmask 883712  }
  0xd8   : > { %v573_v3 = vrot.slane %v568_v63, 4 }
  0xda   : > { %v1496_v1 = vpop.permute.xlu1 %1495  ;;  %v576_v5 = vsel %vm534_vm0, %v573_v3, %v574_v62 }
  0xdb   : > { %v572_v8 = vpop.permute.xlu0 %571  ;;  %v578_v10 = vsel %vm577_vm1, %v568_v63, %v576_v5  ;;  %v1499_v16 = vrot.slane %v1496_v1, 4 }
  0xdc   : > { %v575_v12 = vrot.slane %v572_v8, 4  ;;  %v4322_v13 = vcombine.high %v537_v9, %v578_v10  ;;  %v4321_v14 = vcombine.low %v537_v9, %v578_v10 }
  0xde   : > { %v1412_v11 = vpop.permute.xlu1 %1411  ;;  %v579_v15 = vsel %vm534_vm0, %v574_v62, %v575_v12  ;;  %1863 = vmatprep.subr.bf16.mxu0 %v4322_v13 }
  0xdf   : > { %v1494_v17 = vpop.permute.xlu0 %1493  ;;  %1864 = vmatpush1.bf16.msra.mxu0 %v4321_v14  ;;  %v580_v19 = vsel %vm577_vm1, %v570_v47, %v579_v15  ;;  %v1416_v40 = vrot.slane %v1412_v11, 4  ;;  %vm1966_vm1 = vcmask 130048  }
  0xe0   : > { %v1498_v22 = vrot.slane %v1494_v17, 4  ;;  %v4324_v23 = vcombine.high %v539_v18, %v580_v19  ;;  %v4323_v24 = vcombine.low %v539_v18, %v580_v19 }
  0xe2   : > { %v1451_v20 = vpop.permute.xlu1 %1450  ;;  %v1500_v25 = vsel %vm534_vm0, %v1497_v21, %v1498_v22  ;;  %v1503_v26 = vsel %vm534_vm0, %v1498_v22, %v1499_v16  ;;  %1906 = vmatprep.subr.bf16.mxu1 %v4324_v23 }
  0xe3   : > { %v1410_v27 = vpop.permute.xlu0 %1409  ;;  %1907 = vmatpush1.bf16.msra.mxu1 %v4323_v24  ;;  %v1502_v28 = vsel %vm1501_vm2, %v1492_v56, %v1500_v25  ;;  %v1504_v29 = vsel %vm1501_vm2, %v1494_v17, %v1503_v26  ;;  %v1456_v46 = vrot.slane %v1451_v20, 4 }
  0xe4   : > { %v4370_v31 = vcombine.high %v1502_v28, %v1502_v28  ;;  %v4372_v32 = vcombine.high %v1504_v29, %v1504_v29  ;;  %v4369_v33 = vcombine.low %v1502_v28, %v1502_v28  ;;  %v4371_v34 = vcombine.low %v1504_v29, %v1504_v29 }
  0xe5   : > { %v1415_v39 = vrot.slane %v1410_v27, 4 }
  0xe6   : > { %v1455_v30 = vpop.permute.xlu1 %1454  ;;  %4373 = vmatprep.subr.msk.bf16.mxu0 %vm534_vm0, %v4370_v31  ;;  %4375 = vmatprep.subr.msk.bf16.mxu1 %vm534_vm0, %v4372_v32  ;;  %v1838_v35 = vsel %vm534_vm0, %v4369_v33, 0  ;;  %v1844_v37 = vsel %vm534_vm0, %v4371_v34, 0 }
  0xe7   : > { %v1414_v36 = vpop.permute.xlu0 %1413  ;;  %1872 = vmatpush2.bf16.msra.mxu0 %v1838_v35  ;;  %1915 = vmatpush2.bf16.msra.mxu1 %v1844_v37  ;;  %v1458_v42 = vrot.slane %v1455_v30, 4  ;;  %v1418_v48 = vsel %vm534_vm0, %v1415_v39, %v1416_v40 }
  0xe8   : > { %v1417_v41 = vrot.slane %v1414_v36, 4  ;;  %v1420_v52 = vsel %vm1419_vm4, %v1410_v27, %v1418_v48 }
  0xea   : > { %v1330_v38 = vpop.permute.xlu1 %1329  ;;  %v1421_v45 = vsel %vm534_vm0, %v1416_v40, %v1417_v41 }
  0xeb   : > { %v1453_v43 = vpop.permute.xlu0 %1452  ;;  %v1422_v54 = vsel %vm1419_vm4, %v1412_v11, %v1421_v45  ;;  %v1334_v2 = vrot.slane %v1330_v38, 4 }
  0xec   : > { %v1457_v47 = vrot.slane %v1453_v43, 4 }
  0xee   : > { %v1369_v44 = vpop.permute.xlu1 %1368  ;;  %v1462_v49 = vsel %vm534_vm0, %v1457_v47, %v1458_v42  ;;  %v1459_v50 = vsel %vm534_vm0, %v1456_v46, %v1457_v47 }
  0xef   : > { %v1328_v51 = vpop.permute.xlu0 %1327  ;;  %v1461_v53 = vsel %vm1460_vm5, %v1451_v20, %v1459_v50  ;;  %v1463_v55 = vsel %vm1460_vm5, %v1453_v43, %v1462_v49  ;;  %v1374_v10 = vrot.slane %v1369_v44, 4 }
  0xf0   : > { %v4366_v57 = vcombine.high %v1420_v52, %v1461_v53  ;;  %v4368_v58 = vcombine.high %v1422_v54, %v1463_v55  ;;  %v4365_v59 = vcombine.low %v1420_v52, %v1461_v53  ;;  %v4367_v60 = vcombine.low %v1422_v54, %v1463_v55 }
  0xf1   : > { %v1333_v1 = vrot.slane %v1328_v51, 4 }
  0xf2   : > { %v1373_v56 = vpop.permute.xlu1 %1372  ;;  %1873 = vmatprep.subr.bf16.mxu0 %v4366_v57  ;;  %1916 = vmatprep.subr.bf16.mxu1 %v4368_v58 }
  0xf3   : > { %v1332_v62 = vpop.permute.xlu0 %1331  ;;  %1874 = vmatpush2.bf16.msra.mxu0 %v4365_v59  ;;  %1917 = vmatpush2.bf16.msra.mxu1 %v4367_v60  ;;  %v1376_v4 = vrot.slane %v1373_v56, 4  ;;  %v1336_v6 = vsel %vm534_vm0, %v1333_v1, %v1334_v2 }
  0xf4   : > { %v1335_v3 = vrot.slane %v1332_v62, 4  ;;  %v1338_v15 = vsel %vm1337_vm8, %v1328_v51, %v1336_v6 }
  0xf6   : > { %v1248_v63 = vpop.permute.xlu1 %1247  ;;  %v1339_v9 = vsel %vm534_vm0, %v1334_v2, %v1335_v3 }
  0xf7   : > { %v1371_v5 = vpop.permute.xlu0 %1370  ;;  %v1340_v17 = vsel %vm1337_vm8, %v1330_v38, %v1339_v9  ;;  %v1252_v27 = vrot.slane %v1248_v63, 4 }
  0xf8   : > { %v1375_v11 = vrot.slane %v1371_v5, 4 }
  0xfa   : > { %v1287_v8 = vpop.permute.xlu1 %1286  ;;  %v1380_v12 = vsel %vm534_vm0, %v1375_v11, %v1376_v4  ;;  %v1377_v13 = vsel %vm534_vm0, %v1374_v10, %v1375_v11 }
  0xfb   : > { %v1246_v14 = vpop.permute.xlu0 %1245  ;;  %v1379_v16 = vsel %vm1378_vm11, %v1369_v44, %v1377_v13  ;;  %v1381_v18 = vsel %vm1378_vm11, %v1371_v5, %v1380_v12  ;;  %v1292_v32 = vrot.slane %v1287_v8, 4 }
  0xfc   : > { %v4362_v20 = vcombine.high %v1338_v15, %v1379_v16  ;;  %v4364_v21 = vcombine.high %v1340_v17, %v1381_v18  ;;  %v4361_v22 = vcombine.low %v1338_v15, %v1379_v16  ;;  %v4363_v23 = vcombine.low %v1340_v17, %v1381_v18 }
  0xfd   : > { %v1251_v26 = vrot.slane %v1246_v14, 4 }
  0xfe   : > { %v1291_v19 = vpop.permute.xlu1 %1290  ;;  %1875 = vmatprep.subr.bf16.mxu0 %v4362_v20  ;;  %1918 = vmatprep.subr.bf16.mxu1 %v4364_v21 }
  0xff   : > { %v1250_v24 = vpop.permute.xlu0 %1249  ;;  %1876 = vmatpush2.bf16.msra.mxu0 %v4361_v22  ;;  %1919 = vmatpush2.bf16.msra.mxu1 %v4363_v23  ;;  %v1294_v29 = vrot.slane %v1291_v19, 4  ;;  %v1254_v34 = vsel %vm534_vm0, %v1251_v26, %v1252_v27 }
 0x100   : > { %v1253_v28 = vrot.slane %v1250_v24, 4  ;;  %v1256_v39 = vsel %vm1255_vm12, %v1246_v14, %v1254_v34 }
 0x102   : > { %v1166_v25 = vpop.permute.xlu1 %1165  ;;  %v1257_v31 = vsel %vm534_vm0, %v1252_v27, %v1253_v28 }
 0x103   : > { %v1289_v30 = vpop.permute.xlu0 %1288  ;;  %v1258_v41 = vsel %vm1255_vm12, %v1248_v63, %v1257_v31  ;;  %v1170_v50 = vrot.slane %v1166_v25, 4 }
 0x104   : > { %v1293_v33 = vrot.slane %v1289_v30, 4 }
 0x106   : > { %v1205_v35 = vpop.permute.xlu1 %1204  ;;  %v1298_v36 = vsel %vm534_vm0, %v1293_v33, %v1294_v29  ;;  %v1295_v37 = vsel %vm534_vm0, %v1292_v32, %v1293_v33 }
 0x107   : > { %v1164_v38 = vpop.permute.xlu0 %1163  ;;  %v1297_v40 = vsel %vm1296_vm13, %v1287_v8, %v1295_v37  ;;  %v1299_v42 = vsel %vm1296_vm13, %v1289_v30, %v1298_v36  ;;  %v1210_v55 = vrot.slane %v1205_v35, 4  ;;  %v4794_v8 = vld [vmem:[%s5806_s3] ss:$8 sps:$4 sm:$0xff]  }
 0x108   : > { %v4358_v43 = vcombine.high %v1256_v39, %v1297_v40  ;;  %v4360_v44 = vcombine.high %v1258_v41, %v1299_v42  ;;  %v4357_v45 = vcombine.low %v1256_v39, %v1297_v40  ;;  %v4359_v46 = vcombine.low %v1258_v41, %v1299_v42 }
 0x109   : > { %v1169_v49 = vrot.slane %v1164_v38, 4  ;;  %v2101_v39 = vlaneseq }
 0x10a   : > { %1877 = vmatprep.subr.bf16.mxu0 %v4358_v43  ;;  %1920 = vmatprep.subr.bf16.mxu1 %v4360_v44  ;;  %v1209_v48 = vpop.permute.xlu1 %1208  ;;  %v2058_v44 = vld [vmem:[%s5143_s28 + $0x20] sm:$0xff] }
 0x10b   : > { %v1168_v47 = vpop.permute.xlu0 %1167  ;;  %1878 = vmatpush2.bf16.msra.mxu0 %v4357_v45  ;;  %1921 = vmatpush2.bf16.msra.mxu1 %v4359_v46  ;;  %v1212_v52 = vrot.slane %v1209_v48, 4  ;;  %v1172_v57 = vsel %vm534_vm0, %v1169_v49, %v1170_v50  ;;  %v2102_v41 = vshrl.u32 %v2101_v39, 7  ;;  %v2060_v45 = vld [vmem:[%s5143_s28 + $0x30] sm:$0xff]  ;;  %v489_v48 = vld [vmem:[%s5805_s2] sm:$0xf]  ;;  %v2059_v49 = vld [vmem:[%s5143_s28 + $0x28] sm:$0xff] }
 0x10c   : > { %v1171_v51 = vrot.slane %v1168_v47, 4  ;;  %v1174_v60 = vsel %vm1173_vm14, %v1164_v38, %v1172_v57  ;;  %v4797_v38 = vld [vmem:[%s5808_s5] sm:$0xff]  }
 0x10d   : > { %v2103_v46 = vsub.s32 0, %v2102_v41  ;;  %v2111_v47 = vsub.s32 2, %v2102_v41  ;;  %v2062_v57 = vld [vmem:[%s5143_s28 + $0x40] sm:$0xff] }
 0x10e   : > { %v1175_v54 = vsel %vm534_vm0, %v1170_v50, %v1171_v51  ;;  %v2061_v50 = vld [vmem:[%s5143_s28 + $0x38] sm:$0xff] }
 0x10f   : > { %v1207_v53 = vpop.permute.xlu0 %1206  ;;  %v1176_v63 = vsel %vm1173_vm14, %v1166_v25, %v1175_v54  ;;  %v2115_v54 = vsub.s32 3, %v2102_v41 }
 0x110   : > { %v1211_v56 = vrot.slane %v1207_v53, 4 }
 0x112   : > { %v1216_v58 = vsel %vm534_vm0, %v1211_v56, %v1212_v52  ;;  %v1213_v59 = vsel %vm534_vm0, %v1210_v55, %v1211_v56 }
 0x113   : > { %v1215_v62 = vsel %vm1214_vm15, %v1205_v35, %v1213_v59  ;;  %v1217_v1 = vsel %vm1214_vm15, %v1207_v53, %v1216_v58  ;;  %v2107_v53 = vsub.s32 1, %v2102_v41  ;;  %v2063_v58 = vld [vmem:[%s5143_s28 + $0x48] sm:$0xff] }
 0x114   : > { %v4354_v2 = vcombine.high %v1174_v60, %v1215_v62  ;;  %v4356_v3 = vcombine.high %v1176_v63, %v1217_v1  ;;  %v4353_v4 = vcombine.low %v1174_v60, %v1215_v62  ;;  %v4355_v5 = vcombine.low %v1176_v63, %v1217_v1 }
 0x115   : > { %v5154_v63 = vrot.slane %v489_v48, %v2103_v46  ;;  %v5156_v1 = vrot.slane %v489_v48, %v2111_v47 }
 0x116   : > { %1879 = vmatprep.subr.bf16.mxu0 %v4354_v2  ;;  %1922 = vmatprep.subr.bf16.mxu1 %v4356_v3 }
 0x117   : > { %1880 = vmatpush2.bf16.msra.mxu0 %v4353_v4  ;;  %1923 = vmatpush2.bf16.msra.mxu1 %v4355_v5  ;;  %v1571_v13 = vpop.permute.xlu1 %1570 }
 0x11a   : > { %1882 = vmatmul.mubr.bf16.vlgmr.msra.gmra.mxu0 %v4794_v8  ;;  %1925 = vmatmul.mubr.bf16.vlgmr.msra.gmra.mxu1 %v4794_v8  ;;  %v2064_v8 = vld [vmem:[%s5143_s28 + $0x50] sm:$0xff] }
 0x11b   : > { %2002 = vmatprep.mubr.bf16.mxu0 %v5832_v61  ;;  %2045 = vmatprep.mubr.bf16.mxu1 %v5832_v61  ;;  %v1954_v40 = vpop.permute.xlu1 %1953 }
 0x11c   : > { %v1566_v12 = vpop.permute.xlu0 %1565 }
 0x11f   : > { %v2069_v43 = vpop.permute.xlu1 %2068 }
 0x120   : > { %v1959_v42 = vpop.permute.xlu0 %1958  ;;  %v2076_v59 = vmul.f32 %v2069_v43, %v2058_v44  ;;  %v2078_v62 = vmul.f32 %v2069_v43, %v2060_v45  ;;  %v2077_v3 = vmul.f32 %v2069_v43, %v2059_v49  ;;  %v2079_v5 = vmul.f32 %v2069_v43, %v2061_v50 }
 0x124   : > { %v2074_v55 = vpop.permute.xlu0 %2073 }
 0x1da   : > { %v1883_v9 = vpop.f32.mrf.mxu0  ;;  %v1926_v10 = vpop.f32.mrf.mxu1 }
 0x1db   : > { %v1884_v20 = vadd.f32 %v1883_v9, %v1566_v12  ;;  %v1927_v21 = vadd.f32 %v1926_v10, %v1566_v12  ;;  %v2065_v9 = vld [vmem:[%s5143_s28 + $0x58] sm:$0xff] }
 0x1dc   : > { %v1885_v11 = vpop.f32.mrf.mxu0  ;;  %v1928_v6 = vpop.f32.mrf.mxu1 }
 0x1dd   : > { %v1886_v16 = vadd.f32 %v1885_v11, %v1566_v12  ;;  %v1929_v17 = vadd.f32 %v1928_v6, %v1566_v12  ;;  %v1935_v32 = vmax.f32 %v1884_v20, 0.0  ;;  %v1937_v33 = vmax.f32 %v1927_v21, 0.0 }
 0x1de   : > { %v1887_v14 = vpop.f32.mrf.mxu0  ;;  %v1930_v15 = vpop.f32.mrf.mxu1 }
 0x1df   : > { %v1888_v18 = vadd.f32 %v1887_v14, %v1571_v13  ;;  %v1931_v19 = vadd.f32 %v1930_v15, %v1571_v13  ;;  %v1936_v28 = vmax.f32 %v1886_v16, 0.0  ;;  %v1938_v29 = vmax.f32 %v1929_v17, 0.0 }
 0x1e0   : > { %v1889_v22 = vpop.f32.mrf.mxu0  ;;  %v1932_v23 = vpop.f32.mrf.mxu1  ;;  %v5162_v14 = vrot.slane %v489_v48, %v2115_v54  ;;  %v2080_v16 = vmul.f32 %v2074_v55, %v2062_v57 }
 0x1e1   : > { %v1890_v24 = vadd.f32 %v1889_v22, %v1571_v13  ;;  %v1933_v25 = vadd.f32 %v1932_v23, %v1571_v13  ;;  %v1939_v26 = vmax.f32 %v1888_v18, 0.0  ;;  %v1941_v27 = vmax.f32 %v1931_v19, 0.0 }
 0x1e2   : > { %v5160_v13 = vrot.slane %v489_v48, %v2107_v53  ;;  %v2081_v18 = vmul.f32 %v2074_v55, %v2063_v58 }
 0x1e3   : > { %v1940_v30 = vmax.f32 %v1890_v24, 0.0  ;;  %v1942_v31 = vmax.f32 %v1933_v25, 0.0  ;;  %v1945_v36 = vpack.c.bf16 %v1939_v26, %v1935_v32  ;;  %v1947_v37 = vpack.c.bf16 %v1941_v27, %v1937_v33 }
 0x1e4   : > { %v2082_v25 = vmul.f32 %v2074_v55, %v2064_v8  ;;  %v3083_v8 = vld [vmem:[%s5814_s11] sm:$0xff] }
 0x1e5   : > { %v1946_v34 = vpack.c.bf16 %v1940_v30, %v1936_v28  ;;  %v1948_v35 = vpack.c.bf16 %v1942_v31, %v1938_v29  ;;  %v2083_v28 = vmul.f32 %v2074_v55, %v2065_v9  ;;  %v3084_v9 = vld [vmem:[%s5814_s11 + $0x8] sm:$0xff] }
 0x1e7   : > { %1984 = vmatprep.subr.bf16.mxu0 %v1946_v34  ;;  %2027 = vmatprep.subr.bf16.mxu1 %v1948_v35 }
 0x1e8   : > { %1985 = vmatpush1.bf16.msra.mxu0 %v1945_v36  ;;  %2028 = vmatpush1.bf16.msra.mxu1 %v1947_v37 }
 0x1eb   : > { %4378 = vmatmul.mubr.msk.bf16.vlgmr.msra.gmra.mxu0 %vm1966_vm1, %v4797_v38  ;;  %4379 = vmatmul.mubr.msk.bf16.vlgmr.msra.gmra.mxu1 %vm1966_vm1, %v4797_v38 }
 0x2ab   : > { %v2004_v51 = vpop.f32.mrf.mxu0  ;;  %v2047_v52 = vpop.f32.mrf.mxu1 }
 0x2ac   : > { %v2005_v56 = vadd.f32 %v2004_v51, %v1954_v40  ;;  %v2048_v60 = vadd.f32 %v2047_v52, %v1954_v40 }
 0x2ad   : > { %v2006_v2 = vpop.f32.mrf.mxu0  ;;  %v2049_v4 = vpop.f32.mrf.mxu1 }
 0x2ae   : > { %v2084_v10 = vadd.f32 %v2076_v59, %v2005_v56  ;;  %v2086_v11 = vadd.f32 %v2078_v62, %v2048_v60  ;;  %v2007_v6 = vadd.f32 %v2006_v2, %v1954_v40  ;;  %v2050_v12 = vadd.f32 %v2049_v4, %v1954_v40  ;;  %v2779_v4 = vld [vmem:[%s5812_s9] sm:$0xff] }
 0x2af   : > { %v2008_v15 = vpop.f32.mrf.mxu0  ;;  %v2051_v17 = vpop.f32.mrf.mxu1 }
 0x2b0   : > { %v2092_v19 = vmax.f32 %v2084_v10, 0.0  ;;  %v2094_v20 = vmax.f32 %v2086_v11, 0.0  ;;  %v2085_v21 = vadd.f32 %v2077_v3, %v2007_v6  ;;  %v2087_v22 = vadd.f32 %v2079_v5, %v2050_v12  ;;  %v4798_v3 = vld [vmem:[%s5811_s8 + $0x4] ss:$8 sps:$4 sm:$0xff]   ;;  %v2642_v6 = vpop.permute.xlu1 %2641  ;;  %v2648_v12 = vpop.permute.xlu0 %2647 }
 0x2b1   : > { %v2009_v23 = vadd.f32 %v2008_v15, %v1959_v42  ;;  %v2052_v24 = vadd.f32 %v2051_v17, %v1959_v42  ;;  %v2010_v26 = vpop.f32.mrf.mxu0  ;;  %v2053_v27 = vpop.f32.mrf.mxu1  ;;  %4470 = vmatprep.mubr.msk.bf16.mxu0 %vm1966_vm1, %v4798_v3  ;;  %4471 = vmatprep.mubr.msk.bf16.mxu1 %vm1966_vm1, %v4798_v3  ;;  %v2780_v5 = vld [vmem:[%s5812_s9 + $0x8] sm:$0xff]  ;;  %v3189_v10 = vld [vmem:[%s5815_s12] sm:$0xff] }
 0x2b2   : > { %v5172_v29 = vmul.f32 %v5154_v63, %v2092_v19  ;;  %v5175_v30 = vmul.f32 %v5156_v1, %v2094_v20  ;;  %v2093_v31 = vmax.f32 %v2085_v21, 0.0  ;;  %v2095_v32 = vmax.f32 %v2087_v22, 0.0  ;;  %v3190_v11 = vld [vmem:[%s5815_s12 + $0x8] sm:$0xff] }
 0x2b3   : > { %v2088_v33 = vadd.f32 %v2080_v16, %v2009_v23  ;;  %v2090_v34 = vadd.f32 %v2082_v25, %v2052_v24  ;;  %v2011_v35 = vadd.f32 %v2010_v26, %v1959_v42  ;;  %v2054_v36 = vadd.f32 %v2053_v27, %v1959_v42 }
 0x2b4   : > { %2129 = vst [vmem:[%s5169_s15 + $0x20] sm:$0xff] %v5172_v29  ;;  %2131 = vst [vmem:[%s5169_s15 + $0x30] sm:$0xff] %v5175_v30  ;;  %v5182_v37 = vmul.f32 %v5160_v13, %v2093_v31  ;;  %v5185_v38 = vmul.f32 %v5162_v14, %v2095_v32  ;;  %v4644_v39 = vpack.c.bf16 %v5172_v29, %v5830_v7  ;;  %v2572_v15 = vpop.permute.xlu1 %2571  ;;  %v5314_v16 = vpop.permute.xlu0 %2577 }
 0x2b5   : > { %v2096_v40 = vmax.f32 %v2088_v33, 0.0  ;;  %v2098_v41 = vmax.f32 %v2090_v34, 0.0  ;;  %v2089_v43 = vadd.f32 %v2081_v18, %v2011_v35  ;;  %v2091_v44 = vadd.f32 %v2083_v28, %v2054_v36 }
 0x2b6   : > { %2130 = vst [vmem:[%s5169_s15 + $0x28] sm:$0xff] %v5182_v37  ;;  %2132 = vst [vmem:[%s5169_s15 + $0x38] sm:$0xff] %v5185_v38  ;;  %2391 = vrot.lane.b32.xlu1 %v4644_v39, %s5826_s23  ;;  %v4669_v42 = vpack.c.bf16 %v5185_v38, %v5175_v30  ;;  %v4645_v55 = vpack.c.bf16 %v5175_v30, %v5182_v37  ;;  %v4668_v56 = vpack.c.bf16 %v5182_v37, %v5172_v29 }
 0x2b7   : > { %v5197_v45 = vmul.f32 %v5154_v63, %v2096_v40  ;;  %v5200_v46 = vmul.f32 %v5156_v1, %v2098_v41  ;;  %v2097_v47 = vmax.f32 %v2089_v43, 0.0  ;;  %v2099_v48 = vmax.f32 %v2091_v44, 0.0 }
 0x2b8   : > { %2639 = vrot.lane.b32.xlu0 %v4669_v42, %s4837_s19  ;;  %v4646_v57 = vpack.c.bf16 %v5185_v38, %v5185_v38  ;;  %v5320_v17 = vpop.permute.xlu1 %2501  ;;  %v5322_v18 = vpop.permute.xlu0 %2507  ;;  %v2581_v3 = vrot.slane %v2572_v15, 4 }
 0x2b9   : > { %2133 = vst [vmem:[%s5169_s15 + $0x40] sm:$0xff] %v5197_v45  ;;  %2135 = vst [vmem:[%s5169_s15 + $0x50] sm:$0xff] %v5200_v46  ;;  %v5208_v49 = vmul.f32 %v5160_v13, %v2097_v47  ;;  %v5211_v50 = vmul.f32 %v5162_v14, %v2099_v48  ;;  %v4647_v58 = vpack.c.bf16 %v5197_v45, %v5830_v7 }
 0x2ba   : > { %2321 = vrot.lane.b32.xlu1 %v4644_v39, %s5822_s24 }
 0x2bb   : > { %2134 = vst [vmem:[%s5169_s15 + $0x48] sm:$0xff] %v5208_v49  ;;  %2136 = vst [vmem:[%s5169_s15 + $0x58] sm:$0xff] %v5211_v50  ;;  %v4751_v53 = vpack.c.bf16 %v5211_v50, %v5185_v38  ;;  %v4671_v59 = vpack.c.bf16 %v5211_v50, %v5200_v46  ;;  %v4670_v60 = vpack.c.bf16 %v5208_v49, %v5197_v45 }
 0x2bc   : > { %2569 = vrot.lane.b32.xlu0 %v4669_v42, %s4836_s18  ;;  %v4649_v62 = vpack.c.bf16 %v5211_v50, %v5211_v50  ;;  %v4648_v2 = vpack.c.bf16 %v5200_v46, %v5208_v49  ;;  %v5834_v50 = vpack.c.bf16 %v5208_v49, %v5182_v37 }
 0x2be   : > { %2251 = vrot.lane.b32.xlu1 %v4644_v39, %s5820_s27 }
 0x2c0   : > { %2499 = vrot.lane.b32.xlu0 %v4669_v42, %s4815_s21 }
 0x2c2   : > { %2181 = vrot.lane.b32.xlu1 %v4644_v39, %s5818_s26 }
 0x2c4   : > { %2393 = vrot.lane.b32.xlu0 %v4645_v55, %s5826_s23 }
 0x2c6   : > { %2637 = vrot.lane.b32.xlu1 %v4668_v56, %s4837_s19 }
 0x2c8   : > { %2323 = vrot.lane.b32.xlu0 %v4645_v55, %s5822_s24 }
 0x2ca   : > { %2567 = vrot.lane.b32.xlu1 %v4668_v56, %s4836_s18 }
 0x2cc   : > { %2253 = vrot.lane.b32.xlu0 %v4645_v55, %s5820_s27 }
 0x2ce   : > { %2497 = vrot.lane.b32.xlu1 %v4668_v56, %s4815_s21 }
 0x2d0   : > { %2183 = vrot.lane.b32.xlu0 %v4645_v55, %s5818_s26 }
 0x2d2   : > { %2395 = vrot.lane.b32.xlu1 %v4646_v57, %s5826_s23 }
 0x2d4   : > { %2709 = vrot.lane.b32.xlu0 %v4669_v42, %s5824_s16 }
 0x2d6   : > { %2325 = vrot.lane.b32.xlu1 %v4646_v57, %s5822_s24 }
 0x2d8   : > { %2397 = vrot.lane.b32.xlu0 %v4647_v58, %s5826_s23 }
 0x2da   : > { %2255 = vrot.lane.b32.xlu1 %v4646_v57, %s5820_s27 }
 0x2dc   : > { %2327 = vrot.lane.b32.xlu0 %v4647_v58, %s5822_s24 }
 0x2de   : > { %2185 = vrot.lane.b32.xlu1 %v4646_v57, %s5818_s26 }
 0x2e0   : > { %2257 = vrot.lane.b32.xlu0 %v4647_v58, %s5820_s27 }
 0x2e2   : > { %2707 = vrot.lane.b32.xlu1 %v4668_v56, %s5824_s16  ;;  %v2651_v56 = vrot.slane %v2642_v6, 4 }
 0x2e4   : > { %2187 = vrot.lane.b32.xlu0 %v4647_v58, %s5818_s26 }
 0x2e6   : > { %2645 = vrot.lane.b32.xlu1 %v4671_v59, %s4837_s19 }
 0x2e8   : > { %2643 = vrot.lane.b32.xlu0 %v4670_v60, %s4837_s19 }
 0x2ea   : > { %2575 = vrot.lane.b32.xlu1 %v4671_v59, %s4836_s18 }
 0x2ec   : > { %2573 = vrot.lane.b32.xlu0 %v4670_v60, %s4836_s18 }
 0x2ee   : > { %2505 = vrot.lane.b32.xlu1 %v4671_v59, %s4815_s21 }
 0x2f0   : > { %2503 = vrot.lane.b32.xlu0 %v4670_v60, %s4815_s21 }
 0x2f2   : > { %2711 = vrot.lane.b32.xlu1 %v5828_v0, %s5824_s16 }
 0x2f4   : > { %2401 = vrot.lane.b32.xlu0 %v4649_v62, %s5826_s23 }
 0x2f6   : > { %2399 = vrot.lane.b32.xlu1 %v4648_v2, %s5826_s23 }
 0x2f8   : > { %2331 = vrot.lane.b32.xlu0 %v4649_v62, %s5822_s24 }
 0x2fa   : > { %2329 = vrot.lane.b32.xlu1 %v4648_v2, %s5822_s24 }
 0x2fc   : > { %2261 = vrot.lane.b32.xlu0 %v4649_v62, %s5820_s27 }
 0x2fe   : > { %2259 = vrot.lane.b32.xlu1 %v4648_v2, %s5820_s27 }
 0x300   : > { %2191 = vrot.lane.b32.xlu0 %v4649_v62, %s5818_s26 }
 0x302   : > { %2189 = vrot.lane.b32.xlu1 %v4648_v2, %s5818_s26 }
 0x304   : > { %2713 = vrot.lane.b32.xlu0 %v4670_v60, %s5824_s16  ;;  %v2654_v60 = vrot.slane %v2648_v12, 4 }
 0x306   : > { %2715 = vrot.lane.b32.xlu1 %v4671_v59, %s5824_s16 }
 0x308   : > { %2717 = vrot.lane.b32.xlu0 %v5828_v0, %s5824_s16  ;;  %s5839_s16 = smov 1  }
 0x30a   : > { %2783 = vperm.xlu1 %4793, %v2779_v4   ;;  %v2584_v4 = vrot.slane %v5314_v16, 4 }
 0x30c   : > { %2788 = vperm.xlu0 %4792, %v2780_v5   ;;  %v2511_v5 = vrot.slane %v5320_v17, 4 }
 0x30e   : > { %3087 = vperm.xlu1 %4793, %v3083_v8  }
 0x310   : > { %3092 = vperm.xlu0 %4792, %v3084_v9  }
 0x312   : > { %3201 = vperm.xlu1 %4793, %v3189_v10   ;;  %v2514_v10 = vrot.slane %v5322_v18, 4 }
 0x314   : > { %3206 = vperm.xlu0 %4792, %v3190_v11  }
 0x316   : > { %3753 = vrot.lane.b32.xlu1 %v5828_v0, %s4837_s19 }
 0x318   : > { %3759 = vrot.lane.b32.xlu0 %v5828_v0, %s4837_s19 }
 0x31a   : > { %3683 = vrot.lane.b32.xlu1 %v5828_v0, %s4836_s18 }
 0x31c   : > { %3689 = vrot.lane.b32.xlu0 %v5828_v0, %s4836_s18 }
 0x31e   : > { %3613 = vrot.lane.b32.xlu1 %v5828_v0, %s4815_s21 }
 0x320   : > { %3619 = vrot.lane.b32.xlu0 %v5828_v0, %s4815_s21 }
 0x328   : > { %v5324_v19 = vpop.permute.xlu1 %2391 }
 0x32a   : > { %v2640_v20 = vpop.permute.xlu0 %2639 }
 0x32b   : > { %v2650_v48 = vrot.slane %v2640_v20, 4 }
 0x32c   : > { %v5326_v21 = vpop.permute.xlu1 %2321 }
 0x32d   : > { %v2657_v62 = vsel %vm534_vm0, %v2650_v48, %v2651_v56 }
 0x32e   : > { %v2570_v22 = vpop.permute.xlu0 %2569  ;;  %v2658_v12 = vsel %vm1214_vm15, %v2640_v20, %v2657_v62 }
 0x32f   : > { %v2580_v58 = vrot.slane %v2570_v22, 4 }
 0x330   : > { %v5328_v23 = vpop.permute.xlu1 %2251 }
 0x331   : > { %v2587_v56 = vsel %vm534_vm0, %v2580_v58, %v2581_v3 }
 0x332   : > { %v5330_v24 = vpop.permute.xlu0 %2499 }
 0x333   : > { %v2510_v15 = vrot.slane %v5330_v24, 4 }
 0x334   : > { %v5332_v25 = vpop.permute.xlu1 %2181 }
 0x336   : > { %v5334_v26 = vpop.permute.xlu0 %2393 }
 0x338   : > { %v2638_v27 = vpop.permute.xlu1 %2637 }
 0x339   : > { %v2649_v57 = vrot.slane %v2638_v27, 4 }
 0x33a   : > { %v5336_v28 = vpop.permute.xlu0 %2323 }
 0x33b   : > { %v2655_v11 = vsel %vm534_vm0, %v2649_v57, %v2650_v48 }
 0x33c   : > { %v5338_v31 = vpop.permute.xlu1 %2567  ;;  %v2656_v18 = vsel %vm1214_vm15, %v2638_v27, %v2655_v11 }
 0x33d   : > { %v2579_v8 = vrot.slane %v5338_v31, 4 }
 0x33e   : > { %v5340_v32 = vpop.permute.xlu0 %2253 }
 0x33f   : > { %v2585_v48 = vsel %vm534_vm0, %v2579_v8, %v2580_v58 }
 0x340   : > { %v5342_v33 = vpop.permute.xlu1 %2497 }
 0x341   : > { %v2509_v57 = vrot.slane %v5342_v33, 4 }
 0x342   : > { %v5344_v34 = vpop.permute.xlu0 %2183 }
 0x343   : > { %v2194_v49 = vrot.slane %v5344_v34, 4 }
 0x344   : > { %v5346_v35 = vpop.permute.xlu1 %2395 }
 0x346   : > { %v5348_v36 = vpop.permute.xlu0 %2709 }
 0x348   : > { %v5350_v39 = vpop.permute.xlu1 %2325 }
 0x34a   : > { %v5352_v40 = vpop.permute.xlu0 %2397 }
 0x34c   : > { %v5354_v41 = vpop.permute.xlu1 %2255 }
 0x34e   : > { %v5356_v43 = vpop.permute.xlu0 %2327 }
 0x350   : > { %v5358_v44 = vpop.permute.xlu1 %2185 }
 0x352   : > { %v5360_v42 = vpop.permute.xlu0 %2257 }
 0x354   : > { %v5362_v47 = vpop.permute.xlu1 %2707 }
 0x356   : > { %v5364_v55 = vpop.permute.xlu0 %2187 }
 0x358   : > { %v2646_v59 = vpop.permute.xlu1 %2645 }
 0x359   : > { %v2653_v2 = vrot.slane %v2646_v59, 4 }
 0x35a   : > { %v2644_v9 = vpop.permute.xlu0 %2643 }
 0x35b   : > { %v2661_v6 = vsel %vm534_vm0, %v2653_v2, %v2654_v60  ;;  %v2652_v0 = vrot.slane %v2644_v9, 4 }
 0x35c   : > { %v2662_v16 = vsel %vm1214_vm15, %v2646_v59, %v2661_v6  ;;  %v2576_v7 = vpop.permute.xlu1 %2575  ;;  %v2588_v6 = vsel %vm1173_vm14, %v2570_v22, %v2587_v56  ;;  %v2515_v22 = vsel %vm534_vm0, %v2509_v57, %v2510_v15 }
 0x35d   : > { %v4464_v17 = vcombine.low %v2658_v12, %v2662_v16  ;;  %v4465_v61 = vcombine.high %v2658_v12, %v2662_v16  ;;  %v2659_v52 = vsel %vm534_vm0, %v2652_v0, %v2653_v2  ;;  %v2583_v51 = vrot.slane %v2576_v7, 4 }
 0x35e   : > { %v2660_v20 = vsel %vm1214_vm15, %v2644_v9, %v2659_v52  ;;  %v2574_v60 = vpop.permute.xlu0 %2573  ;;  %v2517_v0 = vsel %vm534_vm0, %v2510_v15, %v2511_v5  ;;  %v2404_v2 = vrot.slane %v5334_v26, 4 }
 0x35f   : > { %v4462_v62 = vcombine.low %v2656_v18, %v2660_v20  ;;  %v4463_v3 = vcombine.high %v2656_v18, %v2660_v20  ;;  %v2591_v54 = vsel %vm534_vm0, %v2583_v51, %v2584_v4  ;;  %v2582_v59 = vrot.slane %v2574_v60, 4  ;;  %3026 = vmatprep.subr.bf16.mxu1 %v4465_v61 }
 0x360   : > { %v2592_v27 = vsel %vm1173_vm14, %v2576_v7, %v2591_v54  ;;  %3027 = vmatpush1.bf16.msra.mxu1 %v4464_v17  ;;  %v2506_v58 = vpop.permute.xlu1 %2505  ;;  %v2334_v4 = vrot.slane %v5336_v28, 4  ;;  %v2586_v61 = vsel %vm1173_vm14, %v5338_v31, %v2585_v48  ;;  %v2333_v17 = vrot.slane %v5326_v21, 4 }
 0x361   : > { %v4460_v8 = vcombine.low %v2588_v6, %v2592_v27  ;;  %v4461_v11 = vcombine.high %v2588_v6, %v2592_v27  ;;  %v2589_v52 = vsel %vm534_vm0, %v2582_v59, %v2583_v51  ;;  %v2513_v9 = vrot.slane %v2506_v58, 4  ;;  %2983 = vmatprep.subr.bf16.mxu0 %v4463_v3 }
 0x362   : > { %v2590_v5 = vsel %vm1173_vm14, %v2574_v60, %v2589_v52  ;;  %v2504_v12 = vpop.permute.xlu0 %2503  ;;  %2984 = vmatpush1.bf16.msra.mxu0 %v4462_v62  ;;  %v2403_v51 = vrot.slane %v5324_v19, 4  ;;  %v2518_v18 = vsel %vm1050_vm3, %v5330_v24, %v2517_v0  ;;  %v2405_v48 = vrot.slane %v5346_v35, 4 }
 0x363   : > { %v4458_v7 = vcombine.low %v2586_v61, %v2590_v5  ;;  %v4459_v54 = vcombine.high %v2586_v61, %v2590_v5  ;;  %v2521_v56 = vsel %vm534_vm0, %v2513_v9, %v2514_v10  ;;  %v2512_v16 = vrot.slane %v2504_v12, 4  ;;  %3028 = vmatprep.subr.bf16.mxu1 %v4461_v11 }
 0x364   : > { %v2522_v31 = vsel %vm1050_vm3, %v2506_v58, %v2521_v56  ;;  %3029 = vmatpush1.bf16.msra.mxu1 %v4460_v8  ;;  %v5399_v15 = vpop.permute.xlu1 %2711  ;;  %v2409_v60 = vsel %vm534_vm0, %v2403_v51, %v2404_v2  ;;  %v2264_v62 = vrot.slane %v5340_v32, 4  ;;  %v2516_v3 = vsel %vm1050_vm3, %v5342_v33, %v2515_v22 }
 0x365   : > { %v4456_v57 = vcombine.low %v2518_v18, %v2522_v31  ;;  %v4457_v20 = vcombine.high %v2518_v18, %v2522_v31  ;;  %v2519_v10 = vsel %vm534_vm0, %v2512_v16, %v2513_v9  ;;  %2985 = vmatprep.subr.bf16.mxu0 %v4459_v54  ;;  %v2339_v6 = vsel %vm534_vm0, %v2333_v17, %v2334_v4 }
 0x366   : > { %v2520_v24 = vsel %vm1050_vm3, %v2504_v12, %v2519_v10  ;;  %v2402_v59 = vpop.permute.xlu0 %2401  ;;  %2986 = vmatpush1.bf16.msra.mxu0 %v4458_v7  ;;  %v2335_v35 = vrot.slane %v5350_v39, 4  ;;  %v2263_v58 = vrot.slane %v5328_v23, 4  ;;  %v2411_v11 = vsel %vm534_vm0, %v2404_v2, %v2405_v48 }
 0x367   : > { %v4454_v0 = vcombine.low %v2516_v3, %v2520_v24  ;;  %v4455_v27 = vcombine.high %v2516_v3, %v2520_v24  ;;  %3030 = vmatprep.subr.bf16.mxu1 %v4457_v20  ;;  %v2406_v52 = vrot.slane %v5352_v40, 4  ;;  %v2408_v33 = vrot.slane %v2402_v59, 4 }
 0x368   : > { %3031 = vmatpush1.bf16.msra.mxu1 %v4456_v57  ;;  %v2400_v8 = vpop.permute.xlu1 %2399  ;;  %v2193_v39 = vrot.slane %v5332_v25, 4  ;;  %v2269_v61 = vsel %vm534_vm0, %v2263_v58, %v2264_v62  ;;  %v2410_v5 = vsel %vm987_vm6, %v5324_v19, %v2409_v60  ;;  %v2340_v2 = vsel %vm864_vm7, %v5326_v21, %v2339_v6 }
 0x369   : > { %v2407_v9 = vrot.slane %v2400_v8, 4  ;;  %2987 = vmatprep.subr.bf16.mxu0 %v4455_v27  ;;  %3032 = vmatprep.subr.bf16.mxu1 %v4751_v53  ;;  %v2341_v12 = vsel %vm534_vm0, %v2334_v4, %v2335_v35  ;;  %v2265_v7 = vrot.slane %v5354_v41, 4  ;;  %v2336_v53 = vrot.slane %v5356_v43, 4 }
 0x36a   : > { %v2332_v22 = vpop.permute.xlu0 %2331  ;;  %2988 = vmatpush1.bf16.msra.mxu0 %v4454_v0  ;;  %v2412_v19 = vsel %vm987_vm6, %v5334_v26, %v2411_v11  ;;  %v5835_v21 = vpack.c.bf16 %v5200_v46, %v5175_v30  ;;  %v2342_v18 = vsel %vm864_vm7, %v5336_v28, %v2341_v12  ;;  %v5836_v31 = vpack.c.bf16 %v5197_v45, %v5172_v29 }
 0x36b   : > { %v2413_v54 = vsel %vm534_vm0, %v2406_v52, %v2407_v9  ;;  %v2415_v38 = vsel %vm534_vm0, %v2407_v9, %v2408_v33  ;;  %2989 = vmatprep.subr.bf16.mxu0 %v5834_v50  ;;  %v2338_v17 = vrot.slane %v2332_v22, 4  ;;  %v2270_v46 = vsel %vm823_vm10, %v5328_v23, %v2269_v61 }
 0x36c   : > { %v2416_v56 = vsel %vm987_vm6, %v2400_v8, %v2415_v38  ;;  %3033 = vmatpush1.bf16.msra.mxu1 %v5835_v21  ;;  %v2330_v41 = vpop.permute.xlu1 %2329  ;;  %v2414_v4 = vsel %vm987_vm6, %v5352_v40, %v2413_v54  ;;  %v2271_v40 = vsel %vm534_vm0, %v2264_v62, %v2265_v7  ;;  %v2195_v48 = vrot.slane %v5358_v44, 4 }
 0x36d   : > { %v4448_v16 = vcombine.low %v2412_v19, %v2416_v56  ;;  %v4449_v51 = vcombine.high %v2412_v19, %v2416_v56  ;;  %v2337_v37 = vrot.slane %v2330_v41, 4  ;;  %v4447_v30 = vcombine.high %v2410_v5, %v2414_v4 }
 0x36e   : > { %v2262_v26 = vpop.permute.xlu0 %2261  ;;  %2990 = vmatpush1.bf16.msra.mxu0 %v5836_v31  ;;  %v2266_v28 = vrot.slane %v5360_v42, 4  ;;  %v4446_v60 = vcombine.low %v2410_v5, %v2414_v4  ;;  %v2199_v24 = vsel %vm534_vm0, %v2193_v39, %v2194_v49  ;;  %v2720_v59 = vrot.slane %v5348_v36, 4 }
 0x36f   : > { %v2343_v57 = vsel %vm534_vm0, %v2336_v53, %v2337_v37  ;;  %v2345_v20 = vsel %vm534_vm0, %v2337_v37, %v2338_v17  ;;  %3034 = vmatprep.subr.bf16.mxu1 %v4449_v51  ;;  %2991 = vmatprep.subr.bf16.mxu0 %v4447_v30  ;;  %v2268_v3 = vrot.slane %v2262_v26, 4  ;;  %v2272_v6 = vsel %vm823_vm10, %v5340_v32, %v2271_v40 }
 0x370   : > { %v2346_v10 = vsel %vm864_vm7, %v2330_v41, %v2345_v20  ;;  %3035 = vmatpush1.bf16.msra.mxu1 %v4448_v16  ;;  %v2260_v29 = vpop.permute.xlu1 %2259  ;;  %v2344_v45 = vsel %vm864_vm7, %v5356_v43, %v2343_v57  ;;  %v2201_v27 = vsel %vm534_vm0, %v2194_v49, %v2195_v48  ;;  %v2719_v58 = vrot.slane %v5362_v47, 4 }
 0x371   : > { %v4444_v23 = vcombine.low %v2342_v18, %v2346_v10  ;;  %v4445_v62 = vcombine.high %v2342_v18, %v2346_v10  ;;  %v2267_v44 = vrot.slane %v2260_v29, 4  ;;  %v4443_v0 = vcombine.high %v2340_v2, %v2344_v45 }
 0x372   : > { %v2192_v35 = vpop.permute.xlu0 %2191  ;;  %2992 = vmatpush1.bf16.msra.mxu0 %v4446_v60  ;;  %v2196_v11 = vrot.slane %v5364_v55, 4  ;;  %v4442_v33 = vcombine.low %v2340_v2, %v2344_v45  ;;  %v2202_v12 = vsel %vm782_vm9, %v5344_v34, %v2201_v27  ;;  %v2200_v38 = vsel %vm782_vm9, %v5332_v25, %v2199_v24 }
 0x373   : > { %v2273_v43 = vsel %vm534_vm0, %v2266_v28, %v2267_v44  ;;  %v2275_v8 = vsel %vm534_vm0, %v2267_v44, %v2268_v3  ;;  %3036 = vmatprep.subr.bf16.mxu1 %v4445_v62  ;;  %2993 = vmatprep.subr.bf16.mxu0 %v4443_v0  ;;  %v2198_v22 = vrot.slane %v2192_v35, 4  ;;  %v2725_v2 = vsel %vm534_vm0, %v2719_v58, %v2720_v59 }
 0x374   : > { %v2276_v52 = vsel %vm823_vm10, %v2260_v29, %v2275_v8  ;;  %3037 = vmatpush1.bf16.msra.mxu1 %v4444_v23  ;;  %v2190_v32 = vpop.permute.xlu1 %2189  ;;  %v2274_v9 = vsel %vm823_vm10, %v5360_v42, %v2273_v43  ;;  %v2721_v50 = vrot.slane %v5399_v15, 4  ;;  %v2726_v18 = vsel %vm1255_vm12, %v5362_v47, %v2725_v2  ;;  %v4800_v47 = vld [vmem:[%s5811_s8] ss:$8 sps:$4 sm:$0xff]  }
 0x375   : > { %v4440_v39 = vcombine.low %v2272_v6, %v2276_v52  ;;  %v4441_v61 = vcombine.high %v2272_v6, %v2276_v52  ;;  %v2197_v5 = vrot.slane %v2190_v32, 4  ;;  %v4439_v54 = vcombine.high %v2270_v46, %v2274_v9 }
 0x376   : > { %v2714_v7 = vpop.permute.xlu0 %2713  ;;  %2994 = vmatpush1.bf16.msra.mxu0 %v4442_v33  ;;  %v4438_v56 = vcombine.low %v2270_v46, %v2274_v9  ;;  %v2727_v17 = vsel %vm534_vm0, %v2720_v59, %v2721_v50  ;;  %v5837_v28 = vmov 0  }
 0x377   : > { %v2203_v53 = vsel %vm534_vm0, %v2196_v11, %v2197_v5  ;;  %v2205_v42 = vsel %vm534_vm0, %v2197_v5, %v2198_v22  ;;  %3038 = vmatprep.subr.bf16.mxu1 %v4441_v61  ;;  %2995 = vmatprep.subr.bf16.mxu0 %v4439_v54  ;;  %v2722_v4 = vrot.slane %v2714_v7, 4  ;;  %v2728_v46 = vsel %vm1255_vm12, %v5348_v36, %v2727_v17 }
 0x378   : > { %v2206_v19 = vsel %vm782_vm9, %v2190_v32, %v2205_v42  ;;  %3039 = vmatpush1.bf16.msra.mxu1 %v4440_v39  ;;  %v2716_v34 = vpop.permute.xlu1 %2715  ;;  %v2204_v21 = vsel %vm782_vm9, %v5364_v55, %v2203_v53 }
 0x379   : > { %v4436_v41 = vcombine.low %v2202_v12, %v2206_v19  ;;  %v4437_v25 = vcombine.high %v2202_v12, %v2206_v19  ;;  %v2723_v16 = vrot.slane %v2716_v34, 4  ;;  %v4435_v15 = vcombine.high %v2200_v38, %v2204_v21  ;;  %v3191_v19 = vld [vmem:[%s5143_s28 + $0x60] sm:$0xff] }
 0x37a   : > { %v2718_v51 = vpop.permute.xlu0 %2717  ;;  %2996 = vmatpush1.bf16.msra.mxu0 %v4438_v56  ;;  %v4434_v26 = vcombine.low %v2200_v38, %v2204_v21  ;;  %v4801_v38 = vld [vmem:[%s5813_s10] sm:$0xff]  }
 0x37b   : > { %v2729_v37 = vsel %vm534_vm0, %v2722_v4, %v2723_v16  ;;  %v2724_v49 = vrot.slane %v2718_v51, 4  ;;  %3040 = vmatprep.subr.bf16.mxu1 %v4437_v25  ;;  %2997 = vmatprep.subr.bf16.mxu0 %v4435_v15  ;;  %v3192_v51 = vld [vmem:[%s5143_s28 + $0x68] sm:$0xff]  ;;  %v3194_v15 = vld [vmem:[%s5143_s28 + $0x78] sm:$0xff] }
 0x37c   : > { %3041 = vmatpush1.bf16.msra.mxu1 %v4436_v41  ;;  %v2730_v55 = vsel %vm1255_vm12, %v2714_v7, %v2729_v37 }
 0x37d   : > { %v2731_v31 = vsel %vm534_vm0, %v2723_v16, %v2724_v49  ;;  %v4467_v30 = vcombine.high %v2726_v18, %v2730_v55  ;;  %v4466_v20 = vcombine.low %v2726_v18, %v2730_v55 }
 0x37e   : > { %2998 = vmatpush1.bf16.msra.mxu0 %v4434_v26  ;;  %v2732_v40 = vsel %vm1255_vm12, %v2716_v34, %v2731_v31  ;;  %v3193_v34 = vld [vmem:[%s5143_s28 + $0x70] sm:$0xff] }
 0x37f   : > { %3013 = vmatprep.subr.bf16.mxu0 %v4467_v30  ;;  %v4468_v48 = vcombine.low %v2728_v46, %v2732_v40  ;;  %v4469_v57 = vcombine.high %v2728_v46, %v2732_v40  ;;  %v3195_v46 = vld [vmem:[%s5143_s28 + $0x80] sm:$0xff]  ;;  %v3197_v40 = vld [vmem:[%s5143_s28 + $0x90] sm:$0xff] }
 0x381   : > { %3056 = vmatprep.subr.bf16.mxu1 %v4469_v57 }
 0x382   : > { %3014 = vmatpush2.bf16.msra.mxu0 %v4466_v20  ;;  %3057 = vmatpush2.bf16.msra.mxu1 %v4468_v48 }
 0x385   : > { %3016 = vmatmul.mubr.bf16.vlgmr.msra.gmra.mxu0 %v4800_v47  ;;  %3059 = vmatmul.mubr.bf16.vlgmr.msra.gmra.mxu1 %v4800_v47  ;;  %v2784_v45 = vpop.permute.xlu1 %2783 }
 0x386   : > { %3135 = vmatprep.mubr.bf16.mxu0 %v5837_v28  ;;  %3178 = vmatprep.mubr.bf16.mxu1 %v5837_v28 }
 0x387   : > { %v2789_v23 = vpop.permute.xlu0 %2788 }
 0x389   : > { %v3088_v2 = vpop.permute.xlu1 %3087 }
 0x38b   : > { %v3093_v50 = vpop.permute.xlu0 %3092 }
 0x38d   : > { %v3202_v53 = vpop.permute.xlu1 %3201 }
 0x38e   : > { %v3209_v25 = vmul.f32 %v3202_v53, %v3191_v19  ;;  %v3211_v16 = vmul.f32 %v3202_v53, %v3193_v34  ;;  %v3210_v37 = vmul.f32 %v3202_v53, %v3192_v51  ;;  %v3212_v18 = vmul.f32 %v3202_v53, %v3194_v15 }
 0x38f   : > { %v3207_v21 = vpop.permute.xlu0 %3206  ;;  %v5844_v15 = vmov 0.0|0.0  }
 0x390   : > { %v3213_v57 = vmul.f32 %v3207_v21, %v3195_v46  ;;  %v3215_v47 = vmul.f32 %v3207_v21, %v3197_v40 }
 0x445   : > { %v3017_v36 = vpop.f32.mrf.mxu0  ;;  %v3060_v10 = vpop.f32.mrf.mxu1 }
 0x446   : > { %v3018_v35 = vadd.f32 %v3017_v36, %v2784_v45  ;;  %v3061_v0 = vadd.f32 %v3060_v10, %v2784_v45 }
 0x447   : > { %v3019_v60 = vpop.f32.mrf.mxu0  ;;  %v3062_v29 = vpop.f32.mrf.mxu1 }
 0x448   : > { %v3020_v44 = vadd.f32 %v3019_v60, %v2784_v45  ;;  %v3063_v24 = vadd.f32 %v3062_v29, %v2784_v45  ;;  %v3069_v61 = vmax.f32 %v3018_v35, 0.0  ;;  %v3071_v22 = vmax.f32 %v3061_v0, 0.0  ;;  %v3196_v29 = vld [vmem:[%s5143_s28 + $0x88] sm:$0xff]  ;;  %v3198_v45 = vld [vmem:[%s5143_s28 + $0x98] sm:$0xff]  ;;  %s5840_s28 = smov 19  }
 0x449   : > { %v3021_v62 = vpop.f32.mrf.mxu0  ;;  %v3064_v3 = vpop.f32.mrf.mxu1 }
 0x44a   : > { %v3022_v59 = vadd.f32 %v3021_v62, %v2789_v23  ;;  %v3065_v6 = vadd.f32 %v3064_v3, %v2789_v23  ;;  %v3070_v33 = vmax.f32 %v3020_v44, 0.0  ;;  %v3072_v32 = vmax.f32 %v3063_v24, 0.0 }
 0x44b   : > { %v3023_v27 = vpop.f32.mrf.mxu0  ;;  %v3066_v58 = vpop.f32.mrf.mxu1  ;;  %v3214_v44 = vmul.f32 %v3207_v21, %v3196_v29 }
 0x44c   : > { %v3024_v43 = vadd.f32 %v3023_v27, %v2789_v23  ;;  %v3067_v8 = vadd.f32 %v3066_v58, %v2789_v23  ;;  %v3073_v11 = vmax.f32 %v3022_v59, 0.0  ;;  %v3075_v52 = vmax.f32 %v3065_v6, 0.0 }
 0x44d   : > { %v3216_v59 = vmul.f32 %v3207_v21, %v3198_v45 }
 0x44e   : > { %v3074_v9 = vmax.f32 %v3024_v43, 0.0  ;;  %v3076_v39 = vmax.f32 %v3067_v8, 0.0  ;;  %v3079_v7 = vpack.c.bf16 %v3073_v11, %v3069_v61  ;;  %v3081_v54 = vpack.c.bf16 %v3075_v52, %v3071_v22 }
 0x450   : > { %v3080_v5 = vpack.c.bf16 %v3074_v9, %v3070_v33  ;;  %v3082_v12 = vpack.c.bf16 %v3076_v39, %v3072_v32  ;;  %v5838_v32 = vmov 0.0  }
 0x452   : > { %3117 = vmatprep.subr.bf16.mxu0 %v3080_v5  ;;  %3160 = vmatprep.subr.bf16.mxu1 %v3082_v12 }
 0x453   : > { %3118 = vmatpush1.bf16.msra.mxu0 %v3079_v7  ;;  %3161 = vmatpush1.bf16.msra.mxu1 %v3081_v54 }
 0x456   : > { %4473 = vmatmul.mubr.msk.bf16.vlgmr.msra.gmra.mxu0 %vm1966_vm1, %v4801_v38  ;;  %4474 = vmatmul.mubr.msk.bf16.vlgmr.msra.gmra.mxu1 %vm1966_vm1, %v4801_v38 }
 0x516   : > { %v3137_v42 = vpop.f32.mrf.mxu0  ;;  %v3180_v56 = vpop.f32.mrf.mxu1 }
 0x517   : > { %v3138_v41 = vadd.f32 %v3137_v42, %v3088_v2  ;;  %v3181_v4 = vadd.f32 %v3180_v56, %v3088_v2 }
 0x518   : > { %v3139_v17 = vpop.f32.mrf.mxu0  ;;  %v3182_v49 = vpop.f32.mrf.mxu1 }
 0x519   : > { %v3217_v26 = vadd.f32 %v3209_v25, %v3138_v41  ;;  %v3219_v55 = vadd.f32 %v3211_v16, %v3181_v4  ;;  %v3140_v31 = vadd.f32 %v3139_v17, %v3088_v2  ;;  %v3183_v30 = vadd.f32 %v3182_v49, %v3088_v2  ;;  %v5615_v49 = vld [vmem:[%s5816_s13] sm:$0xff] }
 0x51a   : > { %v3141_v48 = vpop.f32.mrf.mxu0  ;;  %v3184_v20 = vpop.f32.mrf.mxu1 }
 0x51b   : > { %v3225_v28 = vmax.f32 %v3217_v26, 0.0  ;;  %v3227_v36 = vmax.f32 %v3219_v55, 0.0  ;;  %v3218_v10 = vadd.f32 %v3210_v37, %v3140_v31  ;;  %v3220_v60 = vadd.f32 %v3212_v18, %v3183_v30  ;;  %v3754_v26 = vpop.permute.xlu1 %3753  ;;  %v3760_v55 = vpop.permute.xlu0 %3759 }
 0x51c   : > { %v3142_v23 = vadd.f32 %v3141_v48, %v3093_v50  ;;  %v3185_v62 = vadd.f32 %v3184_v20, %v3093_v50  ;;  %v3143_v3 = vpop.f32.mrf.mxu0  ;;  %v3186_v24 = vpop.f32.mrf.mxu1  ;;  %v4528_v18 = vcombine.high %v5615_v49, %v5615_v49 }
 0x51d   : > { %v5505_v6 = vmul.f32 %v3225_v28, %v5154_v63  ;;  %v5508_v35 = vmul.f32 %v3227_v36, %v5156_v1  ;;  %v3226_v0 = vmax.f32 %v3218_v10, 0.0  ;;  %v3228_v27 = vmax.f32 %v3220_v60, 0.0 }
 0x51e   : > { %v3221_v58 = vadd.f32 %v3213_v57, %v3142_v23  ;;  %v3223_v43 = vadd.f32 %v3215_v47, %v3185_v62  ;;  %v3144_v8 = vadd.f32 %v3143_v3, %v3093_v50  ;;  %v3187_v11 = vadd.f32 %v3186_v24, %v3093_v50  ;;  %4565 = vmatprep.mubr.msk.bf16.mxu0 %vm1966_vm1, %v4528_v18 }
 0x51f   : > { %v5511_v52 = vmul.f32 %v3226_v0, %v5160_v13  ;;  %v5514_v33 = vmul.f32 %v3228_v27, %v5162_v14  ;;  %3241 = vst [vmem:[%s5169_s15 + $0x60] sm:$0xff] %v5505_v6  ;;  %3243 = vst [vmem:[%s5169_s15 + $0x70] sm:$0xff] %v5508_v35  ;;  %v4696_v9 = vpack.c.bf16 %v5505_v6, %v5838_v32  ;;  %4566 = vmatprep.mubr.msk.bf16.mxu1 %vm1966_vm1, %v4528_v18  ;;  %v3684_v31 = vpop.permute.xlu1 %3683  ;;  %v3690_v30 = vpop.permute.xlu0 %3689 }
 0x520   : > { %v3229_v39 = vmax.f32 %v3221_v58, 0.0  ;;  %v3231_v61 = vmax.f32 %v3223_v43, 0.0  ;;  %v3222_v22 = vadd.f32 %v3214_v44, %v3144_v8  ;;  %v3224_v5 = vadd.f32 %v3216_v59, %v3187_v11 }
 0x521   : > { %3242 = vst [vmem:[%s5169_s15 + $0x68] sm:$0xff] %v5511_v52  ;;  %3244 = vst [vmem:[%s5169_s15 + $0x78] sm:$0xff] %v5514_v33  ;;  %3503 = vrot.lane.b32.xlu1 %v4696_v9, %s5839_s16  ;;  %v4721_v12 = vpack.c.bf16 %v5514_v33, %v5508_v35  ;;  %v4697_v21 = vpack.c.bf16 %v5508_v35, %v5511_v52  ;;  %v4720_v41 = vpack.c.bf16 %v5511_v52, %v5505_v6 }
 0x522   : > { %v5530_v7 = vmul.f32 %v3229_v39, %v5154_v63  ;;  %v5533_v54 = vmul.f32 %v3231_v61, %v5156_v1  ;;  %v3230_v38 = vmax.f32 %v3222_v22, 0.0  ;;  %v3232_v2 = vmax.f32 %v3224_v5, 0.0 }
 0x523   : > { %3751 = vrot.lane.b32.xlu0 %v4721_v12, %s4837_s19  ;;  %v4698_v25 = vpack.c.bf16 %v5514_v33, %v5514_v33  ;;  %v5625_v46 = vpop.permute.xlu1 %3613  ;;  %v5627_v40 = vpop.permute.xlu0 %3619  ;;  %v3763_v61 = vrot.slane %v3754_v26, 4 }
 0x524   : > { %v5537_v50 = vmul.f32 %v3230_v38, %v5160_v13  ;;  %v5540_v53 = vmul.f32 %v3232_v2, %v5162_v14  ;;  %3245 = vst [vmem:[%s5169_s15 + $0x80] sm:$0xff] %v5530_v7  ;;  %3247 = vst [vmem:[%s5169_s15 + $0x90] sm:$0xff] %v5533_v54  ;;  %v4699_v4 = vpack.c.bf16 %v5530_v7, %v5838_v32  ;;  %v3766_v38 = vrot.slane %v3760_v55, 4 }
 0x525   : > { %3433 = vrot.lane.b32.xlu1 %v4696_v9, %s5840_s28 }
 0x526   : > { %3246 = vst [vmem:[%s5169_s15 + $0x88] sm:$0xff] %v5537_v50  ;;  %3248 = vst [vmem:[%s5169_s15 + $0x98] sm:$0xff] %v5540_v53  ;;  %v4723_v16 = vpack.c.bf16 %v5540_v53, %v5533_v54  ;;  %v4722_v51 = vpack.c.bf16 %v5537_v50, %v5530_v7  ;;  %v4701_v17 = vpack.c.bf16 %v5540_v53, %v5540_v53 }
 0x527   : > { %3681 = vrot.lane.b32.xlu0 %v4721_v12, %s4836_s18  ;;  %v4700_v37 = vpack.c.bf16 %v5533_v54, %v5537_v50 }
 0x529   : > { %3363 = vrot.lane.b32.xlu1 %v4696_v9, %s5841_s25 }
 0x52b   : > { %3611 = vrot.lane.b32.xlu0 %v4721_v12, %s4815_s21 }
 0x52d   : > { %3293 = vrot.lane.b32.xlu1 %v4696_v9, %s5842_s30 }
 0x52f   : > { %3505 = vrot.lane.b32.xlu0 %v4697_v21, %s5839_s16 }
 0x531   : > { %3749 = vrot.lane.b32.xlu1 %v4720_v41, %s4837_s19 }
 0x533   : > { %3435 = vrot.lane.b32.xlu0 %v4697_v21, %s5840_s28 }
 0x535   : > { %3679 = vrot.lane.b32.xlu1 %v4720_v41, %s4836_s18 }
 0x537   : > { %3365 = vrot.lane.b32.xlu0 %v4697_v21, %s5841_s25 }
 0x539   : > { %3609 = vrot.lane.b32.xlu1 %v4720_v41, %s4815_s21 }
 0x53b   : > { %3295 = vrot.lane.b32.xlu0 %v4697_v21, %s5842_s30 }
 0x53d   : > { %3507 = vrot.lane.b32.xlu1 %v4698_v25, %s5839_s16 }
 0x53f   : > { %3821 = vrot.lane.b32.xlu0 %v4721_v12, %s5843_s20 }
 0x541   : > { %3437 = vrot.lane.b32.xlu1 %v4698_v25, %s5840_s28 }
 0x543   : > { %3509 = vrot.lane.b32.xlu0 %v4699_v4, %s5839_s16 }
 0x545   : > { %3367 = vrot.lane.b32.xlu1 %v4698_v25, %s5841_s25 }
 0x547   : > { %3439 = vrot.lane.b32.xlu0 %v4699_v4, %s5840_s28 }
 0x549   : > { %3297 = vrot.lane.b32.xlu1 %v4698_v25, %s5842_s30  ;;  %v3696_v25 = vrot.slane %v3690_v30, 4 }
 0x54b   : > { %3369 = vrot.lane.b32.xlu0 %v4699_v4, %s5841_s25 }
 0x54d   : > { %3819 = vrot.lane.b32.xlu1 %v4720_v41, %s5843_s20  ;;  %v3693_v41 = vrot.slane %v3684_v31, 4 }
 0x54f   : > { %3299 = vrot.lane.b32.xlu0 %v4699_v4, %s5842_s30  ;;  %v3623_v4 = vrot.slane %v5625_v46, 4 }
 0x551   : > { %3757 = vrot.lane.b32.xlu1 %v4723_v16, %s4837_s19 }
 0x553   : > { %3755 = vrot.lane.b32.xlu0 %v4722_v51, %s4837_s19 }
 0x555   : > { %3687 = vrot.lane.b32.xlu1 %v4723_v16, %s4836_s18 }
 0x557   : > { %3685 = vrot.lane.b32.xlu0 %v4722_v51, %s4836_s18 }
 0x559   : > { %3617 = vrot.lane.b32.xlu1 %v4723_v16, %s4815_s21 }
 0x55b   : > { %3615 = vrot.lane.b32.xlu0 %v4722_v51, %s4815_s21 }
 0x55d   : > { %3823 = vrot.lane.b32.xlu1 %v5844_v15, %s5843_s20 }
 0x55f   : > { %3513 = vrot.lane.b32.xlu0 %v4701_v17, %s5839_s16 }
 0x561   : > { %3511 = vrot.lane.b32.xlu1 %v4700_v37, %s5839_s16 }
 0x563   : > { %3443 = vrot.lane.b32.xlu0 %v4701_v17, %s5840_s28 }
 0x565   : > { %3441 = vrot.lane.b32.xlu1 %v4700_v37, %s5840_s28 }
 0x567   : > { %3373 = vrot.lane.b32.xlu0 %v4701_v17, %s5841_s25 }
 0x569   : > { %3371 = vrot.lane.b32.xlu1 %v4700_v37, %s5841_s25 }
 0x56b   : > { %3303 = vrot.lane.b32.xlu0 %v4701_v17, %s5842_s30 }
 0x56d   : > { %3301 = vrot.lane.b32.xlu1 %v4700_v37, %s5842_s30 }
 0x56f   : > { %3825 = vrot.lane.b32.xlu0 %v4722_v51, %s5843_s20 }
 0x571   : > { %3827 = vrot.lane.b32.xlu1 %v4723_v16, %s5843_s20 }
 0x573   : > { %3829 = vrot.lane.b32.xlu0 %v5844_v15, %s5843_s20  ;;  %v3626_v15 = vrot.slane %v5627_v40, 4 }
 0x593   : > { %v5629_v48 = vpop.permute.xlu1 %3503 }
 0x595   : > { %v3752_v57 = vpop.permute.xlu0 %3751 }
 0x596   : > { %v3762_v9 = vrot.slane %v3752_v57, 4 }
 0x597   : > { %v5631_v20 = vpop.permute.xlu1 %3433 }
 0x598   : > { %v3769_v2 = vsel %vm534_vm0, %v3762_v9, %v3763_v61 }
 0x599   : > { %v3682_v47 = vpop.permute.xlu0 %3681  ;;  %v3770_v26 = vsel %vm1214_vm15, %v3752_v57, %v3769_v2 }
 0x59a   : > { %v3692_v5 = vrot.slane %v3682_v47, 4 }
 0x59b   : > { %v5633_v28 = vpop.permute.xlu1 %3363 }
 0x59c   : > { %v3699_v55 = vsel %vm534_vm0, %v3692_v5, %v3693_v41 }
 0x59d   : > { %v5635_v36 = vpop.permute.xlu0 %3611 }
 0x59e   : > { %v3622_v61 = vrot.slane %v5635_v36, 4 }
 0x59f   : > { %v5637_v10 = vpop.permute.xlu1 %3293 }
 0x5a1   : > { %v5639_v60 = vpop.permute.xlu0 %3505 }
 0x5a3   : > { %v3750_v29 = vpop.permute.xlu1 %3749 }
 0x5a4   : > { %v3761_v22 = vrot.slane %v3750_v29, 4 }
 0x5a5   : > { %v5641_v45 = vpop.permute.xlu0 %3435 }
 0x5a6   : > { %v3767_v17 = vsel %vm534_vm0, %v3761_v22, %v3762_v9 }
 0x5a7   : > { %v5643_v23 = vpop.permute.xlu1 %3679  ;;  %v3768_v40 = vsel %vm1214_vm15, %v3750_v29, %v3767_v17 }
 0x5a8   : > { %v3691_v16 = vrot.slane %v5643_v23, 4 }
 0x5a9   : > { %v5645_v62 = vpop.permute.xlu0 %3365 }
 0x5aa   : > { %v3697_v9 = vsel %vm534_vm0, %v3691_v16, %v3692_v5 }
 0x5ab   : > { %v5647_v3 = vpop.permute.xlu1 %3609 }
 0x5ac   : > { %v3621_v22 = vrot.slane %v5647_v3, 4 }
 0x5ad   : > { %v5649_v44 = vpop.permute.xlu0 %3295 }
 0x5af   : > { %v5651_v24 = vpop.permute.xlu1 %3507 }
 0x5b1   : > { %v5653_v59 = vpop.permute.xlu0 %3821 }
 0x5b3   : > { %v5655_v0 = vpop.permute.xlu1 %3437 }
 0x5b5   : > { %v5657_v27 = vpop.permute.xlu0 %3509 }
 0x5b7   : > { %v5659_v58 = vpop.permute.xlu1 %3367 }
 0x5b9   : > { %v5661_v43 = vpop.permute.xlu0 %3439 }
 0x5bb   : > { %v5663_v8 = vpop.permute.xlu1 %3297 }
 0x5bd   : > { %v5665_v11 = vpop.permute.xlu0 %3369 }
 0x5bf   : > { %v5667_v32 = vpop.permute.xlu1 %3819 }
 0x5c1   : > { %v5669_v39 = vpop.permute.xlu0 %3299 }
 0x5c3   : > { %v3758_v12 = vpop.permute.xlu1 %3757 }
 0x5c4   : > { %v3765_v21 = vrot.slane %v3758_v12, 4 }
 0x5c5   : > { %v3756_v51 = vpop.permute.xlu0 %3755 }
 0x5c6   : > { %v3773_v37 = vsel %vm534_vm0, %v3765_v21, %v3766_v38  ;;  %v3764_v18 = vrot.slane %v3756_v51, 4 }
 0x5c7   : > { %v3774_v31 = vsel %vm1214_vm15, %v3758_v12, %v3773_v37  ;;  %v3688_v30 = vpop.permute.xlu1 %3687  ;;  %v3700_v37 = vsel %vm1173_vm14, %v3682_v47, %v3699_v55  ;;  %v3627_v47 = vsel %vm534_vm0, %v3621_v22, %v3622_v61 }
 0x5c8   : > { %v4559_v46 = vcombine.low %v3770_v26, %v3774_v31  ;;  %v4560_v19 = vcombine.high %v3770_v26, %v3774_v31  ;;  %v3771_v42 = vsel %vm534_vm0, %v3764_v18, %v3765_v21  ;;  %v3695_v34 = vrot.slane %v3688_v30, 4 }
 0x5c9   : > { %v3772_v57 = vsel %vm1214_vm15, %v3756_v51, %v3771_v42  ;;  %v3686_v38 = vpop.permute.xlu0 %3685  ;;  %v3629_v21 = vsel %vm534_vm0, %v3622_v61, %v3623_v4  ;;  %v3516_v18 = vrot.slane %v5639_v60, 4 }
 0x5ca   : > { %v4557_v2 = vcombine.low %v3768_v40, %v3772_v57  ;;  %v4558_v41 = vcombine.high %v3768_v40, %v3772_v57  ;;  %v3703_v56 = vsel %vm534_vm0, %v3695_v34, %v3696_v25  ;;  %v3694_v12 = vrot.slane %v3686_v38, 4  ;;  %4120 = vmatprep.subr.bf16.mxu1 %v4560_v19 }
 0x5cb   : > { %v3704_v29 = vsel %vm1173_vm14, %v3688_v30, %v3703_v56  ;;  %4121 = vmatpush1.bf16.msra.mxu1 %v4559_v46  ;;  %v3618_v5 = vpop.permute.xlu1 %3617  ;;  %v3446_v25 = vrot.slane %v5641_v45, 4  ;;  %v3698_v19 = vsel %vm1173_vm14, %v5643_v23, %v3697_v9  ;;  %v3445_v46 = vrot.slane %v5631_v20, 4 }
 0x5cc   : > { %v4555_v16 = vcombine.low %v3700_v37, %v3704_v29  ;;  %v4556_v17 = vcombine.high %v3700_v37, %v3704_v29  ;;  %v3701_v42 = vsel %vm534_vm0, %v3694_v12, %v3695_v34  ;;  %v3625_v51 = vrot.slane %v3618_v5, 4  ;;  %4079 = vmatprep.subr.bf16.mxu0 %v4558_v41 }
 0x5cd   : > { %v3702_v4 = vsel %vm1173_vm14, %v3686_v38, %v3701_v42  ;;  %v3616_v26 = vpop.permute.xlu0 %3615  ;;  %4080 = vmatpush1.bf16.msra.mxu0 %v4557_v2  ;;  %v3515_v34 = vrot.slane %v5629_v48, 4  ;;  %v3630_v40 = vsel %vm1050_vm3, %v5635_v36, %v3629_v21  ;;  %v3517_v9 = vrot.slane %v5651_v24, 4 }
 0x5ce   : > { %v4553_v56 = vcombine.low %v3698_v19, %v3702_v4  ;;  %v4554_v55 = vcombine.high %v3698_v19, %v3702_v4  ;;  %v3633_v31 = vsel %vm534_vm0, %v3625_v51, %v3626_v15  ;;  %v3624_v30 = vrot.slane %v3616_v26, 4  ;;  %4122 = vmatprep.subr.bf16.mxu1 %v4556_v17 }
 0x5cf   : > { %v3634_v23 = vsel %vm1050_vm3, %v3618_v5, %v3633_v31  ;;  %4123 = vmatpush1.bf16.msra.mxu1 %v4555_v16  ;;  %v5703_v61 = vpop.permute.xlu1 %3823  ;;  %v3521_v38 = vsel %vm534_vm0, %v3515_v34, %v3516_v18  ;;  %v3376_v2 = vrot.slane %v5645_v62, 4  ;;  %v3628_v41 = vsel %vm1050_vm3, %v5647_v3, %v3627_v47 }
 0x5d0   : > { %v4551_v22 = vcombine.low %v3630_v40, %v3634_v23  ;;  %v4552_v57 = vcombine.high %v3630_v40, %v3634_v23  ;;  %v3631_v15 = vsel %vm534_vm0, %v3624_v30, %v3625_v51  ;;  %4081 = vmatprep.subr.bf16.mxu0 %v4554_v55  ;;  %v3451_v37 = vsel %vm534_vm0, %v3445_v46, %v3446_v25 }
 0x5d1   : > { %v3632_v36 = vsel %vm1050_vm3, %v3616_v26, %v3631_v15  ;;  %v3514_v12 = vpop.permute.xlu0 %3513  ;;  %4082 = vmatpush1.bf16.msra.mxu0 %v4553_v56  ;;  %v3447_v24 = vrot.slane %v5655_v0, 4  ;;  %v3375_v5 = vrot.slane %v5633_v28, 4  ;;  %v3523_v17 = vsel %vm534_vm0, %v3516_v18, %v3517_v9 }
 0x5d2   : > { %v4549_v21 = vcombine.low %v3628_v41, %v3632_v36  ;;  %v4550_v29 = vcombine.high %v3628_v41, %v3632_v36  ;;  %4124 = vmatprep.subr.bf16.mxu1 %v4552_v57  ;;  %v3518_v42 = vrot.slane %v5657_v27, 4  ;;  %v3520_v3 = vrot.slane %v3514_v12, 4 }
 0x5d3   : > { %4125 = vmatpush1.bf16.msra.mxu1 %v4551_v22  ;;  %v3512_v16 = vpop.permute.xlu1 %3511  ;;  %v5845_v19 = vpack.c.bf16 %v5540_v53, %v5514_v33  ;;  %v3305_v0 = vrot.slane %v5637_v10, 4  ;;  %v3381_v47 = vsel %vm534_vm0, %v3375_v5, %v3376_v2  ;;  %v3522_v26 = vsel %vm987_vm6, %v5629_v48, %v3521_v38 }
 0x5d4   : > { %v3519_v51 = vrot.slane %v3512_v16, 4  ;;  %4083 = vmatprep.subr.bf16.mxu0 %v4550_v29  ;;  %v3452_v18 = vsel %vm864_vm7, %v5631_v20, %v3451_v37  ;;  %v3453_v56 = vsel %vm534_vm0, %v3446_v25, %v3447_v24  ;;  %v3377_v55 = vrot.slane %v5659_v58, 4 }
 0x5d5   : > { %4126 = vmatprep.subr.bf16.mxu1 %v5845_v19  ;;  %v3444_v4 = vpop.permute.xlu0 %3443  ;;  %4084 = vmatpush1.bf16.msra.mxu0 %v4549_v21  ;;  %v5846_v53 = vpack.c.bf16 %v5537_v50, %v5511_v52  ;;  %v3448_v30 = vrot.slane %v5661_v43, 4  ;;  %v3524_v48 = vsel %vm987_vm6, %v5639_v60, %v3523_v17  ;;  %v5847_v20 = vpack.c.bf16 %v5533_v54, %v5508_v35 }
 0x5d6   : > { %v3525_v31 = vsel %vm534_vm0, %v3518_v42, %v3519_v51  ;;  %v3527_v33 = vsel %vm534_vm0, %v3519_v51, %v3520_v3  ;;  %v3450_v23 = vrot.slane %v3444_v4, 4  ;;  %v3306_v50 = vrot.slane %v5649_v44, 4 }
 0x5d7   : > { %4085 = vmatprep.subr.bf16.mxu0 %v5846_v53  ;;  %v3528_v34 = vsel %vm987_vm6, %v3512_v16, %v3527_v33  ;;  %4127 = vmatpush1.bf16.msra.mxu1 %v5847_v20  ;;  %v3442_v58 = vpop.permute.xlu1 %3441  ;;  %v3526_v25 = vsel %vm987_vm6, %v5657_v27, %v3525_v31  ;;  %v3454_v9 = vsel %vm864_vm7, %v5641_v45, %v3453_v56  ;;  %v3307_v57 = vrot.slane %v5663_v8, 4 }
 0x5d8   : > { %v4543_v46 = vcombine.low %v3524_v48, %v3528_v34  ;;  %v4544_v40 = vcombine.high %v3524_v48, %v3528_v34  ;;  %v3449_v52 = vrot.slane %v3442_v58, 4  ;;  %v5848_v22 = vpack.c.bf16 %v5530_v7, %v5505_v6 }
 0x5d9   : > { %v3374_v60 = vpop.permute.xlu0 %3373  ;;  %v4542_v35 = vcombine.high %v3522_v26, %v3526_v25  ;;  %v3382_v54 = vsel %vm823_vm10, %v5633_v28, %v3381_v47  ;;  %v3383_v27 = vsel %vm534_vm0, %v3376_v2, %v3377_v55  ;;  %v3378_v45 = vrot.slane %v5665_v11, 4 }
 0x5da   : > { %4086 = vmatpush1.bf16.msra.mxu0 %v5848_v22  ;;  %v3455_v15 = vsel %vm534_vm0, %v3448_v30, %v3449_v52  ;;  %v3457_v38 = vsel %vm534_vm0, %v3449_v52, %v3450_v23  ;;  %4128 = vmatprep.subr.bf16.mxu1 %v4544_v40  ;;  %v4541_v36 = vcombine.low %v3522_v26, %v3526_v25  ;;  %v3380_v12 = vrot.slane %v3374_v60, 4 }
 0x5db   : > { %v3458_v41 = vsel %vm864_vm7, %v3442_v58, %v3457_v38  ;;  %4087 = vmatprep.subr.bf16.mxu0 %v4542_v35  ;;  %4129 = vmatpush1.bf16.msra.mxu1 %v4543_v46  ;;  %v3372_v6 = vpop.permute.xlu1 %3371  ;;  %v3456_v7 = vsel %vm864_vm7, %v5661_v43, %v3455_v15  ;;  %v3311_v37 = vsel %vm534_vm0, %v3305_v0, %v3306_v50  ;;  %v3832_v24 = vrot.slane %v5653_v59, 4 }
 0x5dc   : > { %v4539_v28 = vcombine.low %v3454_v9, %v3458_v41  ;;  %v4540_v2 = vcombine.high %v3454_v9, %v3458_v41  ;;  %v3379_v8 = vrot.slane %v3372_v6, 4  ;;  %v3384_v21 = vsel %vm823_vm10, %v5645_v62, %v3383_v27 }
 0x5dd   : > { %v3304_v29 = vpop.permute.xlu0 %3303  ;;  %v4538_v5 = vcombine.high %v3452_v18, %v3456_v7  ;;  %v3313_v16 = vsel %vm534_vm0, %v3306_v50, %v3307_v57  ;;  %v3831_v17 = vrot.slane %v5667_v32, 4  ;;  %v3308_v3 = vrot.slane %v5669_v39, 4 }
 0x5de   : > { %4088 = vmatpush1.bf16.msra.mxu0 %v4541_v36  ;;  %v3385_v43 = vsel %vm534_vm0, %v3378_v45, %v3379_v8  ;;  %v3387_v42 = vsel %vm534_vm0, %v3379_v8, %v3380_v12  ;;  %4130 = vmatprep.subr.bf16.mxu1 %v4540_v2  ;;  %v4537_v19 = vcombine.low %v3452_v18, %v3456_v7  ;;  %v3310_v26 = vrot.slane %v3304_v29, 4 }
 0x5df   : > { %v3388_v51 = vsel %vm823_vm10, %v3372_v6, %v3387_v42  ;;  %4089 = vmatprep.subr.bf16.mxu0 %v4538_v5  ;;  %4131 = vmatpush1.bf16.msra.mxu1 %v4539_v28  ;;  %v3302_v62 = vpop.permute.xlu1 %3301  ;;  %v3386_v0 = vsel %vm823_vm10, %v5665_v11, %v3385_v43  ;;  %v3314_v55 = vsel %vm782_vm9, %v5649_v44, %v3313_v16  ;;  %v3833_v30 = vrot.slane %v5703_v61, 4 }
 0x5e0   : > { %v4535_v47 = vcombine.low %v3384_v21, %v3388_v51  ;;  %v4536_v4 = vcombine.high %v3384_v21, %v3388_v51  ;;  %v3309_v56 = vrot.slane %v3302_v62, 4  ;;  %v4534_v33 = vcombine.high %v3382_v54, %v3386_v0 }
 0x5e1   : > { %v3826_v31 = vpop.permute.xlu0 %3825  ;;  %v3312_v53 = vsel %vm782_vm9, %v5637_v10, %v3311_v37  ;;  %v3837_v18 = vsel %vm534_vm0, %v3831_v17, %v3832_v24  ;;  %v4533_v20 = vcombine.low %v3382_v54, %v3386_v0  ;;  %v3839_v52 = vsel %vm534_vm0, %v3832_v24, %v3833_v30 }
 0x5e2   : > { %4090 = vmatpush1.bf16.msra.mxu0 %v4537_v19  ;;  %v3315_v48 = vsel %vm534_vm0, %v3308_v3, %v3309_v56  ;;  %v3317_v11 = vsel %vm534_vm0, %v3309_v56, %v3310_v26  ;;  %4132 = vmatprep.subr.bf16.mxu1 %v4536_v4  ;;  %v3834_v46 = vrot.slane %v3826_v31, 4  ;;  %v3838_v60 = vsel %vm1255_vm12, %v5667_v32, %v3837_v18 }
 0x5e3   : > { %v3318_v34 = vsel %vm782_vm9, %v3302_v62, %v3317_v11  ;;  %4091 = vmatprep.subr.bf16.mxu0 %v4534_v33  ;;  %4133 = vmatpush1.bf16.msra.mxu1 %v4535_v47  ;;  %v3828_v44 = vpop.permute.xlu1 %3827  ;;  %v3316_v58 = vsel %vm782_vm9, %v5669_v39, %v3315_v48  ;;  %v3840_v27 = vsel %vm1255_vm12, %v5653_v59, %v3839_v52 }
 0x5e4   : > { %v4531_v25 = vcombine.low %v3314_v55, %v3318_v34  ;;  %v4532_v10 = vcombine.high %v3314_v55, %v3318_v34  ;;  %v3835_v40 = vrot.slane %v3828_v44, 4  ;;  %v4530_v61 = vcombine.high %v3312_v53, %v3316_v58 }
 0x5e5   : > { %v3830_v23 = vpop.permute.xlu0 %3829  ;;  %v4529_v22 = vcombine.low %v3312_v53, %v3316_v58  ;;  %v4527_v45 = vcombine.low %v5615_v49, %v5615_v49 }
 0x5e6   : > { %4092 = vmatpush1.bf16.msra.mxu0 %v4533_v20  ;;  %v3841_v50 = vsel %vm534_vm0, %v3834_v46, %v3835_v40  ;;  %v3836_v9 = vrot.slane %v3830_v23, 4  ;;  %4134 = vmatprep.subr.bf16.mxu1 %v4532_v10 }
 0x5e7   : > { %4093 = vmatprep.subr.bf16.mxu0 %v4530_v61  ;;  %4135 = vmatpush1.bf16.msra.mxu1 %v4531_v25  ;;  %v3842_v39 = vsel %vm1255_vm12, %v3826_v31, %v3841_v50 }
 0x5e8   : > { %v3843_v35 = vsel %vm534_vm0, %v3835_v40, %v3836_v9  ;;  %v4562_v54 = vcombine.high %v3838_v60, %v3842_v39  ;;  %v4561_v32 = vcombine.low %v3838_v60, %v3842_v39 }
 0x5e9   : > { %v3844_v57 = vsel %vm1255_vm12, %v3828_v44, %v3843_v35 }
 0x5ea   : > { %4094 = vmatpush1.bf16.msra.mxu0 %v4529_v22  ;;  %v4563_v15 = vcombine.low %v3840_v27, %v3844_v57  ;;  %v4564_v38 = vcombine.high %v3840_v27, %v3844_v57 }
 0x5eb   : > { %4109 = vmatprep.subr.bf16.mxu0 %v4562_v54 }
 0x5ec   : > { %4150 = vmatprep.subr.bf16.mxu1 %v4564_v38 }
 0x5ed   : > { %4151 = vmatpush2.bf16.msra.mxu1 %v4563_v15 }
 0x5ee   : > { %4110 = vmatpush2.bf16.msra.mxu0 %v4561_v32 }
 0x5f0   : > { %4153 = vmatmul.mubr.bf16.vlgmr.msra.gmra.mxu1 %v4527_v45 }
 0x5f1   : > { %4112 = vmatmul.mubr.bf16.vlgmr.msra.gmra.mxu0 %v4527_v45 }
 0x6b0   : > { %v4154_v59 = vpop.f32.mrf.mxu1 }
 0x6b1   : > { %v4113_v41 = vpop.f32.mrf.mxu0  ;;  %v4163_v6 = vmul.f32 %v4154_v59, %v5156_v1 }
 0x6b2   : > { %v4161_v36 = vmul.f32 %v4113_v41, %v5154_v63  ;;  %v4156_v28 = vpop.f32.mrf.mxu1 }
 0x6b3   : > { %v4115_v7 = vpop.f32.mrf.mxu0  ;;  %4167 = vst [vmem:[%s5169_s15 + $0x10] sm:$0xff] %v4163_v6  ;;  %v4164_v49 = vmul.f32 %v4156_v28, %v5162_v14 }
 0x6b4   : > { %4165 = vst [vmem:[%s5169_s15] sm:$0xff] %v4161_v36  ;;  %v4162_v2 = vmul.f32 %v4115_v7, %v5160_v13  ;;  %v4158_v8 = vpop.f32.mrf.mxu1 }
 0x6b5   : > { %v4117_v12 = vpop.f32.mrf.mxu0  ;;  %4168 = vst [vmem:[%s5169_s15 + $0x18] sm:$0xff] %v4164_v49 }
 0x6b6   : > { %4166 = vst [vmem:[%s5169_s15 + $0x8] sm:$0xff] %v4162_v2  ;;  %v4159_v24 = vpop.f32.mrf.mxu1 }
 0x6b7   : > { %v4118_v37 = vpop.f32.mrf.mxu0 }
 0x6b8 PF: > { %s24_s29 = sadd.s32 1, %s4810_s29  }
 0x6b9   : > { %p21_p4 = scmp.ge.s32.totalorder %s24_s29, 4  }
 0x6bb   :  { %23 = sbr.rel (!%p21_p4) target bundleno = 1 (0x1), region = 109 }

</bundles_post_ra>
